<compile_context>
chip_gen: v6e
topology: v6e:2x2x1
jax: 0.10.0
libtpu: 0.0.40
codegen_flags: <defaults>
</compile_context>

<pallas_src>
import functools

import jax
import jax.numpy as jnp
from jax.experimental import pallas as pl
from jax.experimental.pallas import tpu as pltpu

EPS = 1e-5
LANE = 128


def _round_up(n, m):
    return (n + m - 1) // m * m


def _pick_bt(B, n1, cout_p, target_rows=256, vmem_budget_bytes=8 << 20):
    """Images per grid step: enough matmul rows to fill the MXU, VMEM-bounded."""
    per_image = 6 * n1 * cout_p * 4      # ~(in + out + scratch), double-buffered, f32
    divisors = [d for d in range(1, B + 1) if B % d == 0]
    fitting = [d for d in divisors if d * per_image <= vmem_budget_bytes] or [1]
    for d in fitting:
        if d * n1 >= target_rows:
            return d
    return fitting[-1]


# ---------------------------------------------------------------------------
# Pass A: conv1 (3x3, stride s) and the optional 1x1 projection shortcut as
# nine accumulating per-tap MXU matmuls per batch tile (no im2col temp), plus
# per-tile BN sum / sum-of-squares partials.
# ---------------------------------------------------------------------------
def _conv1_kernel(*refs, Ho, Wo, stride, cin_p, cout_p, bt, proj_mode):
    if proj_mode == "separate":
        x_ref, w1_ref, wsc_ref, y1_ref, s1_ref, ysc_ref, ssc_ref = refs
    elif proj_mode == "fused":
        x_ref, w1_ref, y1_ref, s1_ref, ysc_ref, ssc_ref = refs
    else:
        x_ref, w1_ref, y1_ref, s1_ref = refs

    n = Ho * Wo
    m = bt * n

    def tap(dy, dx):
        # (bt, Ho, Wo, cin_p) patch feeding output pixel (i, j) at kernel
        # offset (dy, dx).  For stride 2 the wrapper space-to-depth packed the
        # padded input, so only unit-stride, lane-aligned slices appear here.
        if stride == 1:
            p = x_ref[:, dy:dy + Ho, dx:dx + Wo, :]
        else:
            ph = (dy % 2) * 2 + (dx % 2)
            p = x_ref[:, dy // 2:dy // 2 + Ho, dx // 2:dx // 2 + Wo,
                      ph * cin_p:(ph + 1) * cin_p]
        return p.reshape(m, cin_p)

    # nine accumulating dots (K = cin_p each) — no materialized im2col LHS.
    acc = None
    for t, (dy, dx) in enumerate([(a, b) for a in range(3) for b in range(3)]):
        d = jnp.dot(tap(dy, dx), w1_ref[t * cin_p:(t + 1) * cin_p, :],
                    preferred_element_type=jnp.float32)
        acc = d if acc is None else acc + d

    y1 = acc[:, :cout_p]
    y1_ref[...] = y1.reshape(bt, n, cout_p).astype(y1_ref.dtype)
    # single-pass BN partials from the f32 accumulator
    s1_ref[0, 0:1, :] = jnp.sum(y1, axis=0, keepdims=True)
    s1_ref[0, 1:2, :] = jnp.sum(y1 * y1, axis=0, keepdims=True)

    if proj_mode == "none":
        return
    if proj_mode == "fused":
        ysc = acc[:, cout_p:]                          # projection columns
    else:
        ysc = jnp.dot(tap(1, 1), wsc_ref[...],
                      preferred_element_type=jnp.float32)
    ysc_ref[...] = ysc.reshape(bt, n, cout_p).astype(ysc_ref.dtype)
    ssc_ref[0, 0:1, :] = jnp.sum(ysc, axis=0, keepdims=True)
    ssc_ref[0, 1:2, :] = jnp.sum(ysc * ysc, axis=0, keepdims=True)


# ---------------------------------------------------------------------------
# Pass B: bn1 (affine with global stats) + relu + conv2 (3x3, stride 1) as
# nine accumulating per-tap matmuls per batch tile, plus BN partials for bn2.
# ---------------------------------------------------------------------------
def _bn_relu_conv2_kernel(y1_ref, scale_ref, shift_ref, w2_ref,
                          y2_ref, s2_ref, hpad_ref, *, Ho, Wo, bt, mxu_dtype):
    cp = y1_ref.shape[-1]
    n = Ho * Wo
    m = bt * n

    h = jnp.maximum(
        y1_ref[...].astype(jnp.float32) * scale_ref[...] + shift_ref[...], 0.0)

    # Zero the 1-pixel border of the persistent padded scratch only on the
    # first grid step; the interior is fully rewritten every step.
    @pl.when(pl.program_id(0) == 0)
    def _zero_border():
        hpad_ref[:, 0:1, :, :] = jnp.zeros((bt, 1, Wo + 2, cp), mxu_dtype)
        hpad_ref[:, Ho + 1:Ho + 2, :, :] = jnp.zeros((bt, 1, Wo + 2, cp), mxu_dtype)
        hpad_ref[:, :, 0:1, :] = jnp.zeros((bt, Ho + 2, 1, cp), mxu_dtype)
        hpad_ref[:, :, Wo + 1:Wo + 2, :] = jnp.zeros((bt, Ho + 2, 1, cp), mxu_dtype)

    hpad_ref[:, 1:Ho + 1, 1:Wo + 1, :] = h.astype(mxu_dtype).reshape(bt, Ho, Wo, cp)

    acc = None
    for t, (dy, dx) in enumerate([(a, b) for a in range(3) for b in range(3)]):
        patch = hpad_ref[:, dy:dy + Ho, dx:dx + Wo, :].reshape(m, cp)
        d = jnp.dot(patch, w2_ref[t * cp:(t + 1) * cp, :],
                    preferred_element_type=jnp.float32)
        acc = d if acc is None else acc + d

    y2_ref[...] = acc.reshape(bt, n, cp).astype(y2_ref.dtype)
    s2_ref[0, 0:1, :] = jnp.sum(acc, axis=0, keepdims=True)
    s2_ref[0, 1:2, :] = jnp.sum(acc * acc, axis=0, keepdims=True)


# ---------------------------------------------------------------------------
# Parameters (PyTorch shapes) and the public forward wrapper.
# ---------------------------------------------------------------------------
def init_params(key, ch_in, ch_out):
    """Deterministic synthetic parameters in PyTorch shapes."""
    ks = jax.random.split(key, 12)
    p = {
        "conv1_w": 0.1 * jax.random.normal(ks[0], (ch_out, ch_in, 3, 3), jnp.float32),
        "conv1_b": 0.1 * jax.random.normal(ks[1], (ch_out,), jnp.float32),
        "bn1_g": 1.0 + 0.1 * jax.random.normal(ks[2], (ch_out,), jnp.float32),
        "bn1_b": 0.1 * jax.random.normal(ks[3], (ch_out,), jnp.float32),
        "conv2_w": 0.1 * jax.random.normal(ks[4], (ch_out, ch_out, 3, 3), jnp.float32),
        "conv2_b": 0.1 * jax.random.normal(ks[5], (ch_out,), jnp.float32),
        "bn2_g": 1.0 + 0.1 * jax.random.normal(ks[6], (ch_out,), jnp.float32),
        "bn2_b": 0.1 * jax.random.normal(ks[7], (ch_out,), jnp.float32),
    }
    if ch_in != ch_out:
        p.update({
            "sc_w": 0.1 * jax.random.normal(ks[8], (ch_out, ch_in, 1, 1), jnp.float32),
            "sc_b": 0.1 * jax.random.normal(ks[9], (ch_out,), jnp.float32),
            "bnsc_g": 1.0 + 0.1 * jax.random.normal(ks[10], (ch_out,), jnp.float32),
            "bnsc_b": 0.1 * jax.random.normal(ks[11], (ch_out,), jnp.float32),
        })
    return p


@functools.partial(jax.jit, static_argnames=("stride", "mxu_dtype"))
def resblk_forward(x_nchw, params, stride=1, mxu_dtype=jnp.bfloat16):
    B, Cin, H, W = x_nchw.shape
    Cout = params["conv1_w"].shape[0]
    has_extra = Cin != Cout
    if stride not in (1, 2):
        raise ValueError("ResNet-18 ResBlk only uses stride 1 or 2")
    if not has_extra and stride != 1:
        raise ValueError("identity shortcut with stride != 1 is ill-defined "
                         "(the PyTorch module fails on the residual add)")
    if stride == 2 and (H % 2 or W % 2):
        raise ValueError("stride-2 blocks require even H and W")

    Ho = (H + 2 - 3) // stride + 1
    Wo = (W + 2 - 3) // stride + 1
    n1 = Ho * Wo
    cin_p = _round_up(Cin, LANE)
    cout_p = _round_up(Cout, LANE)
    count = float(B * n1)
    f32 = jnp.float32
    store_dtype = mxu_dtype                 # bf16 intermediates halve HBM traffic
    bt = _pick_bt(B, n1, cout_p)            # images per grid step (MXU row fill)
    G = B // bt
    # fuse the 1x1 projection into conv1's output columns when it fills the
    # 256-wide MXU (v6e/v7x); wider channels keep a separate center-tap matmul.
    proj_mode = ("none" if not has_extra
                 else ("fused" if cout_p == LANE else "separate"))

    par = pltpu.CompilerParams(
        dimension_semantics=("parallel",),
        vmem_limit_bytes=64 * 1024 * 1024)

    # ---- layout glue (plain JAX) --------------------------------------------
    # TODO(synk): when chaining blocks keep padded NHWC end-to-end so this
    #             transpose + channel pad is paid once per network, not per block.
    x_nhwc = jnp.transpose(x_nchw, (0, 2, 3, 1)).astype(f32)
    x_cp = jnp.pad(x_nhwc, ((0, 0), (0, 0), (0, 0), (0, cin_p - Cin)))
    xpad = jnp.pad(x_cp, ((0, 0), (1, 1), (1, 1), (0, 0))).astype(mxu_dtype)
    if stride == 2:
        h2, w2p = (H + 2) // 2, (W + 2) // 2
        xk = xpad.reshape(B, h2, 2, w2p, 2, cin_p)
        xk = jnp.transpose(xk, (0, 1, 3, 2, 4, 5)).reshape(B, h2, w2p, 4 * cin_p)
    else:
        xk = xpad

    def w3x3_f32(w, ci_p, co_p):  # (Cout,Cin,3,3) -> (9*ci_p, co_p), tap-major rows
        co, ci = w.shape[0], w.shape[1]
        w = jnp.transpose(w, (2, 3, 1, 0)).astype(f32)
        w = jnp.pad(w, ((0, 0), (0, 0), (0, ci_p - ci), (0, co_p - co)))
        return w.reshape(9 * ci_p, co_p)

    def pad_ch(v, n, fill=0.0):
        return jnp.pad(v.astype(f32), (0, n - v.shape[0]), constant_values=fill)

    w1 = w3x3_f32(params["conv1_w"], cin_p, cout_p)
    w2 = w3x3_f32(params["conv2_w"], cout_p, cout_p).astype(mxu_dtype)
    g1, b1 = pad_ch(params["bn1_g"], cout_p, 1.0), pad_ch(params["bn1_b"], cout_p)
    g2, b2 = pad_ch(params["bn2_g"], cout_p, 1.0), pad_ch(params["bn2_b"], cout_p)

    wsc = None
    if has_extra:
        wsc = jnp.pad(jnp.transpose(params["sc_w"][:, :, 0, 0], (1, 0)).astype(f32),
                      ((0, cin_p - Cin), (0, cout_p - Cout)))
    if proj_mode == "fused":
        # projection weights live only in the center-tap rows; other rows zero.
        wsc_full = jnp.zeros((9 * cin_p, cout_p), f32)
        wsc_full = wsc_full.at[4 * cin_p:5 * cin_p, :].set(wsc)
        w1k = jnp.concatenate([w1, wsc_full], axis=1).astype(mxu_dtype)  # N = 2*cout_p
    else:
        w1k = w1.astype(mxu_dtype)

    def bn_affine(stats, gamma, beta):
        ssum = jnp.sum(stats[:, 0, :], axis=0)
        ssq = jnp.sum(stats[:, 1, :], axis=0)
        mean = ssum / count
        var = jnp.maximum(ssq / count - mean * mean, 0.0)   # biased variance
        scale = gamma * jax.lax.rsqrt(var + EPS)
        shift = beta - mean * scale
        return scale, shift

    big_spec = pl.BlockSpec((bt, n1, cout_p), lambda b: (b, 0, 0))
    st_spec = pl.BlockSpec((1, 2, cout_p), lambda b: (b, 0, 0))
    vec_spec = pl.BlockSpec((1, cout_p), lambda b: (0, 0))
    y_shape = jax.ShapeDtypeStruct((B, n1, cout_p), store_dtype)
    st_shape = jax.ShapeDtypeStruct((G, 2, cout_p), f32)

    # ---- pass A: conv1 (+ projection shortcut) + per-tile BN partials -------
    in_specs = [pl.BlockSpec((bt,) + xk.shape[1:], lambda b: (b, 0, 0, 0)),
                pl.BlockSpec(w1k.shape, lambda b: (0, 0))]
    args = [xk, w1k]
    out_shape = [y_shape, st_shape]
    out_specs = [big_spec, st_spec]
    if proj_mode == "separate":
        in_specs.append(pl.BlockSpec(wsc.shape, lambda b: (0, 0)))
        args.append(wsc.astype(mxu_dtype))
    if proj_mode != "none":
        out_shape += [y_shape, st_shape]
        out_specs += [big_spec, st_spec]

    res_a = pl.pallas_call(
        functools.partial(_conv1_kernel, Ho=Ho, Wo=Wo, stride=stride,
                          cin_p=cin_p, cout_p=cout_p, bt=bt, proj_mode=proj_mode),
        grid=(G,), in_specs=in_specs, out_specs=out_specs,
        out_shape=tuple(out_shape), compiler_params=par,
    )(*args)
    if proj_mode == "none":
        y1, st1 = res_a
        ysc = stsc = None
    else:
        y1, st1, ysc, stsc = res_a

    # ---- pass B: bn1(global stats) + relu + conv2 + BN partials -------------
    scale1, shift1 = bn_affine(st1, g1, b1)
    y2, st2 = pl.pallas_call(
        functools.partial(_bn_relu_conv2_kernel, Ho=Ho, Wo=Wo, bt=bt,
                          mxu_dtype=mxu_dtype),
        grid=(G,),
        in_specs=[big_spec, vec_spec, vec_spec,
                  pl.BlockSpec(w2.shape, lambda b: (0, 0))],
        out_specs=[big_spec, st_spec],
        out_shape=(y_shape, st_shape),
        scratch_shapes=[pltpu.VMEM((bt, Ho + 2, Wo + 2, cout_p), mxu_dtype)],
        compiler_params=par,
    )(y1, scale1.reshape(1, cout_p), shift1.reshape(1, cout_p), w2)

    # ---- pass C: bn2 + shortcut (BN | identity) + add + relu ----------------
    # Pure elementwise, memory-bound: done in plain JAX so XLA fuses it with
    # the channel slice and NHWC->NCHW transpose (per performance feedback).
    scale2, shift2 = bn_affine(st2, g2, b2)
    out = y2.astype(f32) * scale2 + shift2
    if has_extra:
        gsc = pad_ch(params["bnsc_g"], cout_p, 1.0)
        bsc = pad_ch(params["bnsc_b"], cout_p)
        scale_sc, shift_sc = bn_affine(stsc, gsc, bsc)
        out = out + (ysc.astype(f32) * scale_sc + shift_sc)
    else:
        out = out + x_cp.reshape(B, H * W, cin_p)     # identity skip (stride==1)
    out = jnp.maximum(out, 0.0)
    out = out[:, :, :Cout].reshape(B, Ho, Wo, Cout)
    return jnp.transpose(out, (0, 3, 1, 2))           # back to NCHW


# ---- pure-JAX reference (correctness check only) ---------------------------
def resblk_ref(x, params, stride=1):
    def conv(x, w, b, s, pad):
        y = jax.lax.conv_general_dilated(
            x, w, (s, s), [(pad, pad), (pad, pad)],
            dimension_numbers=("NCHW", "OIHW", "NCHW"),
            precision=jax.lax.Precision.HIGHEST)
        return y + b.reshape(1, -1, 1, 1)

    def bn(y, g, b):
        mean = y.mean(axis=(0, 2, 3), keepdims=True)
        var = ((y - mean) ** 2).mean(axis=(0, 2, 3), keepdims=True)
        return ((y - mean) / jnp.sqrt(var + EPS) * g.reshape(1, -1, 1, 1)
                + b.reshape(1, -1, 1, 1))

    out = jax.nn.relu(bn(conv(x, params["conv1_w"], params["conv1_b"], stride, 1),
                         params["bn1_g"], params["bn1_b"]))
    out = bn(conv(out, params["conv2_w"], params["conv2_b"], 1, 1),
             params["bn2_g"], params["bn2_b"])
    if params["conv1_w"].shape[1] != params["conv1_w"].shape[0]:
        sc = bn(conv(x, params["sc_w"], params["sc_b"], stride, 0),
                params["bnsc_g"], params["bnsc_b"])
    else:
        sc = x
    return jax.nn.relu(sc + out)


if __name__ == "__main__":
    key = jax.random.PRNGKey(0)
    kx, kp, k2, k3 = jax.random.split(key, 4)

    # config 1: projection shortcut + stride 2, cout_p==128 -> fused projection
    B, Cin, H, W, Cout, stride = 2, 4, 16, 16, 8, 2
    x = jax.random.normal(kx, (B, Cin, H, W), jnp.float32)
    params = init_params(kp, Cin, Cout)
    ref = resblk_ref(x, params, stride=stride)

    out_f32 = jax.block_until_ready(
        resblk_forward(x, params, stride=stride, mxu_dtype=jnp.float32))
    assert out_f32.shape == ref.shape == (B, Cout, H // stride, W // stride)
    assert bool(jnp.allclose(out_f32, ref, rtol=2e-2, atol=2e-2)), \
        "f32 mismatch (fused projection / stride-2)"

    out_bf16 = jax.block_until_ready(
        resblk_forward(x, params, stride=stride, mxu_dtype=jnp.bfloat16))
    assert bool(jnp.allclose(out_bf16, ref, rtol=5e-2, atol=5e-2)), \
        "bf16 mismatch (fused projection / stride-2)"

    # config 2: identity shortcut (Cin == Cout, stride 1), like blk1/2/4/6/8
    B2, C2, Hs, Ws = 2, 8, 16, 16
    x2 = jax.random.normal(k2, (B2, C2, Hs, Ws), jnp.float32)
    params2 = init_params(jax.random.fold_in(kp, 1), C2, C2)
    ref2 = resblk_ref(x2, params2, stride=1)
    out2 = jax.block_until_ready(
        resblk_forward(x2, params2, stride=1, mxu_dtype=jnp.float32))
    assert bool(jnp.allclose(out2, ref2, rtol=2e-2, atol=2e-2)), \
        "f32 mismatch (identity shortcut)"

    # config 3: projection shortcut with cout_p==256 -> separate (unfused) path
    B3, Cin3, H3, W3, Cout3 = 2, 4, 8, 8, 136
    x3 = jax.random.normal(k3, (B3, Cin3, H3, W3), jnp.float32)
    params3 = init_params(jax.random.fold_in(kp, 2), Cin3, Cout3)
    ref3 = resblk_ref(x3, params3, stride=2)
    out3 = jax.block_until_ready(
        resblk_forward(x3, params3, stride=2, mxu_dtype=jnp.float32))
    assert bool(jnp.allclose(out3, ref3, rtol=2e-2, atol=2e-2)), \
        "f32 mismatch (separate projection / stride-2)"

    print("KERNEL_OK")
</pallas_src>

<mosaic_0001>
module attributes {stable_mosaic.version = 11 : i64} {
  func.func @_conv1_kernel(%arg0: i32, %arg1: memref<2x9x9x512xf32, #tpu.memory_space<vmem>>, %arg2: memref<1152x256xf32, #tpu.memory_space<vmem>>, %arg3: memref<2x64x128xf32, #tpu.memory_space<vmem>>, %arg4: memref<1x2x128xf32, #tpu.memory_space<vmem>>, %arg5: memref<2x64x128xf32, #tpu.memory_space<vmem>>, %arg6: memref<1x2x128xf32, #tpu.memory_space<vmem>>) attributes {dimension_semantics = [#tpu.dimension_semantics<parallel>], iteration_bounds = array<i64: 1>, scalar_prefetch = 0 : i64, scratch_operands = 0 : i64, tpu.core_type = #tpu.core_type<tc>, window_params = [{transform_indices = @transform_0, window_bounds = array<i64: 2, 9, 9, 512>}, {pipeline_mode = #tpu.pipeline_mode<synchronous>, transform_indices = @transform_1, window_bounds = array<i64: 1152, 256>}, {transform_indices = @transform_2, window_bounds = array<i64: 2, 64, 128>}, {transform_indices = @transform_3, window_bounds = array<i64: 1, 2, 128>}, {transform_indices = @transform_4, window_bounds = array<i64: 2, 64, 128>}, {transform_indices = @transform_5, window_bounds = array<i64: 1, 2, 128>}]} {
    %c0 = arith.constant 0 : index
    %c0_0 = arith.constant 0 : index
    %c0_1 = arith.constant 0 : index
    %c0_2 = arith.constant 0 : index
    %0 = vector.load %arg1[%c0, %c0_0, %c0_1, %c0_2] : memref<2x9x9x512xf32, #tpu.memory_space<vmem>>, vector<2x8x8x128xf32>
    %1 = vector.shape_cast %0 : vector<2x8x8x128xf32> to vector<128x128xf32>
    %c0_3 = arith.constant 0 : index
    %c0_4 = arith.constant 0 : index
    %2 = vector.load %arg2[%c0_3, %c0_4] : memref<1152x256xf32, #tpu.memory_space<vmem>>, vector<128x256xf32>
    %cst = arith.constant dense<0.000000e+00> : vector<128x256xf32>
    %3 = tpu.matmul %1, %2, %cst {dimension_numbers = #tpu.dot_dimension_numbers<[1], [0], [0], [1], [0, 0, 1, 1], [], []>} : vector<128x128xf32>, vector<128x256xf32>, vector<128x256xf32> -> vector<128x256xf32>
    %c0_5 = arith.constant 0 : index
    %c0_6 = arith.constant 0 : index
    %c0_7 = arith.constant 0 : index
    %c128 = arith.constant 128 : index
    %4 = vector.load %arg1[%c0_5, %c0_6, %c0_7, %c128] : memref<2x9x9x512xf32, #tpu.memory_space<vmem>>, vector<2x8x8x128xf32>
    %5 = vector.shape_cast %4 : vector<2x8x8x128xf32> to vector<128x128xf32>
    %c128_8 = arith.constant 128 : index
    %c0_9 = arith.constant 0 : index
    %6 = vector.load %arg2[%c128_8, %c0_9] : memref<1152x256xf32, #tpu.memory_space<vmem>>, vector<128x256xf32>
    %cst_10 = arith.constant dense<0.000000e+00> : vector<128x256xf32>
    %7 = tpu.matmul %5, %6, %cst_10 {dimension_numbers = #tpu.dot_dimension_numbers<[1], [0], [0], [1], [0, 0, 1, 1], [], []>} : vector<128x128xf32>, vector<128x256xf32>, vector<128x256xf32> -> vector<128x256xf32>
    %8 = arith.addf %3, %7 : vector<128x256xf32>
    %c0_11 = arith.constant 0 : index
    %c0_12 = arith.constant 0 : index
    %c1 = arith.constant 1 : index
    %c0_13 = arith.constant 0 : index
    %9 = vector.load %arg1[%c0_11, %c0_12, %c1, %c0_13] : memref<2x9x9x512xf32, #tpu.memory_space<vmem>>, vector<2x8x8x128xf32>
    %10 = vector.shape_cast %9 : vector<2x8x8x128xf32> to vector<128x128xf32>
    %c256 = arith.constant 256 : index
    %c0_14 = arith.constant 0 : index
    %11 = vector.load %arg2[%c256, %c0_14] : memref<1152x256xf32, #tpu.memory_space<vmem>>, vector<128x256xf32>
    %cst_15 = arith.constant dense<0.000000e+00> : vector<128x256xf32>
    %12 = tpu.matmul %10, %11, %cst_15 {dimension_numbers = #tpu.dot_dimension_numbers<[1], [0], [0], [1], [0, 0, 1, 1], [], []>} : vector<128x128xf32>, vector<128x256xf32>, vector<128x256xf32> -> vector<128x256xf32>
    %13 = arith.addf %8, %12 : vector<128x256xf32>
    %c0_16 = arith.constant 0 : index
    %c0_17 = arith.constant 0 : index
    %c0_18 = arith.constant 0 : index
    %c256_19 = arith.constant 256 : index
    %14 = vector.load %arg1[%c0_16, %c0_17, %c0_18, %c256_19] : memref<2x9x9x512xf32, #tpu.memory_space<vmem>>, vector<2x8x8x128xf32>
    %15 = vector.shape_cast %14 : vector<2x8x8x128xf32> to vector<128x128xf32>
    %c384 = arith.constant 384 : index
    %c0_20 = arith.constant 0 : index
    %16 = vector.load %arg2[%c384, %c0_20] : memref<1152x256xf32, #tpu.memory_space<vmem>>, vector<128x256xf32>
    %cst_21 = arith.constant dense<0.000000e+00> : vector<128x256xf32>
    %17 = tpu.matmul %15, %16, %cst_21 {dimension_numbers = #tpu.dot_dimension_numbers<[1], [0], [0], [1], [0, 0, 1, 1], [], []>} : vector<128x128xf32>, vector<128x256xf32>, vector<128x256xf32> -> vector<128x256xf32>
    %18 = arith.addf %13, %17 : vector<128x256xf32>
    %c0_22 = arith.constant 0 : index
    %c0_23 = arith.constant 0 : index
    %c0_24 = arith.constant 0 : index
    %c384_25 = arith.constant 384 : index
    %19 = vector.load %arg1[%c0_22, %c0_23, %c0_24, %c384_25] : memref<2x9x9x512xf32, #tpu.memory_space<vmem>>, vector<2x8x8x128xf32>
    %20 = vector.shape_cast %19 : vector<2x8x8x128xf32> to vector<128x128xf32>
    %c512 = arith.constant 512 : index
    %c0_26 = arith.constant 0 : index
    %21 = vector.load %arg2[%c512, %c0_26] : memref<1152x256xf32, #tpu.memory_space<vmem>>, vector<128x256xf32>
    %cst_27 = arith.constant dense<0.000000e+00> : vector<128x256xf32>
    %22 = tpu.matmul %20, %21, %cst_27 {dimension_numbers = #tpu.dot_dimension_numbers<[1], [0], [0], [1], [0, 0, 1, 1], [], []>} : vector<128x128xf32>, vector<128x256xf32>, vector<128x256xf32> -> vector<128x256xf32>
    %23 = arith.addf %18, %22 : vector<128x256xf32>
    %c0_28 = arith.constant 0 : index
    %c0_29 = arith.constant 0 : index
    %c1_30 = arith.constant 1 : index
    %c256_31 = arith.constant 256 : index
    %24 = vector.load %arg1[%c0_28, %c0_29, %c1_30, %c256_31] : memref<2x9x9x512xf32, #tpu.memory_space<vmem>>, vector<2x8x8x128xf32>
    %25 = vector.shape_cast %24 : vector<2x8x8x128xf32> to vector<128x128xf32>
    %c640 = arith.constant 640 : index
    %c0_32 = arith.constant 0 : index
    %26 = vector.load %arg2[%c640, %c0_32] : memref<1152x256xf32, #tpu.memory_space<vmem>>, vector<128x256xf32>
    %cst_33 = arith.constant dense<0.000000e+00> : vector<128x256xf32>
    %27 = tpu.matmul %25, %26, %cst_33 {dimension_numbers = #tpu.dot_dimension_numbers<[1], [0], [0], [1], [0, 0, 1, 1], [], []>} : vector<128x128xf32>, vector<128x256xf32>, vector<128x256xf32> -> vector<128x256xf32>
    %28 = arith.addf %23, %27 : vector<128x256xf32>
    %c0_34 = arith.constant 0 : index
    %c1_35 = arith.constant 1 : index
    %c0_36 = arith.constant 0 : index
    %c0_37 = arith.constant 0 : index
    %29 = vector.load %arg1[%c0_34, %c1_35, %c0_36, %c0_37] : memref<2x9x9x512xf32, #tpu.memory_space<vmem>>, vector<2x8x8x128xf32>
    %30 = vector.shape_cast %29 : vector<2x8x8x128xf32> to vector<128x128xf32>
    %c768 = arith.constant 768 : index
    %c0_38 = arith.constant 0 : index
    %31 = vector.load %arg2[%c768, %c0_38] : memref<1152x256xf32, #tpu.memory_space<vmem>>, vector<128x256xf32>
    %cst_39 = arith.constant dense<0.000000e+00> : vector<128x256xf32>
    %32 = tpu.matmul %30, %31, %cst_39 {dimension_numbers = #tpu.dot_dimension_numbers<[1], [0], [0], [1], [0, 0, 1, 1], [], []>} : vector<128x128xf32>, vector<128x256xf32>, vector<128x256xf32> -> vector<128x256xf32>
    %33 = arith.addf %28, %32 : vector<128x256xf32>
    %c0_40 = arith.constant 0 : index
    %c1_41 = arith.constant 1 : index
    %c0_42 = arith.constant 0 : index
    %c128_43 = arith.constant 128 : index
    %34 = vector.load %arg1[%c0_40, %c1_41, %c0_42, %c128_43] : memref<2x9x9x512xf32, #tpu.memory_space<vmem>>, vector<2x8x8x128xf32>
    %35 = vector.shape_cast %34 : vector<2x8x8x128xf32> to vector<128x128xf32>
    %c896 = arith.constant 896 : index
    %c0_44 = arith.constant 0 : index
    %36 = vector.load %arg2[%c896, %c0_44] : memref<1152x256xf32, #tpu.memory_space<vmem>>, vector<128x256xf32>
    %cst_45 = arith.constant dense<0.000000e+00> : vector<128x256xf32>
    %37 = tpu.matmul %35, %36, %cst_45 {dimension_numbers = #tpu.dot_dimension_numbers<[1], [0], [0], [1], [0, 0, 1, 1], [], []>} : vector<128x128xf32>, vector<128x256xf32>, vector<128x256xf32> -> vector<128x256xf32>
    %38 = arith.addf %33, %37 : vector<128x256xf32>
    %c0_46 = arith.constant 0 : index
    %c1_47 = arith.constant 1 : index
    %c1_48 = arith.constant 1 : index
    %c0_49 = arith.constant 0 : index
    %39 = vector.load %arg1[%c0_46, %c1_47, %c1_48, %c0_49] : memref<2x9x9x512xf32, #tpu.memory_space<vmem>>, vector<2x8x8x128xf32>
    %40 = vector.shape_cast %39 : vector<2x8x8x128xf32> to vector<128x128xf32>
    %c1024 = arith.constant 1024 : index
    %c0_50 = arith.constant 0 : index
    %41 = vector.load %arg2[%c1024, %c0_50] : memref<1152x256xf32, #tpu.memory_space<vmem>>, vector<128x256xf32>
    %cst_51 = arith.constant dense<0.000000e+00> : vector<128x256xf32>
    %42 = tpu.matmul %40, %41, %cst_51 {dimension_numbers = #tpu.dot_dimension_numbers<[1], [0], [0], [1], [0, 0, 1, 1], [], []>} : vector<128x128xf32>, vector<128x256xf32>, vector<128x256xf32> -> vector<128x256xf32>
    %43 = arith.addf %38, %42 : vector<128x256xf32>
    %44 = vector.extract_strided_slice %43 {offsets = [0, 0], sizes = [128, 128], strides = [1, 1]} : vector<128x256xf32> to vector<128x128xf32>
    %45 = vector.shape_cast %44 : vector<128x128xf32> to vector<2x64x128xf32>
    %c0_52 = arith.constant 0 : index
    %c0_53 = arith.constant 0 : index
    %c0_54 = arith.constant 0 : index
    %46 = vector.load %arg3[%c0_52, %c0_53, %c0_54] : memref<2x64x128xf32, #tpu.memory_space<vmem>>, vector<2x64x128xf32>
    tpu.vector_store %arg3[%c0_52, %c0_53, %c0_54], %45 {strides = array<i32>} : memref<2x64x128xf32, #tpu.memory_space<vmem>>, vector<2x64x128xf32>,
    %cst_55 = arith.constant dense<0.000000e+00> : vector<128xf32>
    %47 = vector.multi_reduction <add>, %44, %cst_55 [0] : vector<128x128xf32> to vector<128xf32>
    %48 = vector.shape_cast %47 : vector<128xf32> to vector<1x128xf32>
    %c0_56 = arith.constant 0 : index
    %c0_57 = arith.constant 0 : index
    %c0_58 = arith.constant 0 : index
    %49 = vector.load %arg4[%c0_56, %c0_57, %c0_58] : memref<1x2x128xf32, #tpu.memory_space<vmem>>, vector<1x1x128xf32>
    %50 = vector.shape_cast %49 : vector<1x1x128xf32> to vector<1x128xf32>
    %51 = vector.shape_cast %48 : vector<1x128xf32> to vector<1x1x128xf32>
    tpu.vector_store %arg4[%c0_56, %c0_57, %c0_58], %51 {strides = array<i32>} : memref<1x2x128xf32, #tpu.memory_space<vmem>>, vector<1x1x128xf32>,
    %52 = arith.mulf %44, %44 : vector<128x128xf32>
    %cst_59 = arith.constant dense<0.000000e+00> : vector<128xf32>
    %53 = vector.multi_reduction <add>, %52, %cst_59 [0] : vector<128x128xf32> to vector<128xf32>
    %54 = vector.shape_cast %53 : vector<128xf32> to vector<1x128xf32>
    %c0_60 = arith.constant 0 : index
    %c1_61 = arith.constant 1 : index
    %c0_62 = arith.constant 0 : index
    %55 = vector.load %arg4[%c0_60, %c1_61, %c0_62] : memref<1x2x128xf32, #tpu.memory_space<vmem>>, vector<1x1x128xf32>
    %56 = vector.shape_cast %55 : vector<1x1x128xf32> to vector<1x128xf32>
    %57 = vector.shape_cast %54 : vector<1x128xf32> to vector<1x1x128xf32>
    tpu.vector_store %arg4[%c0_60, %c1_61, %c0_62], %57 {strides = array<i32>} : memref<1x2x128xf32, #tpu.memory_space<vmem>>, vector<1x1x128xf32>,
    %58 = vector.extract_strided_slice %43 {offsets = [0, 128], sizes = [128, 128], strides = [1, 1]} : vector<128x256xf32> to vector<128x128xf32>
    %59 = vector.shape_cast %58 : vector<128x128xf32> to vector<2x64x128xf32>
    %c0_63 = arith.constant 0 : index
    %c0_64 = arith.constant 0 : index
    %c0_65 = arith.constant 0 : index
    %60 = vector.load %arg5[%c0_63, %c0_64, %c0_65] : memref<2x64x128xf32, #tpu.memory_space<vmem>>, vector<2x64x128xf32>
    tpu.vector_store %arg5[%c0_63, %c0_64, %c0_65], %59 {strides = array<i32>} : memref<2x64x128xf32, #tpu.memory_space<vmem>>, vector<2x64x128xf32>,
    %cst_66 = arith.constant dense<0.000000e+00> : vector<128xf32>
    %61 = vector.multi_reduction <add>, %58, %cst_66 [0] : vector<128x128xf32> to vector<128xf32>
    %62 = vector.shape_cast %61 : vector<128xf32> to vector<1x128xf32>
    %c0_67 = arith.constant 0 : index
    %c0_68 = arith.constant 0 : index
    %c0_69 = arith.constant 0 : index
    %63 = vector.load %arg6[%c0_67, %c0_68, %c0_69] : memref<1x2x128xf32, #tpu.memory_space<vmem>>, vector<1x1x128xf32>
    %64 = vector.shape_cast %63 : vector<1x1x128xf32> to vector<1x128xf32>
    %65 = vector.shape_cast %62 : vector<1x128xf32> to vector<1x1x128xf32>
    tpu.vector_store %arg6[%c0_67, %c0_68, %c0_69], %65 {strides = array<i32>} : memref<1x2x128xf32, #tpu.memory_space<vmem>>, vector<1x1x128xf32>,
    %66 = arith.mulf %58, %58 : vector<128x128xf32>
    %cst_70 = arith.constant dense<0.000000e+00> : vector<128xf32>
    %67 = vector.multi_reduction <add>, %66, %cst_70 [0] : vector<128x128xf32> to vector<128xf32>
    %68 = vector.shape_cast %67 : vector<128xf32> to vector<1x128xf32>
    %c0_71 = arith.constant 0 : index
    %c1_72 = arith.constant 1 : index
    %c0_73 = arith.constant 0 : index
    %69 = vector.load %arg6[%c0_71, %c1_72, %c0_73] : memref<1x2x128xf32, #tpu.memory_space<vmem>>, vector<1x1x128xf32>
    %70 = vector.shape_cast %69 : vector<1x1x128xf32> to vector<1x128xf32>
    %71 = vector.shape_cast %68 : vector<1x128xf32> to vector<1x1x128xf32>
    tpu.vector_store %arg6[%c0_71, %c1_72, %c0_73], %71 {strides = array<i32>} : memref<1x2x128xf32, #tpu.memory_space<vmem>>, vector<1x1x128xf32>,
    return
  }
  func.func @transform_0(%arg0: i32) -> (i32, i32, i32, i32) {
    %c0_i32 = arith.constant 0 : i32
    %c0_i32_0 = arith.constant 0 : i32
    %c0_i32_1 = arith.constant 0 : i32
    %c0_i32_2 = arith.constant 0 : i32
    return %arg0, %c0_i32, %c0_i32_0, %c0_i32_1 : i32, i32, i32, i32
  }
  func.func @transform_1(%arg0: i32) -> (i32, i32) {
    %c0_i32 = arith.constant 0 : i32
    %c0_i32_0 = arith.constant 0 : i32
    %c0_i32_1 = arith.constant 0 : i32
    return %c0_i32, %c0_i32_0 : i32, i32
  }
  func.func @transform_2(%arg0: i32) -> (i32, i32, i32) {
    %c0_i32 = arith.constant 0 : i32
    %c0_i32_0 = arith.constant 0 : i32
    %c0_i32_1 = arith.constant 0 : i32
    return %arg0, %c0_i32, %c0_i32_0 : i32, i32, i32
  }
  func.func @transform_3(%arg0: i32) -> (i32, i32, i32) {
    %c0_i32 = arith.constant 0 : i32
    %c0_i32_0 = arith.constant 0 : i32
    %c0_i32_1 = arith.constant 0 : i32
    return %arg0, %c0_i32, %c0_i32_0 : i32, i32, i32
  }
  func.func @transform_4(%arg0: i32) -> (i32, i32, i32) {
    %c0_i32 = arith.constant 0 : i32
    %c0_i32_0 = arith.constant 0 : i32
    %c0_i32_1 = arith.constant 0 : i32
    return %arg0, %c0_i32, %c0_i32_0 : i32, i32, i32
  }
  func.func @transform_5(%arg0: i32) -> (i32, i32, i32) {
    %c0_i32 = arith.constant 0 : i32
    %c0_i32_0 = arith.constant 0 : i32
    %c0_i32_1 = arith.constant 0 : i32
    return %arg0, %c0_i32, %c0_i32_0 : i32, i32, i32
  }
}

module attributes {stable_mosaic.version = 11 : i64} {
  func.func @_bn_relu_conv2_kernel(%arg0: i32, %arg1: memref<2x64x128xf32, #tpu.memory_space<vmem>>, %arg2: memref<1x128xf32, #tpu.memory_space<vmem>>, %arg3: memref<1x128xf32, #tpu.memory_space<vmem>>, %arg4: memref<1152x128xf32, #tpu.memory_space<vmem>>, %arg5: memref<2x64x128xf32, #tpu.memory_space<vmem>>, %arg6: memref<1x2x128xf32, #tpu.memory_space<vmem>>, %arg7: memref<2x10x10x128xf32, #tpu.memory_space<vmem>>) attributes {dimension_semantics = [#tpu.dimension_semantics<parallel>], iteration_bounds = array<i64: 1>, scalar_prefetch = 0 : i64, scratch_operands = 1 : i64, tpu.core_type = #tpu.core_type<tc>, window_params = [{transform_indices = @transform_0, window_bounds = array<i64: 2, 64, 128>}, {pipeline_mode = #tpu.pipeline_mode<synchronous>, transform_indices = @transform_1, window_bounds = array<i64: 1, 128>}, {pipeline_mode = #tpu.pipeline_mode<synchronous>, transform_indices = @transform_2, window_bounds = array<i64: 1, 128>}, {pipeline_mode = #tpu.pipeline_mode<synchronous>, transform_indices = @transform_3, window_bounds = array<i64: 1152, 128>}, {transform_indices = @transform_4, window_bounds = array<i64: 2, 64, 128>}, {transform_indices = @transform_5, window_bounds = array<i64: 1, 2, 128>}]} {
    %c0 = arith.constant 0 : index
    %c0_0 = arith.constant 0 : index
    %c0_1 = arith.constant 0 : index
    %0 = vector.load %arg1[%c0, %c0_0, %c0_1] : memref<2x64x128xf32, #tpu.memory_space<vmem>>, vector<2x64x128xf32>
    %c0_2 = arith.constant 0 : index
    %c0_3 = arith.constant 0 : index
    %1 = vector.load %arg2[%c0_2, %c0_3] : memref<1x128xf32, #tpu.memory_space<vmem>>, vector<1x128xf32>
    %2 = vector.shape_cast %1 : vector<1x128xf32> to vector<1x1x128xf32>
    %3 = vector.broadcast %2 : vector<1x1x128xf32> to vector<2x64x128xf32>
    %4 = arith.mulf %0, %3 : vector<2x64x128xf32>
    %c0_4 = arith.constant 0 : index
    %c0_5 = arith.constant 0 : index
    %5 = vector.load %arg3[%c0_4, %c0_5] : memref<1x128xf32, #tpu.memory_space<vmem>>, vector<1x128xf32>
    %6 = vector.shape_cast %5 : vector<1x128xf32> to vector<1x1x128xf32>
    %7 = vector.broadcast %6 : vector<1x1x128xf32> to vector<2x64x128xf32>
    %8 = arith.addf %4, %7 : vector<2x64x128xf32>
    %cst = arith.constant 0.000000e+00 : f32
    %9 = vector.broadcast %cst : f32 to vector<2x64x128xf32>
    %10 = arith.maximumf %8, %9 : vector<2x64x128xf32>
    %c0_i32 = arith.constant 0 : i32
    %11 = arith.cmpi eq, %arg0, %c0_i32 : i32
    %12 = arith.extui %11 : i1 to i32
    %c0_i32_6 = arith.constant 0 : i32
    %13 = arith.cmpi ne, %12, %c0_i32_6 : i32
    scf.if %13 {
      %cst_75 = arith.constant 0.000000e+00 : f32
      %73 = vector.broadcast %cst_75 : f32 to vector<2x1x10x128xf32>
      %c0_76 = arith.constant 0 : index
      %c0_77 = arith.constant 0 : index
      %c0_78 = arith.constant 0 : index
      %c0_79 = arith.constant 0 : index
      %74 = vector.load %arg7[%c0_76, %c0_77, %c0_78, %c0_79] : memref<2x10x10x128xf32, #tpu.memory_space<vmem>>, vector<2x1x10x128xf32>
      tpu.vector_store %arg7[%c0_76, %c0_77, %c0_78, %c0_79], %73 {strides = array<i32>} : memref<2x10x10x128xf32, #tpu.memory_space<vmem>>, vector<2x1x10x128xf32>,
      %cst_80 = arith.constant 0.000000e+00 : f32
      %75 = vector.broadcast %cst_80 : f32 to vector<2x1x10x128xf32>
      %c0_81 = arith.constant 0 : index
      %c9 = arith.constant 9 : index
      %c0_82 = arith.constant 0 : index
      %c0_83 = arith.constant 0 : index
      %76 = vector.load %arg7[%c0_81, %c9, %c0_82, %c0_83] : memref<2x10x10x128xf32, #tpu.memory_space<vmem>>, vector<2x1x10x128xf32>
      tpu.vector_store %arg7[%c0_81, %c9, %c0_82, %c0_83], %75 {strides = array<i32>} : memref<2x10x10x128xf32, #tpu.memory_space<vmem>>, vector<2x1x10x128xf32>,
      %cst_84 = arith.constant 0.000000e+00 : f32
      %77 = vector.broadcast %cst_84 : f32 to vector<2x10x1x128xf32>
      %c0_85 = arith.constant 0 : index
      %c0_86 = arith.constant 0 : index
      %c0_87 = arith.constant 0 : index
      %c0_88 = arith.constant 0 : index
      %78 = vector.load %arg7[%c0_85, %c0_86, %c0_87, %c0_88] : memref<2x10x10x128xf32, #tpu.memory_space<vmem>>, vector<2x10x1x128xf32>
      tpu.vector_store %arg7[%c0_85, %c0_86, %c0_87, %c0_88], %77 {strides = array<i32>} : memref<2x10x10x128xf32, #tpu.memory_space<vmem>>, vector<2x10x1x128xf32>,
      %cst_89 = arith.constant 0.000000e+00 : f32
      %79 = vector.broadcast %cst_89 : f32 to vector<2x10x1x128xf32>
      %c0_90 = arith.constant 0 : index
      %c0_91 = arith.constant 0 : index
      %c9_92 = arith.constant 9 : index
      %c0_93 = arith.constant 0 : index
      %80 = vector.load %arg7[%c0_90, %c0_91, %c9_92, %c0_93] : memref<2x10x10x128xf32, #tpu.memory_space<vmem>>, vector<2x10x1x128xf32>
      tpu.vector_store %arg7[%c0_90, %c0_91, %c9_92, %c0_93], %79 {strides = array<i32>} : memref<2x10x10x128xf32, #tpu.memory_space<vmem>>, vector<2x10x1x128xf32>,
    } else {
    }
    %14 = vector.shape_cast %10 : vector<2x64x128xf32> to vector<2x8x8x128xf32>
    %c0_7 = arith.constant 0 : index
    %c1 = arith.constant 1 : index
    %c1_8 = arith.constant 1 : index
    %c0_9 = arith.constant 0 : index
    %15 = vector.load %arg7[%c0_7, %c1, %c1_8, %c0_9] : memref<2x10x10x128xf32, #tpu.memory_space<vmem>>, vector<2x8x8x128xf32>
    tpu.vector_store %arg7[%c0_7, %c1, %c1_8, %c0_9], %14 {strides = array<i32>} : memref<2x10x10x128xf32, #tpu.memory_space<vmem>>, vector<2x8x8x128xf32>,
    %c0_10 = arith.constant 0 : index
    %c0_11 = arith.constant 0 : index
    %c0_12 = arith.constant 0 : index
    %c0_13 = arith.constant 0 : index
    %16 = vector.load %arg7[%c0_10, %c0_11, %c0_12, %c0_13] : memref<2x10x10x128xf32, #tpu.memory_space<vmem>>, vector<2x8x8x128xf32>
    %17 = vector.shape_cast %16 : vector<2x8x8x128xf32> to vector<128x128xf32>
    %c0_14 = arith.constant 0 : index
    %c0_15 = arith.constant 0 : index
    %18 = vector.load %arg4[%c0_14, %c0_15] : memref<1152x128xf32, #tpu.memory_space<vmem>>, vector<128x128xf32>
    %cst_16 = arith.constant dense<0.000000e+00> : vector<128x128xf32>
    %19 = tpu.matmul %17, %18, %cst_16 {dimension_numbers = #tpu.dot_dimension_numbers<[1], [0], [0], [1], [0, 0, 1, 1], [], []>} : vector<128x128xf32>, vector<128x128xf32>, vector<128x128xf32> -> vector<128x128xf32>
    %c0_17 = arith.constant 0 : index
    %c0_18 = arith.constant 0 : index
    %c1_19 = arith.constant 1 : index
    %c0_20 = arith.constant 0 : index
    %20 = vector.load %arg7[%c0_17, %c0_18, %c1_19, %c0_20] : memref<2x10x10x128xf32, #tpu.memory_space<vmem>>, vector<2x8x8x128xf32>
    %21 = vector.shape_cast %20 : vector<2x8x8x128xf32> to vector<128x128xf32>
    %c128 = arith.constant 128 : index
    %c0_21 = arith.constant 0 : index
    %22 = vector.load %arg4[%c128, %c0_21] : memref<1152x128xf32, #tpu.memory_space<vmem>>, vector<128x128xf32>
    %cst_22 = arith.constant dense<0.000000e+00> : vector<128x128xf32>
    %23 = tpu.matmul %21, %22, %cst_22 {dimension_numbers = #tpu.dot_dimension_numbers<[1], [0], [0], [1], [0, 0, 1, 1], [], []>} : vector<128x128xf32>, vector<128x128xf32>, vector<128x128xf32> -> vector<128x128xf32>
    %24 = arith.addf %19, %23 : vector<128x128xf32>
    %c0_23 = arith.constant 0 : index
    %c0_24 = arith.constant 0 : index
    %c2 = arith.constant 2 : index
    %c0_25 = arith.constant 0 : index
    %25 = vector.load %arg7[%c0_23, %c0_24, %c2, %c0_25] : memref<2x10x10x128xf32, #tpu.memory_space<vmem>>, vector<2x8x8x128xf32>
    %26 = vector.shape_cast %25 : vector<2x8x8x128xf32> to vector<128x128xf32>
    %c256 = arith.constant 256 : index
    %c0_26 = arith.constant 0 : index
    %27 = vector.load %arg4[%c256, %c0_26] : memref<1152x128xf32, #tpu.memory_space<vmem>>, vector<128x128xf32>
    %cst_27 = arith.constant dense<0.000000e+00> : vector<128x128xf32>
    %28 = tpu.matmul %26, %27, %cst_27 {dimension_numbers = #tpu.dot_dimension_numbers<[1], [0], [0], [1], [0, 0, 1, 1], [], []>} : vector<128x128xf32>, vector<128x128xf32>, vector<128x128xf32> -> vector<128x128xf32>
    %29 = arith.addf %24, %28 : vector<128x128xf32>
    %c0_28 = arith.constant 0 : index
    %c1_29 = arith.constant 1 : index
    %c0_30 = arith.constant 0 : index
    %c0_31 = arith.constant 0 : index
    %30 = vector.load %arg7[%c0_28, %c1_29, %c0_30, %c0_31] : memref<2x10x10x128xf32, #tpu.memory_space<vmem>>, vector<2x8x8x128xf32>
    %31 = vector.shape_cast %30 : vector<2x8x8x128xf32> to vector<128x128xf32>
    %c384 = arith.constant 384 : index
    %c0_32 = arith.constant 0 : index
    %32 = vector.load %arg4[%c384, %c0_32] : memref<1152x128xf32, #tpu.memory_space<vmem>>, vector<128x128xf32>
    %cst_33 = arith.constant dense<0.000000e+00> : vector<128x128xf32>
    %33 = tpu.matmul %31, %32, %cst_33 {dimension_numbers = #tpu.dot_dimension_numbers<[1], [0], [0], [1], [0, 0, 1, 1], [], []>} : vector<128x128xf32>, vector<128x128xf32>, vector<128x128xf32> -> vector<128x128xf32>
    %34 = arith.addf %29, %33 : vector<128x128xf32>
    %c0_34 = arith.constant 0 : index
    %c1_35 = arith.constant 1 : index
    %c1_36 = arith.constant 1 : index
    %c0_37 = arith.constant 0 : index
    %35 = vector.load %arg7[%c0_34, %c1_35, %c1_36, %c0_37] : memref<2x10x10x128xf32, #tpu.memory_space<vmem>>, vector<2x8x8x128xf32>
    %36 = vector.shape_cast %35 : vector<2x8x8x128xf32> to vector<128x128xf32>
    %c512 = arith.constant 512 : index
    %c0_38 = arith.constant 0 : index
    %37 = vector.load %arg4[%c512, %c0_38] : memref<1152x128xf32, #tpu.memory_space<vmem>>, vector<128x128xf32>
    %cst_39 = arith.constant dense<0.000000e+00> : vector<128x128xf32>
    %38 = tpu.matmul %36, %37, %cst_39 {dimension_numbers = #tpu.dot_dimension_numbers<[1], [0], [0], [1], [0, 0, 1, 1], [], []>} : vector<128x128xf32>, vector<128x128xf32>, vector<128x128xf32> -> vector<128x128xf32>
    %39 = arith.addf %34, %38 : vector<128x128xf32>
    %c0_40 = arith.constant 0 : index
    %c1_41 = arith.constant 1 : index
    %c2_42 = arith.constant 2 : index
    %c0_43 = arith.constant 0 : index
    %40 = vector.load %arg7[%c0_40, %c1_41, %c2_42, %c0_43] : memref<2x10x10x128xf32, #tpu.memory_space<vmem>>, vector<2x8x8x128xf32>
    %41 = vector.shape_cast %40 : vector<2x8x8x128xf32> to vector<128x128xf32>
    %c640 = arith.constant 640 : index
    %c0_44 = arith.constant 0 : index
    %42 = vector.load %arg4[%c640, %c0_44] : memref<1152x128xf32, #tpu.memory_space<vmem>>, vector<128x128xf32>
    %cst_45 = arith.constant dense<0.000000e+00> : vector<128x128xf32>
    %43 = tpu.matmul %41, %42, %cst_45 {dimension_numbers = #tpu.dot_dimension_numbers<[1], [0], [0], [1], [0, 0, 1, 1], [], []>} : vector<128x128xf32>, vector<128x128xf32>, vector<128x128xf32> -> vector<128x128xf32>
    %44 = arith.addf %39, %43 : vector<128x128xf32>
    %c0_46 = arith.constant 0 : index
    %c2_47 = arith.constant 2 : index
    %c0_48 = arith.constant 0 : index
    %c0_49 = arith.constant 0 : index
    %45 = vector.load %arg7[%c0_46, %c2_47, %c0_48, %c0_49] : memref<2x10x10x128xf32, #tpu.memory_space<vmem>>, vector<2x8x8x128xf32>
    %46 = vector.shape_cast %45 : vector<2x8x8x128xf32> to vector<128x128xf32>
    %c768 = arith.constant 768 : index
    %c0_50 = arith.constant 0 : index
    %47 = vector.load %arg4[%c768, %c0_50] : memref<1152x128xf32, #tpu.memory_space<vmem>>, vector<128x128xf32>
    %cst_51 = arith.constant dense<0.000000e+00> : vector<128x128xf32>
    %48 = tpu.matmul %46, %47, %cst_51 {dimension_numbers = #tpu.dot_dimension_numbers<[1], [0], [0], [1], [0, 0, 1, 1], [], []>} : vector<128x128xf32>, vector<128x128xf32>, vector<128x128xf32> -> vector<128x128xf32>
    %49 = arith.addf %44, %48 : vector<128x128xf32>
    %c0_52 = arith.constant 0 : index
    %c2_53 = arith.constant 2 : index
    %c1_54 = arith.constant 1 : index
    %c0_55 = arith.constant 0 : index
    %50 = vector.load %arg7[%c0_52, %c2_53, %c1_54, %c0_55] : memref<2x10x10x128xf32, #tpu.memory_space<vmem>>, vector<2x8x8x128xf32>
    %51 = vector.shape_cast %50 : vector<2x8x8x128xf32> to vector<128x128xf32>
    %c896 = arith.constant 896 : index
    %c0_56 = arith.constant 0 : index
    %52 = vector.load %arg4[%c896, %c0_56] : memref<1152x128xf32, #tpu.memory_space<vmem>>, vector<128x128xf32>
    %cst_57 = arith.constant dense<0.000000e+00> : vector<128x128xf32>
    %53 = tpu.matmul %51, %52, %cst_57 {dimension_numbers = #tpu.dot_dimension_numbers<[1], [0], [0], [1], [0, 0, 1, 1], [], []>} : vector<128x128xf32>, vector<128x128xf32>, vector<128x128xf32> -> vector<128x128xf32>
    %54 = arith.addf %49, %53 : vector<128x128xf32>
    %c0_58 = arith.constant 0 : index
    %c2_59 = arith.constant 2 : index
    %c2_60 = arith.constant 2 : index
    %c0_61 = arith.constant 0 : index
    %55 = vector.load %arg7[%c0_58, %c2_59, %c2_60, %c0_61] : memref<2x10x10x128xf32, #tpu.memory_space<vmem>>, vector<2x8x8x128xf32>
    %56 = vector.shape_cast %55 : vector<2x8x8x128xf32> to vector<128x128xf32>
    %c1024 = arith.constant 1024 : index
    %c0_62 = arith.constant 0 : index
    %57 = vector.load %arg4[%c1024, %c0_62] : memref<1152x128xf32, #tpu.memory_space<vmem>>, vector<128x128xf32>
    %cst_63 = arith.constant dense<0.000000e+00> : vector<128x128xf32>
    %58 = tpu.matmul %56, %57, %cst_63 {dimension_numbers = #tpu.dot_dimension_numbers<[1], [0], [0], [1], [0, 0, 1, 1], [], []>} : vector<128x128xf32>, vector<128x128xf32>, vector<128x128xf32> -> vector<128x128xf32>
    %59 = arith.addf %54, %58 : vector<128x128xf32>
    %60 = vector.shape_cast %59 : vector<128x128xf32> to vector<2x64x128xf32>
    %c0_64 = arith.constant 0 : index
    %c0_65 = arith.constant 0 : index
    %c0_66 = arith.constant 0 : index
    %61 = vector.load %arg5[%c0_64, %c0_65, %c0_66] : memref<2x64x128xf32, #tpu.memory_space<vmem>>, vector<2x64x128xf32>
    tpu.vector_store %arg5[%c0_64, %c0_65, %c0_66], %60 {strides = array<i32>} : memref<2x64x128xf32, #tpu.memory_space<vmem>>, vector<2x64x128xf32>,
    %cst_67 = arith.constant dense<0.000000e+00> : vector<128xf32>
    %62 = vector.multi_reduction <add>, %59, %cst_67 [0] : vector<128x128xf32> to vector<128xf32>
    %63 = vector.shape_cast %62 : vector<128xf32> to vector<1x128xf32>
    %c0_68 = arith.constant 0 : index
    %c0_69 = arith.constant 0 : index
    %c0_70 = arith.constant 0 : index
    %64 = vector.load %arg6[%c0_68, %c0_69, %c0_70] : memref<1x2x128xf32, #tpu.memory_space<vmem>>, vector<1x1x128xf32>
    %65 = vector.shape_cast %64 : vector<1x1x128xf32> to vector<1x128xf32>
    %66 = vector.shape_cast %63 : vector<1x128xf32> to vector<1x1x128xf32>
    tpu.vector_store %arg6[%c0_68, %c0_69, %c0_70], %66 {strides = array<i32>} : memref<1x2x128xf32, #tpu.memory_space<vmem>>, vector<1x1x128xf32>,
    %67 = arith.mulf %59, %59 : vector<128x128xf32>
    %cst_71 = arith.constant dense<0.000000e+00> : vector<128xf32>
    %68 = vector.multi_reduction <add>, %67, %cst_71 [0] : vector<128x128xf32> to vector<128xf32>
    %69 = vector.shape_cast %68 : vector<128xf32> to vector<1x128xf32>
    %c0_72 = arith.constant 0 : index
    %c1_73 = arith.constant 1 : index
    %c0_74 = arith.constant 0 : index
    %70 = vector.load %arg6[%c0_72, %c1_73, %c0_74] : memref<1x2x128xf32, #tpu.memory_space<vmem>>, vector<1x1x128xf32>
    %71 = vector.shape_cast %70 : vector<1x1x128xf32> to vector<1x128xf32>
    %72 = vector.shape_cast %69 : vector<1x128xf32> to vector<1x1x128xf32>
    tpu.vector_store %arg6[%c0_72, %c1_73, %c0_74], %72 {strides = array<i32>} : memref<1x2x128xf32, #tpu.memory_space<vmem>>, vector<1x1x128xf32>,
    return
  }
  func.func @transform_0(%arg0: i32) -> (i32, i32, i32) {
    %c0_i32 = arith.constant 0 : i32
    %c0_i32_0 = arith.constant 0 : i32
    %c0_i32_1 = arith.constant 0 : i32
    return %arg0, %c0_i32, %c0_i32_0 : i32, i32, i32
  }
  func.func @transform_1(%arg0: i32) -> (i32, i32) {
    %c0_i32 = arith.constant 0 : i32
    %c0_i32_0 = arith.constant 0 : i32
    %c0_i32_1 = arith.constant 0 : i32
    return %c0_i32, %c0_i32_0 : i32, i32
  }
  func.func @transform_2(%arg0: i32) -> (i32, i32) {
    %c0_i32 = arith.constant 0 : i32
    %c0_i32_0 = arith.constant 0 : i32
    %c0_i32_1 = arith.constant 0 : i32
    return %c0_i32, %c0_i32_0 : i32, i32
  }
  func.func @transform_3(%arg0: i32) -> (i32, i32) {
    %c0_i32 = arith.constant 0 : i32
    %c0_i32_0 = arith.constant 0 : i32
    %c0_i32_1 = arith.constant 0 : i32
    return %c0_i32, %c0_i32_0 : i32, i32
  }
  func.func @transform_4(%arg0: i32) -> (i32, i32, i32) {
    %c0_i32 = arith.constant 0 : i32
    %c0_i32_0 = arith.constant 0 : i32
    %c0_i32_1 = arith.constant 0 : i32
    return %arg0, %c0_i32, %c0_i32_0 : i32, i32, i32
  }
  func.func @transform_5(%arg0: i32) -> (i32, i32, i32) {
    %c0_i32 = arith.constant 0 : i32
    %c0_i32_0 = arith.constant 0 : i32
    %c0_i32_1 = arith.constant 0 : i32
    return %arg0, %c0_i32, %c0_i32_0 : i32, i32, i32
  }
}

</mosaic_0001>

<bundles_post_ra>
// kernel: resblk_forward.3
= control target key start
LH: loop header
LB: loop body
LE: loop exit
PB: predicated region body
PF: predicated region fallthrough
CT: control target
= control target key end

     0   :  { %v2792_v3 = vmov 0.0   ;;  %s3823_s3 = inlined_call_operand.vmem [shape: f32[1152,128], index: 3, kind: input, shape index: {}]   ;;  %s3824_s0 = inlined_call_operand.vmem [shape: f32[2,64,128], index: 0, kind: input, shape index: {}]   ;;  %s3825_s1 = inlined_call_operand.vmem [shape: f32[1,128], index: 1, kind: input, shape index: {}]   ;;  %s3826_s2 = inlined_call_operand.vmem [shape: f32[1,128], index: 2, kind: input, shape index: {}]   ;;  %s3827_s4 = inlined_call_operand.vmem [shape: f32[2,64,128], index: 4, kind: output, shape index: {0}]   ;;  %s3828_s5 = inlined_call_operand.vmem [shape: f32[1,2,128], index: 5, kind: output, shape index: {1}]  }
   0x1   :  { %v230_v0 = vld [vmem:[%s3823_s3 + $0xf8] sm:$0xff]  ;;  %v229_v2 = vld [vmem:[%s3823_s3 + $0xf0] sm:$0xff]  ;;  %101 = vst [vmem:[#allocation2] sm:$0xff] %v2792_v3  ;;  %102 = vst [vmem:[#allocation2 + $0x8] sm:$0x3] %v2792_v3 }
   0x2   :  { %v198_v1 = vld [vmem:[%s3823_s3 + $0x78] sm:$0xff]  ;;  %103 = vst [vmem:[#allocation2 + $0xa0] sm:$0xff] %v2792_v3  ;;  %104 = vst [vmem:[#allocation2 + $0xa8] sm:$0x3] %v2792_v3  ;;  %2247 = vmatprep.subr.mxu0 %v230_v0  ;;  %v197_v4 = vld [vmem:[%s3823_s3 + $0x70] sm:$0xff] }
   0x3   :  { %106 = vst [vmem:[#allocation2 + $0x90] sm:$0xff] %v2792_v3  ;;  %107 = vst [vmem:[#allocation2 + $0x98] sm:$0x3] %v2792_v3  ;;  %2303 = vmatprep.subr.mxu1 %v198_v1  ;;  %2248 = vmatpush3.msra.mxu0 %v230_v0  ;;  %v228_v5 = vld [vmem:[%s3823_s3 + $0xe8] sm:$0xff]  ;;  %v227_v7 = vld [vmem:[%s3823_s3 + $0xe0] sm:$0xff] }
   0x4   :  { %108 = vst [vmem:[#allocation2 + $0x130] sm:$0xff] %v2792_v3  ;;  %109 = vst [vmem:[#allocation2 + $0x138] sm:$0x3] %v2792_v3  ;;  %2304 = vmatpush3.msra.mxu1 %v198_v1  ;;  %v196_v6 = vld [vmem:[%s3823_s3 + $0x68] sm:$0xff]  ;;  %2249 = vmatprep.subr.mxu0 %v229_v2  ;;  %v195_v8 = vld [vmem:[%s3823_s3 + $0x60] sm:$0xff] }
   0x5   :  { %111 = vst [vmem:[#allocation2 + $0x10] sm:$0x1] %v2792_v3  ;;  %112 = vst [vmem:[#allocation2 + $0x20] sm:$0x1] %v2792_v3  ;;  %2305 = vmatprep.subr.mxu1 %v197_v4  ;;  %2250 = vmatpush3.msra.mxu0 %v229_v2  ;;  %v226_v9 = vld [vmem:[%s3823_s3 + $0xd8] sm:$0xff]  ;;  %v225_v11 = vld [vmem:[%s3823_s3 + $0xd0] sm:$0xff] }
   0x6   :  { %113 = vst [vmem:[#allocation2 + $0x30] sm:$0x1] %v2792_v3  ;;  %114 = vst [vmem:[#allocation2 + $0x40] sm:$0x1] %v2792_v3  ;;  %2306 = vmatpush3.msra.mxu1 %v197_v4  ;;  %2251 = vmatprep.subr.mxu0 %v228_v5  ;;  %v194_v10 = vld [vmem:[%s3823_s3 + $0x58] sm:$0xff]  ;;  %v193_v12 = vld [vmem:[%s3823_s3 + $0x50] sm:$0xff] }
   0x7   :  { %115 = vst [vmem:[#allocation2 + $0x50] sm:$0x1] %v2792_v3  ;;  %116 = vst [vmem:[#allocation2 + $0x60] sm:$0x1] %v2792_v3  ;;  %2307 = vmatprep.subr.mxu1 %v196_v6  ;;  %2252 = vmatpush3.msra.mxu0 %v228_v5  ;;  %v224_v13 = vld [vmem:[%s3823_s3 + $0xc8] sm:$0xff]  ;;  %v19_v15 = vld [vmem:[%s3824_s0] sm:$0xff] }
   0x8   :  { %117 = vst [vmem:[#allocation2 + $0x70] sm:$0x1] %v2792_v3  ;;  %118 = vst [vmem:[#allocation2 + $0x80] sm:$0x1] %v2792_v3  ;;  %2308 = vmatpush3.msra.mxu1 %v196_v6  ;;  %2253 = vmatprep.subr.mxu0 %v227_v7  ;;  %v192_v14 = vld [vmem:[%s3823_s3 + $0x48] sm:$0xff]  ;;  %v223_v17 = vld [vmem:[%s3823_s3 + $0xc0] sm:$0xff] }
   0x9   :  { %121 = vst [vmem:[#allocation2 + $0xb0] sm:$0x1] %v2792_v3  ;;  %122 = vst [vmem:[#allocation2 + $0xc0] sm:$0x1] %v2792_v3  ;;  %2309 = vmatprep.subr.mxu1 %v195_v8  ;;  %2254 = vmatpush3.msra.mxu0 %v227_v7  ;;  %v2871_v16 = vld [vmem:[%s3825_s1] ss:$0 sm:$0xff] }
   0xa   :  { %123 = vst [vmem:[#allocation2 + $0xd0] sm:$0x1] %v2792_v3  ;;  %124 = vst [vmem:[#allocation2 + $0xe0] sm:$0x1] %v2792_v3  ;;  %2310 = vmatpush3.msra.mxu1 %v195_v8  ;;  %2255 = vmatprep.subr.mxu0 %v226_v9  ;;  %v191_v18 = vld [vmem:[%s3823_s3 + $0x40] sm:$0xff]  ;;  %v42_v19 = vmul.f32 %v2871_v16, %v19_v15  ;;  %v20_v21 = vld [vmem:[%s3824_s0 + $0x8] sm:$0xff] }
   0xb   :  { %125 = vst [vmem:[#allocation2 + $0xf0] sm:$0x1] %v2792_v3  ;;  %126 = vst [vmem:[#allocation2 + $0x100] sm:$0x1] %v2792_v3  ;;  %2311 = vmatprep.subr.mxu1 %v194_v10  ;;  %2256 = vmatpush3.msra.mxu0 %v226_v9  ;;  %v2883_v20 = vld [vmem:[%s3826_s2] ss:$0 sm:$0xff]  ;;  %v43_v25 = vmul.f32 %v2871_v16, %v20_v21 }
   0xc   :  { %127 = vst [vmem:[#allocation2 + $0x110] sm:$0x1] %v2792_v3  ;;  %128 = vst [vmem:[#allocation2 + $0x120] sm:$0x1] %v2792_v3  ;;  %2312 = vmatpush3.msra.mxu1 %v194_v10  ;;  %2257 = vmatprep.subr.mxu0 %v225_v11  ;;  %v222_v22 = vld [vmem:[%s3823_s3 + $0xb8] sm:$0xff]  ;;  %v65_v24 = vadd.f32 %v2883_v20, %v42_v19  ;;  %v21_v26 = vld [vmem:[%s3824_s0 + $0x10] sm:$0xff] }
   0xd   :  { %131 = vst [vmem:[#allocation2 + $0x19] sm:$0x1] %v2792_v3  ;;  %132 = vst [vmem:[#allocation2 + $0x29] sm:$0x1] %v2792_v3  ;;  %2313 = vmatprep.subr.mxu1 %v193_v12  ;;  %2258 = vmatpush3.msra.mxu0 %v225_v11  ;;  %v190_v23 = vld [vmem:[%s3823_s3 + $0x38] sm:$0xff]  ;;  %v44_v27 = vmul.f32 %v2871_v16, %v21_v26  ;;  %v221_v29 = vld [vmem:[%s3823_s3 + $0xb0] sm:$0xff]  ;;  %v66_v32 = vadd.f32 %v2883_v20, %v43_v25 }
   0xe   :  { %133 = vst [vmem:[#allocation2 + $0x39] sm:$0x1] %v2792_v3  ;;  %134 = vst [vmem:[#allocation2 + $0x49] sm:$0x1] %v2792_v3  ;;  %2314 = vmatpush3.msra.mxu1 %v193_v12  ;;  %2259 = vmatprep.subr.mxu0 %v224_v13  ;;  %v22_v28 = vld [vmem:[%s3824_s0 + $0x18] sm:$0xff]  ;;  %v189_v30 = vld [vmem:[%s3823_s3 + $0x30] sm:$0xff] }
   0xf   :  { %135 = vst [vmem:[#allocation2 + $0x59] sm:$0x1] %v2792_v3  ;;  %136 = vst [vmem:[#allocation2 + $0x69] sm:$0x1] %v2792_v3  ;;  %2315 = vmatprep.subr.mxu1 %v192_v14  ;;  %2260 = vmatpush3.msra.mxu0 %v224_v13  ;;  %v2909_v31 = vmax.f32 %v65_v24, 0.0  ;;  %v45_v33 = vmul.f32 %v2871_v16, %v22_v28  ;;  %v23_v34 = vld [vmem:[%s3824_s0 + $0x20] sm:$0xff]  ;;  %v67_v35 = vadd.f32 %v2883_v20, %v44_v27 }
  0x10   :  { %137 = vst [vmem:[#allocation2 + $0x79] sm:$0x1] %v2792_v3  ;;  %138 = vst [vmem:[#allocation2 + $0x89] sm:$0x1] %v2792_v3  ;;  %2316 = vmatpush3.msra.mxu1 %v192_v14  ;;  %2261 = vmatprep.subr.mxu0 %v223_v17  ;;  %v46_v36 = vmul.f32 %v2871_v16, %v23_v34  ;;  %v24_v37 = vld [vmem:[%s3824_s0 + $0x28] sm:$0xff]  ;;  %v2928_v40 = vmax.f32 %v66_v32, 0.0 }
  0x11   :  { %141 = vst [vmem:[#allocation2 + $0xb9] sm:$0x1] %v2792_v3  ;;  %142 = vst [vmem:[#allocation2 + $0xc9] sm:$0x1] %v2792_v3  ;;  %2317 = vmatprep.subr.mxu1 %v191_v18  ;;  %2262 = vmatpush3.msra.mxu0 %v223_v17  ;;  %v220_v38 = vld [vmem:[%s3823_s3 + $0xa8] sm:$0xff]  ;;  %v68_v41 = vadd.f32 %v2883_v20, %v45_v33  ;;  %v47_v42 = vmul.f32 %v2871_v16, %v24_v37  ;;  %v25_v43 = vld [vmem:[%s3824_s0 + $0x30] sm:$0xff] }
  0x12   :  { %143 = vst [vmem:[#allocation2 + $0xd9] sm:$0x1] %v2792_v3  ;;  %144 = vst [vmem:[#allocation2 + $0xe9] sm:$0x1] %v2792_v3  ;;  %2318 = vmatpush3.msra.mxu1 %v191_v18  ;;  %2263 = vmatprep.subr.mxu0 %v222_v22  ;;  %v188_v39 = vld [vmem:[%s3823_s3 + $0x28] sm:$0xff]  ;;  %v2935_v44 = vmax.f32 %v67_v35, 0.0  ;;  %v69_v45 = vadd.f32 %v2883_v20, %v46_v36  ;;  %v48_v46 = vmul.f32 %v2871_v16, %v25_v43 }
  0x13   :  { %145 = vst [vmem:[#allocation2 + $0xf9] sm:$0x1] %v2792_v3  ;;  %146 = vst [vmem:[#allocation2 + $0x109] sm:$0x1] %v2792_v3  ;;  %2319 = vmatprep.subr.mxu1 %v190_v23  ;;  %2264 = vmatpush3.msra.mxu0 %v222_v22  ;;  %v219_v47 = vld [vmem:[%s3823_s3 + $0xa0] sm:$0xff]  ;;  %v2946_v49 = vmax.f32 %v68_v41, 0.0  ;;  %v70_v50 = vadd.f32 %v2883_v20, %v47_v42 }
  0x14   :  { %147 = vst [vmem:[#allocation2 + $0x119] sm:$0x1] %v2792_v3  ;;  %148 = vst [vmem:[#allocation2 + $0x129] sm:$0x1] %v2792_v3  ;;  %2320 = vmatpush3.msra.mxu1 %v190_v23  ;;  %2265 = vmatprep.subr.mxu0 %v221_v29  ;;  %v187_v48 = vld [vmem:[%s3823_s3 + $0x20] sm:$0xff]  ;;  %v218_v52 = vld [vmem:[%s3823_s3 + $0x98] sm:$0xff]  ;;  %v71_v54 = vadd.f32 %v2883_v20, %v48_v46 }
  0x15   :  { %110 = vst [vmem:[#allocation2] sm:$0x1] %v2792_v3  ;;  %130 = vst [vmem:[#allocation2 + $0x9] sm:$0x1] %v2792_v3  ;;  %2321 = vmatprep.subr.mxu1 %v189_v30  ;;  %2266 = vmatpush3.msra.mxu0 %v221_v29  ;;  %v27_v51 = vld [vmem:[%s3824_s0 + $0x40] sm:$0xff]  ;;  %v2956_v53 = vmax.f32 %v69_v45, 0.0 }
  0x16   :  { %119 = vst [vmem:[#allocation2 + $0x90] sm:$0x1] %v2792_v3  ;;  %120 = vst [vmem:[#allocation2 + $0xa0] sm:$0x1] %v2792_v3  ;;  %2322 = vmatpush3.msra.mxu1 %v189_v30  ;;  %2267 = vmatprep.subr.mxu0 %v220_v38  ;;  %v50_v55 = vmul.f32 %v2871_v16, %v27_v51  ;;  %v186_v56 = vld [vmem:[%s3823_s3 + $0x18] sm:$0xff]  ;;  %v2964_v57 = vmax.f32 %v70_v50, 0.0 }
  0x17   :  { %129 = vst [vmem:[#allocation2 + $0x130] sm:$0x1] %v2792_v3  ;;  %139 = vst [vmem:[#allocation2 + $0x99] sm:$0x1] %v2792_v3  ;;  %2323 = vmatprep.subr.mxu1 %v188_v39  ;;  %2268 = vmatpush3.msra.mxu0 %v220_v38  ;;  %v28_v58 = vld [vmem:[%s3824_s0 + $0x48] sm:$0xff]  ;;  %v29_v59 = vld [vmem:[%s3824_s0 + $0x50] sm:$0xff] }
  0x18   :  { %140 = vst [vmem:[#allocation2 + $0xa9] sm:$0x1] %v2792_v3  ;;  %149 = vst [vmem:[#allocation2 + $0x139] sm:$0x1] %v2792_v3  ;;  %2324 = vmatpush3.msra.mxu1 %v188_v39  ;;  %2269 = vmatprep.subr.mxu0 %v219_v47  ;;  %v217_v60 = vld [vmem:[%s3823_s3 + $0x90] sm:$0xff]  ;;  %v2976_v61 = vmax.f32 %v71_v54, 0.0  ;;  %v73_v62 = vadd.f32 %v2883_v20, %v50_v55  ;;  %v51_v63 = vmul.f32 %v2871_v16, %v28_v58 }
  0x19   :  { %151 = vst [vmem:[#allocation2 + $0x11] sm:$0xff] %v2909_v31  ;;  %152 = vst [vmem:[#allocation2 + $0x21] sm:$0xff] %v2928_v40  ;;  %2325 = vmatprep.subr.mxu1 %v187_v48  ;;  %v52_v0 = vmul.f32 %v2871_v16, %v29_v59  ;;  %2270 = vmatpush3.msra.mxu0 %v219_v47  ;;  %v185_v1 = vld [vmem:[%s3823_s3 + $0x10] sm:$0xff]  ;;  %v30_v2 = vld [vmem:[%s3824_s0 + $0x58] sm:$0xff] }
  0x1a   :  { %153 = vst [vmem:[#allocation2 + $0x31] sm:$0xff] %v2935_v44  ;;  %154 = vst [vmem:[#allocation2 + $0x41] sm:$0xff] %v2946_v49  ;;  %2326 = vmatpush3.msra.mxu1 %v187_v48  ;;  %v31_v3 = vld [vmem:[%s3824_s0 + $0x60] sm:$0xff]  ;;  %2271 = vmatprep.subr.mxu0 %v218_v52  ;;  %v216_v4 = vld [vmem:[%s3823_s3 + $0x88] sm:$0xff]  ;;  %v2995_v5 = vmax.f32 %v73_v62, 0.0  ;;  %v74_v6 = vadd.f32 %v2883_v20, %v51_v63  ;;  %v53_v8 = vmul.f32 %v2871_v16, %v30_v2 }
  0x1b   :  { %155 = vst [vmem:[#allocation2 + $0x51] sm:$0xff] %v2956_v53  ;;  %156 = vst [vmem:[#allocation2 + $0x61] sm:$0xff] %v2964_v57  ;;  %2327 = vmatprep.subr.mxu1 %v186_v56  ;;  %v75_v7 = vadd.f32 %v2883_v20, %v52_v0  ;;  %2272 = vmatpush3.msra.mxu0 %v218_v52  ;;  %v184_v9 = vld [vmem:[%s3823_s3 + $0x8] sm:$0xff]  ;;  %v54_v10 = vmul.f32 %v2871_v16, %v31_v3  ;;  %v33_v12 = vld [vmem:[%s3824_s0 + $0x70] sm:$0xff] }
  0x1c   :  { %157 = vst [vmem:[#allocation2 + $0x71] sm:$0xff] %v2976_v61  ;;  %2328 = vmatpush3.msra.mxu1 %v186_v56  ;;  %v32_v11 = vld [vmem:[%s3824_s0 + $0x68] sm:$0xff]  ;;  %2273 = vmatprep.subr.mxu0 %v217_v60  ;;  %159 = vst [vmem:[#allocation2 + $0xb1] sm:$0xff] %v2995_v5  ;;  %v3011_v13 = vmax.f32 %v74_v6, 0.0  ;;  %v76_v15 = vadd.f32 %v2883_v20, %v53_v8  ;;  %v215_v18 = vld [vmem:[%s3823_s3 + $0x80] sm:$0xff]  ;;  %v56_v22 = vmul.f32 %v2871_v16, %v33_v12 }
  0x1d   :  { %2329 = vmatprep.subr.mxu1 %v185_v1  ;;  %v3013_v14 = vmax.f32 %v75_v7, 0.0  ;;  %v55_v17 = vmul.f32 %v2871_v16, %v32_v11  ;;  %2274 = vmatpush3.msra.mxu0 %v217_v60  ;;  %v183_v19 = vld [vmem:[%s3823_s3] sm:$0xff]  ;;  %v77_v21 = vadd.f32 %v2883_v20, %v54_v10  ;;  %v552_v32 = vld [vmem:[%s3823_s3 + $0x178] sm:$0xff]  ;;  %v551_v35 = vld [vmem:[%s3823_s3 + $0x170] sm:$0xff] }
  0x1e   :  { %2330 = vmatpush3.msra.mxu1 %v185_v1  ;;  %2275 = vmatprep.subr.mxu0 %v216_v4  ;;  %v199_v23 = vld [vmem:[#allocation2 + $0x1] sm:$0xff]  ;;  %160 = vst [vmem:[#allocation2 + $0xc1] sm:$0xff] %v3011_v13  ;;  %v3027_v24 = vmax.f32 %v76_v15, 0.0  ;;  %v79_v28 = vadd.f32 %v2883_v20, %v56_v22  ;;  %v745_v33 = vld [vmem:[%s3823_s3 + $0x1f8] sm:$0xff]  ;;  %v744_v36 = vld [vmem:[%s3823_s3 + $0x1f0] sm:$0xff] }
  0x1f   :  { %2331 = vmatprep.subr.mxu1 %v184_v9  ;;  %161 = vst [vmem:[#allocation2 + $0xd1] sm:$0xff] %v3013_v14  ;;  %v78_v25 = vadd.f32 %v2883_v20, %v55_v17  ;;  %2276 = vmatpush3.msra.mxu0 %v216_v4  ;;  %v167_v26 = vld [vmem:[#allocation2] sm:$0xff]  ;;  %v3030_v27 = vmax.f32 %v77_v21, 0.0  ;;  %v550_v39 = vld [vmem:[%s3823_s3 + $0x168] sm:$0xff]  ;;  %v26_v42 = vld [vmem:[%s3824_s0 + $0x38] sm:$0xff] }
  0x20   :  { %2332 = vmatpush3.msra.mxu1 %v184_v9  ;;  %2277 = vmatprep.subr.mxu0 %v215_v18  ;;  %v3033_v29 = vld [vmem:[#allocation2 + $0x10] sm:$0xff]  ;;  %162 = vst [vmem:[#allocation2 + $0xe1] sm:$0xff] %v3027_v24  ;;  %v3045_v34 = vmax.f32 %v79_v28, 0.0  ;;  %v3057_v37 = vld [vmem:[#allocation2 + $0x20] sm:$0xff]  ;;  %v743_v41 = vld [vmem:[%s3823_s3 + $0x1e8] sm:$0xff]  ;;  %v49_v43 = vmul.f32 %v2871_v16, %v26_v42 }
  0x21   :  { %2333 = vmatprep.subr.mxu1 %v183_v19  ;;  %v3036_v30 = vmax.f32 %v78_v25, 0.0  ;;  %2278 = vmatpush3.msra.mxu0 %v215_v18  ;;  %163 = vst [vmem:[#allocation2 + $0xf1] sm:$0xff] %v3030_v27  ;;  %v3059_v38 = vld [vmem:[#allocation2 + $0x30] sm:$0xff]  ;;  %v549_v45 = vld [vmem:[%s3823_s3 + $0x160] sm:$0xff]  ;;  %v548_v52 = vld [vmem:[%s3823_s3 + $0x158] sm:$0xff] }
  0x22   :  { %2279 = vmatprep.mubr.f32.mxu0 %v199_v23  ;;  %2334 = vmatpush3.msra.mxu1 %v183_v19  ;;  %165 = vst [vmem:[#allocation2 + $0x111] sm:$0xff] %v3045_v34  ;;  %v742_v46 = vld [vmem:[%s3823_s3 + $0x1e0] sm:$0xff]  ;;  %v72_v48 = vadd.f32 %v2883_v20, %v49_v43  ;;  %v3084_v50 = vld [vmem:[#allocation2 + $0x50] sm:$0xff]  ;;  %v741_v54 = vld [vmem:[%s3823_s3 + $0x1d8] sm:$0xff] }
  0x23   :  { %2335 = vmatprep.mubr.f32.mxu1 %v167_v26  ;;  %164 = vst [vmem:[#allocation2 + $0x101] sm:$0xff] %v3036_v30  ;;  %2280 = vmatmul.mubr.f32.vlgmr.msra.gmra.mxu0 %v2909_v31  ;;  %v3081_v47 = vld [vmem:[#allocation2 + $0x40] sm:$0xff]  ;;  %v547_v55 = vld [vmem:[%s3823_s3 + $0x150] sm:$0xff]  ;;  %v34_v59 = vld [vmem:[%s3824_s0 + $0x78] sm:$0xff] }
  0x24   :  { %2336 = vmatmul.mubr.f32.vlgmr.msra.gmra.mxu1 %v3033_v29  ;;  %2359 = vmatprep.subr.mxu0 %v552_v32  ;;  %v3086_v51 = vmax.f32 %v72_v48, 0.0  ;;  %v740_v56 = vld [vmem:[%s3823_s3 + $0x1d0] sm:$0xff]  ;;  %v3105_v58 = vld [vmem:[#allocation2 + $0x60] sm:$0xff]  ;;  %v57_v60 = vmul.f32 %v2871_v16, %v34_v59  ;;  %v546_v63 = vld [vmem:[%s3823_s3 + $0x148] sm:$0xff] }
  0x25   :  { %2415 = vmatprep.subr.mxu1 %v745_v33  ;;  %2360 = vmatpush3.msra.mxu0 %v552_v32  ;;  %v3111_v62 = vld [vmem:[#allocation2 + $0x70] sm:$0xff]  ;;  %v739_v0 = vld [vmem:[%s3823_s3 + $0x1c8] sm:$0xff]  ;;  %v545_v16 = vld [vmem:[%s3823_s3 + $0x140] sm:$0xff] }
  0x26   :  { %2416 = vmatpush3.msra.mxu1 %v745_v33  ;;  %2361 = vmatprep.subr.mxu0 %v551_v35  ;;  %158 = vst [vmem:[#allocation2 + $0x81] sm:$0xff] %v3086_v51  ;;  %v80_v1 = vadd.f32 %v2883_v20, %v57_v60  ;;  %v738_v2 = vld [vmem:[%s3823_s3 + $0x1c0] sm:$0xff]  ;;  %v3133_v6 = vld [vmem:[#allocation2 + $0xb0] sm:$0xff]  ;;  %v544_v7 = vld [vmem:[%s3823_s3 + $0x138] sm:$0xff] }
  0x27   :  { %2417 = vmatprep.subr.mxu1 %v744_v36  ;;  %2282 = vmatprep.mubr.f32.mxu0 %v2928_v40  ;;  %v207_v4 = vld [vmem:[#allocation2 + $0xa1] sm:$0xff]  ;;  %v737_v8 = vld [vmem:[%s3823_s3 + $0x1b8] sm:$0xff]  ;;  %v543_v9 = vld [vmem:[%s3823_s3 + $0x130] sm:$0xff] }
  0x28   :  { %2338 = vmatprep.mubr.f32.mxu1 %v3057_v37  ;;  %2362 = vmatpush3.msra.mxu0 %v551_v35  ;;  %v3130_v3 = vmax.f32 %v80_v1, 0.0  ;;  %v175_v20 = vld [vmem:[#allocation2 + $0xa0] sm:$0xff]  ;;  %v736_v10 = vld [vmem:[%s3823_s3 + $0x1b0] sm:$0xff]  ;;  %v542_v15 = vld [vmem:[%s3823_s3 + $0x128] sm:$0xff] }
  0x29   :  { %2418 = vmatpush3.msra.mxu1 %v744_v36  ;;  %2283 = vmatmul.mubr.f32.gmra.mxu0 %v2935_v44  ;;  %v3149_v11 = vld [vmem:[#allocation2 + $0xc0] sm:$0xff]  ;;  %v3151_v12 = vld [vmem:[#allocation2 + $0xd0] sm:$0xff]  ;;  %v735_v17 = vld [vmem:[%s3823_s3 + $0x1a8] sm:$0xff] }
  0x2a   :  { %2339 = vmatmul.mubr.f32.gmra.mxu1 %v3059_v38  ;;  %2363 = vmatprep.subr.mxu0 %v550_v39  ;;  %166 = vst [vmem:[#allocation2 + $0x121] sm:$0xff] %v3130_v3  ;;  %v541_v18 = vld [vmem:[%s3823_s3 + $0x120] sm:$0xff]  ;;  %v3171_v22 = vld [vmem:[#allocation2 + $0xf0] sm:$0xff]  ;;  %v540_v23 = vld [vmem:[%s3823_s3 + $0x118] sm:$0xff] }
  0x2b   :  { %2419 = vmatprep.subr.mxu1 %v743_v41  ;;  %2364 = vmatpush3.msra.mxu0 %v550_v39  ;;  %v734_v19 = vld [vmem:[%s3823_s3 + $0x1a0] sm:$0xff]  ;;  %v733_v25 = vld [vmem:[%s3823_s3 + $0x198] sm:$0xff]  ;;  %v539_v26 = vld [vmem:[%s3823_s3 + $0x110] sm:$0xff] }
  0x2c   :  { %2420 = vmatpush3.msra.mxu1 %v743_v41  ;;  %2365 = vmatprep.subr.mxu0 %v549_v45  ;;  %v3169_v21 = vld [vmem:[#allocation2 + $0xe0] sm:$0xff]  ;;  %v732_v28 = vld [vmem:[%s3823_s3 + $0x190] sm:$0xff]  ;;  %v538_v35 = vld [vmem:[%s3823_s3 + $0x108] sm:$0xff] }
  0x2d   :  { %2421 = vmatprep.subr.mxu1 %v742_v46  ;;  %2285 = vmatprep.mubr.f32.mxu0 %v2946_v49  ;;  %v3189_v32 = vld [vmem:[#allocation2 + $0x100] sm:$0xff]  ;;  %v3191_v33 = vld [vmem:[#allocation2 + $0x110] sm:$0xff]  ;;  %v731_v36 = vld [vmem:[%s3823_s3 + $0x188] sm:$0xff] }
  0x2e   :  { %2341 = vmatprep.mubr.f32.mxu1 %v3081_v47  ;;  %2366 = vmatpush3.msra.mxu0 %v549_v45  ;;  %v537_v39 = vld [vmem:[%s3823_s3 + $0x100] sm:$0xff]  ;;  %v3209_v43 = vld [vmem:[#allocation2 + $0x12] sm:$0xff] }
  0x2f   :  { %2422 = vmatpush3.msra.mxu1 %v742_v46  ;;  %2286 = vmatmul.mubr.f32.gmra.mxu0 %v2956_v53  ;;  %v730_v41 = vld [vmem:[%s3823_s3 + $0x180] sm:$0xff]  ;;  %v938_v45 = vld [vmem:[%s3823_s3 + $0x278] sm:$0xff]  ;;  %v937_v48 = vld [vmem:[%s3823_s3 + $0x270] sm:$0xff] }
  0x30   :  { %2342 = vmatmul.mubr.f32.gmra.mxu1 %v3084_v50  ;;  %2367 = vmatprep.subr.mxu0 %v548_v52  ;;  %v521_v42 = vld [vmem:[#allocation2 + $0x2] sm:$0xff]  ;;  %v1131_v46 = vld [vmem:[%s3823_s3 + $0x2f8] sm:$0xff]  ;;  %v1126_v1 = vld [vmem:[%s3823_s3 + $0x2d0] sm:$0xff] }
  0x31   :  { %2423 = vmatprep.subr.mxu1 %v741_v54  ;;  %2368 = vmatpush3.msra.mxu0 %v548_v52  ;;  %v1130_v52 = vld [vmem:[%s3823_s3 + $0x2f0] sm:$0xff]  ;;  %v3246_v59 = vld [vmem:[#allocation2 + $0x42] sm:$0xff] }
  0x32   :  { %2424 = vmatpush3.msra.mxu1 %v741_v54  ;;  %2369 = vmatprep.subr.mxu0 %v547_v55  ;;  %v3226_v54 = vld [vmem:[#allocation2 + $0x22] sm:$0xff]  ;;  %v3248_v60 = vld [vmem:[#allocation2 + $0x52] sm:$0xff] }
  0x33   :  { %2425 = vmatprep.subr.mxu1 %v740_v56  ;;  %2288 = vmatprep.mubr.f32.mxu0 %v2964_v57 }
  0x34   :  { %2344 = vmatprep.mubr.f32.mxu1 %v3105_v58  ;;  %2370 = vmatpush3.msra.mxu0 %v547_v55  ;;  %v1129_v55 = vld [vmem:[%s3823_s3 + $0x2e8] sm:$0xff] }
  0x35   :  { %2426 = vmatpush3.msra.mxu1 %v740_v56  ;;  %2289 = vmatmul.mubr.f32.gmra.mxu0 %v2976_v61  ;;  %v935_v56 = vld [vmem:[%s3823_s3 + $0x260] sm:$0xff] }
  0x36   :  { %2345 = vmatmul.mubr.f32.gmra.mxu1 %v3111_v62  ;;  %2371 = vmatprep.subr.mxu0 %v546_v63 }
  0x37   :  { %2427 = vmatprep.subr.mxu1 %v739_v0  ;;  %2372 = vmatpush3.msra.mxu0 %v546_v63  ;;  %v1127_v63 = vld [vmem:[%s3823_s3 + $0x2d8] sm:$0xff] }
  0x38   :  { %2428 = vmatpush3.msra.mxu1 %v739_v0  ;;  %2373 = vmatprep.subr.mxu0 %v545_v16  ;;  %v933_v0 = vld [vmem:[%s3823_s3 + $0x250] sm:$0xff] }
  0x39   :  { %2429 = vmatprep.subr.mxu1 %v738_v2  ;;  %2291 = vmatprep.mubr.f32.mxu0 %v207_v4  ;;  %v3270_v4 = vld [vmem:[#allocation2 + $0x80] sm:$0xff] }
  0x3a   :  { %2347 = vmatprep.mubr.f32.mxu1 %v175_v20  ;;  %2374 = vmatpush3.msra.mxu0 %v545_v16  ;;  %v3266_v16 = vld [vmem:[#allocation2 + $0x62] sm:$0xff] }
  0x3b   :  { %2430 = vmatpush3.msra.mxu1 %v738_v2  ;;  %2292 = vmatmul.mubr.f32.gmra.mxu0 %v2995_v5  ;;  %v3268_v2 = vld [vmem:[#allocation2 + $0x72] sm:$0xff]  ;;  %v932_v20 = vld [vmem:[%s3823_s3 + $0x248] sm:$0xff] }
  0x3c   :  { %2348 = vmatmul.mubr.f32.gmra.mxu1 %v3133_v6  ;;  %2375 = vmatprep.subr.mxu0 %v544_v7 }
  0x3d   :  { %2431 = vmatprep.subr.mxu1 %v737_v8  ;;  %2376 = vmatpush3.msra.mxu0 %v544_v7  ;;  %v1125_v7 = vld [vmem:[%s3823_s3 + $0x2c8] sm:$0xff] }
  0x3e   :  { %2432 = vmatpush3.msra.mxu1 %v737_v8  ;;  %2377 = vmatprep.subr.mxu0 %v543_v9  ;;  %v931_v8 = vld [vmem:[%s3823_s3 + $0x240] sm:$0xff] }
  0x3f   :  { %2433 = vmatprep.subr.mxu1 %v736_v10  ;;  %2294 = vmatprep.mubr.f32.mxu0 %v3011_v13 }
  0x40   :  { %2350 = vmatprep.mubr.f32.mxu1 %v3149_v11  ;;  %2378 = vmatpush3.msra.mxu0 %v543_v9  ;;  %v1124_v9 = vld [vmem:[%s3823_s3 + $0x2c0] sm:$0xff] }
  0x41   :  { %2434 = vmatpush3.msra.mxu1 %v736_v10  ;;  %2295 = vmatmul.mubr.f32.gmra.mxu0 %v3013_v14  ;;  %v529_v10 = vld [vmem:[#allocation2 + $0xa2] sm:$0xff] }
  0x42   :  { %2351 = vmatmul.mubr.f32.gmra.mxu1 %v3151_v12  ;;  %2379 = vmatprep.subr.mxu0 %v542_v15 }
  0x43   :  { %2435 = vmatprep.subr.mxu1 %v735_v17  ;;  %2380 = vmatpush3.msra.mxu0 %v542_v15  ;;  %v3288_v15 = vld [vmem:[#allocation2 + $0xb2] sm:$0xff] }
  0x44   :  { %2436 = vmatpush3.msra.mxu1 %v735_v17  ;;  %2381 = vmatprep.subr.mxu0 %v541_v18  ;;  %v930_v17 = vld [vmem:[%s3823_s3 + $0x238] sm:$0xff] }
  0x45   :  { %2437 = vmatprep.subr.mxu1 %v734_v19  ;;  %2297 = vmatprep.mubr.f32.mxu0 %v3027_v24 }
  0x46   :  { %2353 = vmatprep.mubr.f32.mxu1 %v3169_v21  ;;  %2382 = vmatpush3.msra.mxu0 %v541_v18  ;;  %v1123_v18 = vld [vmem:[%s3823_s3 + $0x2b8] sm:$0xff] }
  0x47   :  { %2438 = vmatpush3.msra.mxu1 %v734_v19  ;;  %2298 = vmatmul.mubr.f32.gmra.mxu0 %v3030_v27  ;;  %v929_v19 = vld [vmem:[%s3823_s3 + $0x230] sm:$0xff] }
  0x48   :  { %2354 = vmatmul.mubr.f32.gmra.mxu1 %v3171_v22  ;;  %2383 = vmatprep.subr.mxu0 %v540_v23 }
  0x49   :  { %2439 = vmatprep.subr.mxu1 %v733_v25  ;;  %2384 = vmatpush3.msra.mxu0 %v540_v23  ;;  %v3305_v23 = vld [vmem:[#allocation2 + $0xc2] sm:$0xff] }
  0x4a   :  { %2440 = vmatpush3.msra.mxu1 %v733_v25  ;;  %2385 = vmatprep.subr.mxu0 %v539_v26  ;;  %v3307_v25 = vld [vmem:[#allocation2 + $0xd2] sm:$0xff] }
  0x4b   :  { %2441 = vmatprep.subr.mxu1 %v732_v28  ;;  %2300 = vmatprep.mubr.f32.mxu0 %v3036_v30 }
  0x4c   :  { %2356 = vmatprep.mubr.f32.mxu1 %v3189_v32  ;;  %2386 = vmatpush3.msra.mxu0 %v539_v26  ;;  %v928_v26 = vld [vmem:[%s3823_s3 + $0x228] sm:$0xff] }
  0x4d   :  { %2442 = vmatpush3.msra.mxu1 %v732_v28  ;;  %2301 = vmatmul.mubr.f32.gmra.mxu0 %v3045_v34  ;;  %v1121_v28 = vld [vmem:[%s3823_s3 + $0x2a8] sm:$0xff] }
  0x4e   :  { %2357 = vmatmul.mubr.f32.gmra.mxu1 %v3191_v33  ;;  %2387 = vmatprep.subr.mxu0 %v538_v35 }
  0x4f   :  { %2443 = vmatprep.subr.mxu1 %v731_v36  ;;  %2388 = vmatpush3.msra.mxu0 %v538_v35  ;;  %v927_v35 = vld [vmem:[%s3823_s3 + $0x220] sm:$0xff] }
  0x50   :  { %2444 = vmatpush3.msra.mxu1 %v731_v36  ;;  %2389 = vmatprep.subr.mxu0 %v537_v39  ;;  %v1120_v36 = vld [vmem:[%s3823_s3 + $0x2a0] sm:$0xff] }
  0x51   :  { %2445 = vmatprep.subr.mxu1 %v730_v41  ;;  %2390 = vmatpush3.msra.mxu0 %v537_v39  ;;  %v3325_v39 = vld [vmem:[#allocation2 + $0xe2] sm:$0xff] }
  0x52   :  { %2391 = vmatprep.mubr.f32.mxu0 %v521_v42  ;;  %2446 = vmatpush3.msra.mxu1 %v730_v41  ;;  %v3327_v41 = vld [vmem:[#allocation2 + $0xf2] sm:$0xff] }
  0x53   :  { %2447 = vmatprep.mubr.f32.mxu1 %v3033_v29  ;;  %2392 = vmatmul.mubr.f32.vlgmr.msra.gmra.mxu0 %v3209_v43  ;;  %v3228_v29 = vld [vmem:[#allocation2 + $0x32] sm:$0xff] }
  0x54   :  { %2448 = vmatmul.mubr.f32.vlgmr.msra.gmra.mxu1 %v3057_v37  ;;  %2471 = vmatprep.subr.mxu0 %v938_v45  ;;  %v936_v37 = vld [vmem:[%s3823_s3 + $0x268] sm:$0xff]  ;;  %v926_v42 = vld [vmem:[%s3823_s3 + $0x218] sm:$0xff] }
  0x55   :  { %2527 = vmatprep.subr.mxu1 %v1131_v46  ;;  %2472 = vmatpush3.msra.mxu0 %v938_v45  ;;  %v1119_v45 = vld [vmem:[%s3823_s3 + $0x298] sm:$0xff] }
  0x56   :  { %2528 = vmatpush3.msra.mxu1 %v1131_v46  ;;  %2473 = vmatprep.subr.mxu0 %v937_v48  ;;  %v925_v46 = vld [vmem:[%s3823_s3 + $0x210] sm:$0xff] }
  0x57   :  { %2529 = vmatprep.subr.mxu1 %v1130_v52  ;;  %2394 = vmatprep.mubr.f32.mxu0 %v3226_v54 }
  0x58   :  { %2450 = vmatprep.mubr.f32.mxu1 %v3059_v38  ;;  %2474 = vmatpush3.msra.mxu0 %v937_v48  ;;  %v1128_v38 = vld [vmem:[%s3823_s3 + $0x2e0] sm:$0xff]  ;;  %v1118_v48 = vld [vmem:[%s3823_s3 + $0x290] sm:$0xff] }
  0x59   :  { %2530 = vmatpush3.msra.mxu1 %v1130_v52  ;;  %2395 = vmatmul.mubr.f32.gmra.mxu0 %v3228_v29  ;;  %v3345_v52 = vld [vmem:[#allocation2 + $0x102] sm:$0xff] }
  0x5a   :  { %2451 = vmatmul.mubr.f32.gmra.mxu1 %v3081_v47  ;;  %2475 = vmatprep.subr.mxu0 %v936_v37  ;;  %v934_v47 = vld [vmem:[%s3823_s3 + $0x258] sm:$0xff] }
  0x5b   :  { %2531 = vmatprep.subr.mxu1 %v1129_v55  ;;  %2476 = vmatpush3.msra.mxu0 %v936_v37  ;;  %v3347_v37 = vld [vmem:[#allocation2 + $0x112] sm:$0xff] }
  0x5c   :  { %2532 = vmatpush3.msra.mxu1 %v1129_v55  ;;  %2477 = vmatprep.subr.mxu0 %v935_v56  ;;  %v3349_v55 = vld [vmem:[#allocation2 + $0x120] sm:$0xff] }
  0x5d   :  { %2533 = vmatprep.subr.mxu1 %v1128_v38  ;;  %2397 = vmatprep.mubr.f32.mxu0 %v3246_v59 }
  0x5e   :  { %2453 = vmatprep.mubr.f32.mxu1 %v3084_v50  ;;  %2478 = vmatpush3.msra.mxu0 %v935_v56  ;;  %v924_v56 = vld [vmem:[%s3823_s3 + $0x208] sm:$0xff] }
  0x5f   :  { %2534 = vmatpush3.msra.mxu1 %v1128_v38  ;;  %2398 = vmatmul.mubr.f32.gmra.mxu0 %v3248_v60  ;;  %v1117_v38 = vld [vmem:[%s3823_s3 + $0x288] sm:$0xff] }
  0x60   :  { %2454 = vmatmul.mubr.f32.gmra.mxu1 %v3105_v58  ;;  %2479 = vmatprep.subr.mxu0 %v934_v47 }
  0x61   :  { %2535 = vmatprep.subr.mxu1 %v1127_v63  ;;  %2480 = vmatpush3.msra.mxu0 %v934_v47  ;;  %v923_v47 = vld [vmem:[%s3823_s3 + $0x200] sm:$0xff] }
  0x62   :  { %2536 = vmatpush3.msra.mxu1 %v1127_v63  ;;  %2481 = vmatprep.subr.mxu0 %v933_v0  ;;  %v1116_v63 = vld [vmem:[%s3823_s3 + $0x280] sm:$0xff] }
  0x63   :  { %2537 = vmatprep.subr.mxu1 %v1126_v1  ;;  %2400 = vmatprep.mubr.f32.mxu0 %v3266_v16 }
  0x64   :  { %2456 = vmatprep.mubr.f32.mxu1 %v3111_v62  ;;  %2482 = vmatpush3.msra.mxu0 %v933_v0  ;;  %v1325_v0 = vld [vmem:[%s3823_s3 + $0x378] sm:$0xff] }
  0x65   :  { %2538 = vmatpush3.msra.mxu1 %v1126_v1  ;;  %2401 = vmatmul.mubr.f32.gmra.mxu0 %v3268_v2  ;;  %v1518_v1 = vld [vmem:[%s3823_s3 + $0x3f8] sm:$0xff] }
  0x66   :  { %2457 = vmatmul.mubr.f32.gmra.mxu1 %v3270_v4  ;;  %2483 = vmatprep.subr.mxu0 %v932_v20 }
  0x67   :  { %2539 = vmatprep.subr.mxu1 %v1125_v7  ;;  %2484 = vmatpush3.msra.mxu0 %v932_v20  ;;  %v1324_v20 = vld [vmem:[%s3823_s3 + $0x370] sm:$0xff] }
  0x68   :  { %2540 = vmatpush3.msra.mxu1 %v1125_v7  ;;  %2485 = vmatprep.subr.mxu0 %v931_v8  ;;  %v1515_v7 = vld [vmem:[%s3823_s3 + $0x3e0] sm:$0xff] }
  0x69   :  { %2541 = vmatprep.subr.mxu1 %v1124_v9  ;;  %2403 = vmatprep.mubr.f32.mxu0 %v529_v10  ;;  %v3415_v10 = vld [vmem:[#allocation2 + $0x82] sm:$0xff] }
  0x6a   :  { %2459 = vmatprep.mubr.f32.mxu1 %v3133_v6  ;;  %2486 = vmatpush3.msra.mxu0 %v931_v8  ;;  %v1122_v6 = vld [vmem:[%s3823_s3 + $0x2b0] sm:$0xff]  ;;  %v1514_v8 = vld [vmem:[%s3823_s3 + $0x3d8] sm:$0xff] }
  0x6b   :  { %2542 = vmatpush3.msra.mxu1 %v1124_v9  ;;  %2404 = vmatmul.mubr.f32.gmra.mxu0 %v3288_v15  ;;  %v1513_v9 = vld [vmem:[%s3823_s3 + $0x3d0] sm:$0xff] }
  0x6c   :  { %2460 = vmatmul.mubr.f32.gmra.mxu1 %v3149_v11  ;;  %2487 = vmatprep.subr.mxu0 %v930_v17 }
  0x6d   :  { %2543 = vmatprep.subr.mxu1 %v1123_v18  ;;  %2488 = vmatpush3.msra.mxu0 %v930_v17  ;;  %v1512_v17 = vld [vmem:[%s3823_s3 + $0x3c8] sm:$0xff] }
  0x6e   :  { %2544 = vmatpush3.msra.mxu1 %v1123_v18  ;;  %2489 = vmatprep.subr.mxu0 %v929_v19  ;;  %v1511_v18 = vld [vmem:[%s3823_s3 + $0x3c0] sm:$0xff] }
  0x6f   :  { %2545 = vmatprep.subr.mxu1 %v1122_v6  ;;  %2406 = vmatprep.mubr.f32.mxu0 %v3305_v23 }
  0x70   :  { %2462 = vmatprep.mubr.f32.mxu1 %v3151_v12  ;;  %2490 = vmatpush3.msra.mxu0 %v929_v19  ;;  %v1317_v19 = vld [vmem:[%s3823_s3 + $0x338] sm:$0xff] }
  0x71   :  { %2546 = vmatpush3.msra.mxu1 %v1122_v6  ;;  %2407 = vmatmul.mubr.f32.gmra.mxu0 %v3307_v25  ;;  %v1510_v6 = vld [vmem:[%s3823_s3 + $0x3b8] sm:$0xff] }
  0x72   :  { %2463 = vmatmul.mubr.f32.gmra.mxu1 %v3169_v21  ;;  %2491 = vmatprep.subr.mxu0 %v928_v26 }
  0x73   :  { %2547 = vmatprep.subr.mxu1 %v1121_v28  ;;  %2492 = vmatpush3.msra.mxu0 %v928_v26  ;;  %v1508_v26 = vld [vmem:[%s3823_s3 + $0x3a8] sm:$0xff] }
  0x74   :  { %2548 = vmatpush3.msra.mxu1 %v1121_v28  ;;  %2493 = vmatprep.subr.mxu0 %v927_v35  ;;  %v1507_v28 = vld [vmem:[%s3823_s3 + $0x3a0] sm:$0xff] }
  0x75   :  { %2549 = vmatprep.subr.mxu1 %v1120_v36  ;;  %2409 = vmatprep.mubr.f32.mxu0 %v3325_v39 }
  0x76   :  { %2465 = vmatprep.mubr.f32.mxu1 %v3171_v22  ;;  %2494 = vmatpush3.msra.mxu0 %v927_v35  ;;  %v1506_v35 = vld [vmem:[%s3823_s3 + $0x398] sm:$0xff] }
  0x77   :  { %2550 = vmatpush3.msra.mxu1 %v1120_v36  ;;  %2410 = vmatmul.mubr.f32.gmra.mxu0 %v3327_v41  ;;  %v1505_v36 = vld [vmem:[%s3823_s3 + $0x390] sm:$0xff] }
  0x78   :  { %2466 = vmatmul.mubr.f32.gmra.mxu1 %v3189_v32  ;;  %2495 = vmatprep.subr.mxu0 %v926_v42 }
  0x79   :  { %2551 = vmatprep.subr.mxu1 %v1119_v45  ;;  %2496 = vmatpush3.msra.mxu0 %v926_v42  ;;  %v3481_v42 = vld [vmem:[#allocation2 + $0x122] sm:$0xff] }
  0x7a   :  { %2552 = vmatpush3.msra.mxu1 %v1119_v45  ;;  %2497 = vmatprep.subr.mxu0 %v925_v46  ;;  %v1504_v45 = vld [vmem:[%s3823_s3 + $0x388] sm:$0xff] }
  0x7b   :  { %2553 = vmatprep.subr.mxu1 %v1118_v48  ;;  %2412 = vmatprep.mubr.f32.mxu0 %v3345_v52 }
  0x7c   :  { %2468 = vmatprep.mubr.f32.mxu1 %v3191_v33  ;;  %2498 = vmatpush3.msra.mxu0 %v925_v46  ;;  %v1503_v46 = vld [vmem:[%s3823_s3 + $0x380] sm:$0xff] }
  0x7d   :  { %2554 = vmatpush3.msra.mxu1 %v1118_v48  ;;  %2413 = vmatmul.mubr.f32.gmra.mxu0 %v3347_v37  ;;  %v1294_v48 = vld [vmem:[#allocation2 + $0x20] sm:$0xff] }
  0x7e   :  { %2469 = vmatmul.mubr.f32.gmra.mxu1 %v3349_v55  ;;  %2499 = vmatprep.subr.mxu0 %v924_v56 }
  0x7f   :  { %2555 = vmatprep.subr.mxu1 %v1117_v38  ;;  %2500 = vmatpush3.msra.mxu0 %v924_v56  ;;  %v1487_v56 = vld [vmem:[#allocation2 + $0x21] sm:$0xff] }
  0x80   :  { %2556 = vmatpush3.msra.mxu1 %v1117_v38  ;;  %2501 = vmatprep.subr.mxu0 %v923_v47  ;;  %v1295_v38 = vld [vmem:[#allocation2 + $0x30] sm:$0xff] }
  0x81   :  { %2557 = vmatprep.subr.mxu1 %v1116_v63  ;;  %2502 = vmatpush3.msra.mxu0 %v923_v47  ;;  %v1488_v47 = vld [vmem:[#allocation2 + $0x31] sm:$0xff] }
  0x82   :  { %2503 = vmatprep.mubr.f32.mxu0 %v2909_v31  ;;  %2558 = vmatpush3.msra.mxu1 %v1116_v63  ;;  %v1517_v31 = vld [vmem:[%s3823_s3 + $0x3f0] sm:$0xff]  ;;  %v1711_v63 = vld [vmem:[%s3823_s3 + $0x478] sm:$0xff] }
  0x83   :  { %2559 = vmatprep.mubr.f32.mxu1 %v3209_v43  ;;  %2504 = vmatmul.mubr.f32.vlgmr.msra.gmra.mxu0 %v2928_v40  ;;  %v1323_v40 = vld [vmem:[%s3823_s3 + $0x368] sm:$0xff] }
  0x84   :  { %2560 = vmatmul.mubr.f32.vlgmr.msra.gmra.mxu1 %v3226_v54  ;;  %2583 = vmatprep.subr.mxu0 %v1325_v0  ;;  %v1516_v43 = vld [vmem:[%s3823_s3 + $0x3e8] sm:$0xff] }
  0x85   :  { %2639 = vmatprep.subr.mxu1 %v1518_v1  ;;  %2584 = vmatpush3.msra.mxu0 %v1325_v0  ;;  %v1710_v0 = vld [vmem:[%s3823_s3 + $0x470] sm:$0xff] }
  0x86   :  { %2640 = vmatpush3.msra.mxu1 %v1518_v1  ;;  %2585 = vmatprep.subr.mxu0 %v1324_v20  ;;  %v1296_v1 = vld [vmem:[#allocation2 + $0x40] sm:$0xff] }
  0x87   :  { %2641 = vmatprep.subr.mxu1 %v1517_v31  ;;  %2506 = vmatprep.mubr.f32.mxu0 %v2935_v44  ;;  %v1322_v44 = vld [vmem:[%s3823_s3 + $0x360] sm:$0xff] }
  0x88   :  { %2562 = vmatprep.mubr.f32.mxu1 %v3228_v29  ;;  %2586 = vmatpush3.msra.mxu0 %v1324_v20  ;;  %v1489_v20 = vld [vmem:[#allocation2 + $0x41] sm:$0xff] }
  0x89   :  { %2642 = vmatpush3.msra.mxu1 %v1517_v31  ;;  %2507 = vmatmul.mubr.f32.gmra.mxu0 %v2946_v49  ;;  %v1321_v49 = vld [vmem:[%s3823_s3 + $0x358] sm:$0xff] }
  0x8a   :  { %2563 = vmatmul.mubr.f32.gmra.mxu1 %v3246_v59  ;;  %2587 = vmatprep.subr.mxu0 %v1323_v40  ;;  %v1490_v31 = vld [vmem:[#allocation2 + $0x51] sm:$0xff] }
  0x8b   :  { %2643 = vmatprep.subr.mxu1 %v1516_v43  ;;  %2588 = vmatpush3.msra.mxu0 %v1323_v40  ;;  %v1709_v40 = vld [vmem:[%s3823_s3 + $0x468] sm:$0xff] }
  0x8c   :  { %2644 = vmatpush3.msra.mxu1 %v1516_v43  ;;  %2589 = vmatprep.subr.mxu0 %v1322_v44  ;;  %v1708_v43 = vld [vmem:[%s3823_s3 + $0x460] sm:$0xff] }
  0x8d   :  { %2645 = vmatprep.subr.mxu1 %v1515_v7  ;;  %2509 = vmatprep.mubr.f32.mxu0 %v2956_v53  ;;  %v1320_v53 = vld [vmem:[%s3823_s3 + $0x350] sm:$0xff] }
  0x8e   :  { %2565 = vmatprep.mubr.f32.mxu1 %v3248_v60  ;;  %2590 = vmatpush3.msra.mxu0 %v1322_v44  ;;  %v2784_v44 = vld [vmem:[#allocation2 + $0x61] sm:$0xff] }
  0x8f   :  { %2646 = vmatpush3.msra.mxu1 %v1515_v7  ;;  %2510 = vmatmul.mubr.f32.gmra.mxu0 %v2964_v57  ;;  %v1319_v57 = vld [vmem:[%s3823_s3 + $0x348] sm:$0xff]  ;;  %v1707_v7 = vld [vmem:[%s3823_s3 + $0x458] sm:$0xff] }
  0x90   :  { %2566 = vmatmul.mubr.f32.gmra.mxu1 %v3266_v16  ;;  %2591 = vmatprep.subr.mxu0 %v1321_v49 }
  0x91   :  { %2647 = vmatprep.subr.mxu1 %v1514_v8  ;;  %2592 = vmatpush3.msra.mxu0 %v1321_v49  ;;  %v1706_v49 = vld [vmem:[%s3823_s3 + $0x450] sm:$0xff] }
  0x92   :  { %2648 = vmatpush3.msra.mxu1 %v1514_v8  ;;  %2593 = vmatprep.subr.mxu0 %v1320_v53  ;;  %v1494_v8 = vld [vmem:[#allocation2 + $0x91] sm:$0xff] }
  0x93   :  { %2649 = vmatprep.subr.mxu1 %v1513_v9  ;;  %2512 = vmatprep.mubr.f32.mxu0 %v2976_v61  ;;  %v1318_v61 = vld [vmem:[%s3823_s3 + $0x340] sm:$0xff] }
  0x94   :  { %2568 = vmatprep.mubr.f32.mxu1 %v3268_v2  ;;  %2594 = vmatpush3.msra.mxu0 %v1320_v53  ;;  %v1704_v53 = vld [vmem:[%s3823_s3 + $0x440] sm:$0xff] }
  0x95   :  { %2650 = vmatpush3.msra.mxu1 %v1513_v9  ;;  %2513 = vmatmul.mubr.f32.gmra.mxu0 %v3086_v51  ;;  %v2787_v9 = vld [vmem:[#allocation2 + $0xd1] sm:$0xff] }
  0x96   :  { %2569 = vmatmul.mubr.f32.gmra.mxu1 %v3415_v10  ;;  %2595 = vmatprep.subr.mxu0 %v1319_v57 }
  0x97   :  { %2651 = vmatprep.subr.mxu1 %v1512_v17  ;;  %2596 = vmatpush3.msra.mxu0 %v1319_v57  ;;  %v1702_v57 = vld [vmem:[%s3823_s3 + $0x430] sm:$0xff] }
  0x98   :  { %2652 = vmatpush3.msra.mxu1 %v1512_v17  ;;  %2597 = vmatprep.subr.mxu0 %v1318_v61  ;;  %v2789_v17 = vld [vmem:[#allocation2 + $0xf1] sm:$0xff] }
  0x99   :  { %2653 = vmatprep.subr.mxu1 %v1511_v18  ;;  %2515 = vmatprep.mubr.f32.mxu0 %v2995_v5  ;;  %v1316_v5 = vld [vmem:[%s3823_s3 + $0x330] sm:$0xff] }
  0x9a   :  { %2571 = vmatprep.mubr.f32.mxu1 %v3288_v15  ;;  %2598 = vmatpush3.msra.mxu0 %v1318_v61  ;;  %v1509_v15 = vld [vmem:[%s3823_s3 + $0x3b0] sm:$0xff]  ;;  %v1700_v61 = vld [vmem:[%s3823_s3 + $0x420] sm:$0xff] }
  0x9b   :  { %2654 = vmatpush3.msra.mxu1 %v1511_v18  ;;  %2516 = vmatmul.mubr.f32.gmra.mxu0 %v3011_v13  ;;  %v1315_v13 = vld [vmem:[%s3823_s3 + $0x328] sm:$0xff]  ;;  %v2791_v18 = vld [vmem:[#allocation2 + $0x111] sm:$0xff] }
  0x9c   :  { %2572 = vmatmul.mubr.f32.gmra.mxu1 %v3305_v23  ;;  %2599 = vmatprep.subr.mxu0 %v1317_v19 }
  0x9d   :  { %2655 = vmatprep.subr.mxu1 %v1510_v6  ;;  %2600 = vmatpush3.msra.mxu0 %v1317_v19  ;;  %v1698_v19 = vld [vmem:[%s3823_s3 + $0x410] sm:$0xff] }
  0x9e   :  { %2656 = vmatpush3.msra.mxu1 %v1510_v6  ;;  %2601 = vmatprep.subr.mxu0 %v1316_v5  ;;  %v1502_v6 = vld [vmem:[#allocation2 + $0x131] sm:$0xff] }
  0x9f   :  { %2657 = vmatprep.subr.mxu1 %v1509_v15  ;;  %2518 = vmatprep.mubr.f32.mxu0 %v3013_v14  ;;  %v1314_v14 = vld [vmem:[%s3823_s3 + $0x320] sm:$0xff] }
  0xa0   :  { %2574 = vmatprep.mubr.f32.mxu1 %v3307_v25  ;;  %2602 = vmatpush3.msra.mxu0 %v1316_v5  ;;  %v1696_v5 = vld [vmem:[%s3823_s3 + $0x400] sm:$0xff] }
  0xa1   :  { %2658 = vmatpush3.msra.mxu1 %v1509_v15  ;;  %2519 = vmatmul.mubr.f32.gmra.mxu0 %v3027_v24  ;;  %v1313_v24 = vld [vmem:[%s3823_s3 + $0x318] sm:$0xff] }
  0xa2   :  { %2575 = vmatmul.mubr.f32.gmra.mxu1 %v3325_v39  ;;  %2603 = vmatprep.subr.mxu0 %v1315_v13 }
  0xa3   :  { %2659 = vmatprep.subr.mxu1 %v1508_v26  ;;  %2604 = vmatpush3.msra.mxu0 %v1315_v13 }
  0xa4   :  { %2660 = vmatpush3.msra.mxu1 %v1508_v26  ;;  %2605 = vmatprep.subr.mxu0 %v1314_v14 }
  0xa5   :  { %2661 = vmatprep.subr.mxu1 %v1507_v28  ;;  %2521 = vmatprep.mubr.f32.mxu0 %v3030_v27  ;;  %v1312_v27 = vld [vmem:[%s3823_s3 + $0x310] sm:$0xff] }
  0xa6   :  { %2577 = vmatprep.mubr.f32.mxu1 %v3327_v41  ;;  %2606 = vmatpush3.msra.mxu0 %v1314_v14 }
  0xa7   :  { %2662 = vmatpush3.msra.mxu1 %v1507_v28  ;;  %2522 = vmatmul.mubr.f32.gmra.mxu0 %v3036_v30  ;;  %v1311_v30 = vld [vmem:[%s3823_s3 + $0x308] sm:$0xff] }
  0xa8   :  { %2578 = vmatmul.mubr.f32.gmra.mxu1 %v3345_v52  ;;  %2607 = vmatprep.subr.mxu0 %v1313_v24 }
  0xa9   :  { %2663 = vmatprep.subr.mxu1 %v1506_v35  ;;  %2608 = vmatpush3.msra.mxu0 %v1313_v24 }
  0xaa   :  { %2664 = vmatpush3.msra.mxu1 %v1506_v35  ;;  %2609 = vmatprep.subr.mxu0 %v1312_v27 }
  0xab   :  { %2665 = vmatprep.subr.mxu1 %v1505_v36  ;;  %2524 = vmatprep.mubr.f32.mxu0 %v3045_v34  ;;  %v1310_v34 = vld [vmem:[%s3823_s3 + $0x300] sm:$0xff] }
  0xac   :  { %2580 = vmatprep.mubr.f32.mxu1 %v3347_v37  ;;  %2610 = vmatpush3.msra.mxu0 %v1312_v27 }
  0xad   :  { %2666 = vmatpush3.msra.mxu1 %v1505_v36  ;;  %2525 = vmatmul.mubr.f32.gmra.mxu0 %v3130_v3 }
  0xae   :  { %2581 = vmatmul.mubr.f32.gmra.mxu1 %v3481_v42  ;;  %2611 = vmatprep.subr.mxu0 %v1311_v30 }
  0xaf   :  { %2667 = vmatprep.subr.mxu1 %v1504_v45  ;;  %2612 = vmatpush3.msra.mxu0 %v1311_v30 }
  0xb0   :  { %2668 = vmatpush3.msra.mxu1 %v1504_v45  ;;  %2613 = vmatprep.subr.mxu0 %v1310_v34 }
  0xb1   :  { %2669 = vmatprep.subr.mxu1 %v1503_v46  ;;  %2614 = vmatpush3.msra.mxu0 %v1310_v34 }
  0xb2   :  { %2615 = vmatprep.mubr.f32.mxu0 %v1294_v48  ;;  %2670 = vmatpush3.msra.mxu1 %v1503_v46 }
  0xb3   :  { %2671 = vmatprep.mubr.f32.mxu1 %v1487_v56  ;;  %2616 = vmatmul.mubr.f32.vlgmr.msra.gmra.mxu0 %v1295_v38 }
  0xb4   :  { %2672 = vmatmul.mubr.f32.vlgmr.msra.gmra.mxu1 %v1488_v47  ;;  %2695 = vmatprep.subr.mxu0 %v1711_v63 }
  0xb5   :  { %2751 = vmatprep.subr.mxu1 %v1711_v63  ;;  %2696 = vmatpush3.msra.mxu0 %v1711_v63 }
  0xb6   :  { %2767 = vmatpush3.msra.mxu1 %v1711_v63  ;;  %2697 = vmatprep.subr.mxu0 %v1710_v0 }
  0xb7   :  { %2752 = vmatprep.subr.mxu1 %v1710_v0  ;;  %2618 = vmatprep.mubr.f32.mxu0 %v1296_v1 }
  0xb8   :  { %2674 = vmatprep.mubr.f32.mxu1 %v1489_v20  ;;  %2698 = vmatpush3.msra.mxu0 %v1710_v0 }
  0xb9   :  { %2768 = vmatpush3.msra.mxu1 %v1710_v0  ;;  %2619 = vmatmul.mubr.f32.gmra.mxu0 %v3084_v50  ;;  %v2785_v50 = vld [vmem:[#allocation2 + $0x71] sm:$0xff] }
  0xba   :  { %2675 = vmatmul.mubr.f32.gmra.mxu1 %v1490_v31  ;;  %2699 = vmatprep.subr.mxu0 %v1709_v40 }
  0xbb   :  { %2753 = vmatprep.subr.mxu1 %v1709_v40  ;;  %2700 = vmatpush3.msra.mxu0 %v1709_v40 }
  0xbc   :  { %2769 = vmatpush3.msra.mxu1 %v1709_v40  ;;  %2701 = vmatprep.subr.mxu0 %v1708_v43 }
  0xbd   :  { %2754 = vmatprep.subr.mxu1 %v1708_v43  ;;  %2621 = vmatprep.mubr.f32.mxu0 %v3105_v58  ;;  %v1301_v58 = vld [vmem:[#allocation2 + $0x90] sm:$0xff] }
  0xbe   :  { %2677 = vmatprep.mubr.f32.mxu1 %v2784_v44  ;;  %2702 = vmatpush3.msra.mxu0 %v1708_v43 }
  0xbf   :  { %2770 = vmatpush3.msra.mxu1 %v1708_v43  ;;  %2622 = vmatmul.mubr.f32.gmra.mxu0 %v3111_v62  ;;  %v1705_v62 = vld [vmem:[%s3823_s3 + $0x448] sm:$0xff] }
  0xc0   :  { %2678 = vmatmul.mubr.f32.gmra.mxu1 %v2785_v50  ;;  %2703 = vmatprep.subr.mxu0 %v1707_v7 }
  0xc1   :  { %2755 = vmatprep.subr.mxu1 %v1707_v7  ;;  %2704 = vmatpush3.msra.mxu0 %v1707_v7 }
  0xc2   :  { %2771 = vmatpush3.msra.mxu1 %v1707_v7  ;;  %2705 = vmatprep.subr.mxu0 %v1706_v49 }
  0xc3   :  { %2756 = vmatprep.subr.mxu1 %v1706_v49  ;;  %2624 = vmatprep.mubr.f32.mxu0 %v3270_v4  ;;  %v1703_v4 = vld [vmem:[%s3823_s3 + $0x438] sm:$0xff] }
  0xc4   :  { %2680 = vmatprep.mubr.f32.mxu1 %v3086_v51  ;;  %2706 = vmatpush3.msra.mxu0 %v1706_v49  ;;  %v2786_v51 = vld [vmem:[#allocation2 + $0xc1] sm:$0xff] }
  0xc5   :  { %2772 = vmatpush3.msra.mxu1 %v1706_v49  ;;  %2625 = vmatmul.mubr.f32.gmra.mxu0 %v1301_v58 }
  0xc6   :  { %2681 = vmatmul.mubr.f32.gmra.mxu1 %v1494_v8  ;;  %2707 = vmatprep.subr.mxu0 %v1705_v62 }
  0xc7   :  { %2757 = vmatprep.subr.mxu1 %v1705_v62  ;;  %2708 = vmatpush3.msra.mxu0 %v1705_v62 }
  0xc8   :  { %2773 = vmatpush3.msra.mxu1 %v1705_v62  ;;  %2709 = vmatprep.subr.mxu0 %v1704_v53 }
  0xc9   :  { %2758 = vmatprep.subr.mxu1 %v1704_v53  ;;  %2627 = vmatprep.mubr.f32.mxu0 %v3149_v11  ;;  %v2788_v11 = vld [vmem:[#allocation2 + $0xe1] sm:$0xff] }
  0xca   :  { %2683 = vmatprep.mubr.f32.mxu1 %v2786_v51  ;;  %2710 = vmatpush3.msra.mxu0 %v1704_v53 }
  0xcb   :  { %2774 = vmatpush3.msra.mxu1 %v1704_v53  ;;  %2628 = vmatmul.mubr.f32.gmra.mxu0 %v3151_v12  ;;  %v1701_v12 = vld [vmem:[%s3823_s3 + $0x428] sm:$0xff] }
  0xcc   :  { %2684 = vmatmul.mubr.f32.gmra.mxu1 %v2787_v9  ;;  %2711 = vmatprep.subr.mxu0 %v1703_v4 }
  0xcd   :  { %2759 = vmatprep.subr.mxu1 %v1703_v4  ;;  %2712 = vmatpush3.msra.mxu0 %v1703_v4 }
  0xce   :  { %2775 = vmatpush3.msra.mxu1 %v1703_v4  ;;  %2713 = vmatprep.subr.mxu0 %v1702_v57 }
  0xcf   :  { %2760 = vmatprep.subr.mxu1 %v1702_v57  ;;  %2630 = vmatprep.mubr.f32.mxu0 %v3169_v21  ;;  %v2790_v21 = vld [vmem:[#allocation2 + $0x101] sm:$0xff] }
  0xd0   :  { %2686 = vmatprep.mubr.f32.mxu1 %v2788_v11  ;;  %2714 = vmatpush3.msra.mxu0 %v1702_v57 }
  0xd1   :  { %2776 = vmatpush3.msra.mxu1 %v1702_v57  ;;  %2631 = vmatmul.mubr.f32.gmra.mxu0 %v3171_v22  ;;  %v1699_v22 = vld [vmem:[%s3823_s3 + $0x418] sm:$0xff] }
  0xd2   :  { %2687 = vmatmul.mubr.f32.gmra.mxu1 %v2789_v17  ;;  %2715 = vmatprep.subr.mxu0 %v1701_v12 }
  0xd3   :  { %2761 = vmatprep.subr.mxu1 %v1701_v12  ;;  %2716 = vmatpush3.msra.mxu0 %v1701_v12 }
  0xd4   :  { %2777 = vmatpush3.msra.mxu1 %v1701_v12  ;;  %2717 = vmatprep.subr.mxu0 %v1700_v61 }
  0xd5   :  { %2762 = vmatprep.subr.mxu1 %v1700_v61  ;;  %2633 = vmatprep.mubr.f32.mxu0 %v3189_v32  ;;  %v1309_v32 = vld [vmem:[#allocation2 + $0x130] sm:$0xff] }
  0xd6   :  { %2689 = vmatprep.mubr.f32.mxu1 %v2790_v21  ;;  %2718 = vmatpush3.msra.mxu0 %v1700_v61 }
  0xd7   :  { %2778 = vmatpush3.msra.mxu1 %v1700_v61  ;;  %2634 = vmatmul.mubr.f32.gmra.mxu0 %v3191_v33  ;;  %v1697_v33 = vld [vmem:[%s3823_s3 + $0x408] sm:$0xff] }
  0xd8   :  { %2690 = vmatmul.mubr.f32.gmra.mxu1 %v2791_v18  ;;  %2719 = vmatprep.subr.mxu0 %v1699_v22 }
  0xd9   :  { %2763 = vmatprep.subr.mxu1 %v1699_v22  ;;  %2720 = vmatpush3.msra.mxu0 %v1699_v22 }
  0xda   :  { %2779 = vmatpush3.msra.mxu1 %v1699_v22  ;;  %2721 = vmatprep.subr.mxu0 %v1698_v19 }
  0xdb   :  { %2764 = vmatprep.subr.mxu1 %v1698_v19  ;;  %2636 = vmatprep.mubr.f32.mxu0 %v3349_v55 }
  0xdc   :  { %2692 = vmatprep.mubr.f32.mxu1 %v3130_v3  ;;  %2722 = vmatpush3.msra.mxu0 %v1698_v19 }
  0xdd   :  { %2780 = vmatpush3.msra.mxu1 %v1698_v19  ;;  %2637 = vmatmul.mubr.f32.gmra.mxu0 %v1309_v32 }
  0xde   :  { %2693 = vmatmul.mubr.f32.gmra.mxu1 %v1502_v6  ;;  %2723 = vmatprep.subr.mxu0 %v1697_v33 }
  0xdf   :  { %2765 = vmatprep.subr.mxu1 %v1697_v33  ;;  %2724 = vmatpush3.msra.mxu0 %v1697_v33 }
  0xe0   :  { %2781 = vmatpush3.msra.mxu1 %v1697_v33  ;;  %2725 = vmatprep.subr.mxu0 %v1696_v5 }
  0xe1   :  { %2766 = vmatprep.subr.mxu1 %v1696_v5  ;;  %2726 = vmatpush3.msra.mxu0 %v1696_v5 }
  0xe2   :  { %2782 = vmatpush3.msra.mxu1 %v1696_v5  ;;  %2727 = vmatprep.mubr.f32.mxu0 %v3226_v54 }
  0xe3   :  { %2739 = vmatprep.mubr.f32.mxu1 %v3305_v23  ;;  %2728 = vmatmul.mubr.f32.vlgmr.msra.gmra.mxu0 %v3228_v29  ;;  %v2281_v3 = vpop.f32.mrf.mxu0 }
  0xe4   :  { %2740 = vmatmul.mubr.f32.vlgmr.msra.gmra.mxu1 %v3307_v25  ;;  %v2337_v55 = vpop.f32.mrf.mxu1  ;;  %2730 = vmatprep.mubr.f32.mxu0 %v3246_v59 }
  0xe5   :  { %2742 = vmatprep.mubr.f32.mxu1 %v3325_v39  ;;  %v448_v15 = vadd.f32 %v2337_v55, %v2281_v3  ;;  %v297_v13 = vpop.f32.mrf.mxu0  ;;  %v1695_v39 = vld [vmem:[#allocation2 + $0x132] sm:$0xff] }
  0xe6   :  { %v442_v26 = vpop.f32.mrf.mxu1 }
  0xe7   :  { %v443_v14 = vadd.f32 %v442_v26, %v297_v13  ;;  %2731 = vmatmul.mubr.f32.gmra.mxu0 %v3248_v60  ;;  %v1687_v60 = vld [vmem:[#allocation2 + $0x92] sm:$0xff] }
  0xe8   :  { %2743 = vmatmul.mubr.f32.gmra.mxu1 %v3327_v41  ;;  %2733 = vmatprep.mubr.f32.mxu0 %v3266_v16 }
  0xe9   :  { %2745 = vmatprep.mubr.f32.mxu1 %v3345_v52  ;;  %v2284_v54 = vpop.f32.mrf.mxu0 }
  0xea   :  { %v2340_v29 = vpop.f32.mrf.mxu1 }
  0xeb   :  { %v458_v23 = vadd.f32 %v2340_v29, %v2284_v54  ;;  %2734 = vmatmul.mubr.f32.gmra.mxu0 %v3268_v2  ;;  %v307_v59 = vpop.f32.mrf.mxu0 }
  0xec   :  { %2746 = vmatmul.mubr.f32.gmra.mxu1 %v3347_v37  ;;  %v452_v25 = vpop.f32.mrf.mxu1  ;;  %2736 = vmatprep.mubr.f32.mxu0 %v3415_v10 }
  0xed   :  { %2748 = vmatprep.mubr.f32.mxu1 %v3481_v42  ;;  %v453_v41 = vadd.f32 %v452_v25, %v307_v59 }
  0xef   :  { %2737 = vmatmul.mubr.f32.gmra.mxu0 %v1687_v60  ;;  %v2287_v16 = vpop.f32.mrf.mxu0 }
  0xf0   :  { %2749 = vmatmul.mubr.f32.gmra.mxu1 %v1695_v39  ;;  %v2343_v52 = vpop.f32.mrf.mxu1 }
  0xf1   :  { %v468_v28 = vadd.f32 %v2343_v52, %v2287_v16  ;;  %v317_v24 = vpop.f32.mrf.mxu0 }
  0xf2   :  { %v462_v35 = vpop.f32.mrf.mxu1 }
  0xf3   :  { %v463_v27 = vadd.f32 %v462_v35, %v317_v24 }
  0xf5   :  { %v2290_v2 = vpop.f32.mrf.mxu0 }
  0xf6   :  { %v2346_v36 = vpop.f32.mrf.mxu1 }
  0xf7   :  { %v478_v37 = vadd.f32 %v2346_v36, %v2290_v2  ;;  %v327_v30 = vpop.f32.mrf.mxu0 }
  0xf8   :  { %v472_v45 = vpop.f32.mrf.mxu1 }
  0xf9   :  { %v473_v34 = vadd.f32 %v472_v45, %v327_v30 }
  0xfb   :  { %v2293_v10 = vpop.f32.mrf.mxu0 }
  0xfc   :  { %v2349_v46 = vpop.f32.mrf.mxu1 }
  0xfd   :  { %v488_v42 = vadd.f32 %v2349_v46, %v2293_v10  ;;  %v337_v48 = vpop.f32.mrf.mxu0 }
  0xfe   :  { %v482_v56 = vpop.f32.mrf.mxu1 }
  0xff   :  { %v483_v38 = vadd.f32 %v482_v56, %v337_v48 }
 0x101   :  { %v2296_v47 = vpop.f32.mrf.mxu0 }
 0x102   :  { %v2352_v63 = vpop.f32.mrf.mxu1 }
 0x103   :  { %v498_v0 = vadd.f32 %v2352_v63, %v2296_v47  ;;  %v347_v1 = vpop.f32.mrf.mxu0 }
 0x104   :  { %v492_v20 = vpop.f32.mrf.mxu1 }
 0x105   :  { %v493_v31 = vadd.f32 %v492_v20, %v347_v1 }
 0x107   :  { %v2299_v40 = vpop.f32.mrf.mxu0 }
 0x108   :  { %v2355_v43 = vpop.f32.mrf.mxu1 }
 0x109   :  { %v508_v44 = vadd.f32 %v2355_v43, %v2299_v40  ;;  %v357_v7 = vpop.f32.mrf.mxu0 }
 0x10a   :  { %v502_v50 = vpop.f32.mrf.mxu1 }
 0x10b   :  { %v503_v49 = vadd.f32 %v502_v50, %v357_v7 }
 0x10d   :  { %v2302_v58 = vpop.f32.mrf.mxu0 }
 0x10e   :  { %v2358_v8 = vpop.f32.mrf.mxu1 }
 0x10f   :  { %v518_v62 = vadd.f32 %v2358_v8, %v2302_v58  ;;  %v367_v53 = vpop.f32.mrf.mxu0 }
 0x110   :  { %v512_v51 = vpop.f32.mrf.mxu1 }
 0x111   :  { %v3574_v4 = vadd.f32 %v512_v51, %v367_v53 }
 0x113   :  { %v2393_v9 = vpop.f32.mrf.mxu0 }
 0x114   :  { %v2449_v57 = vpop.f32.mrf.mxu1  ;;  %v699_v11 = vadd.f32 %v2393_v9, %v448_v15 }
 0x115   :  { %v619_v12 = vpop.f32.mrf.mxu0 }
 0x116   :  { %v812_v17 = vpop.f32.mrf.mxu1  ;;  %v3576_v61 = vadd.f32 %v2449_v57, %v699_v11  ;;  %v698_v21 = vadd.f32 %v619_v12, %v443_v14 }
 0x118   :  { %v3578_v22 = vadd.f32 %v812_v17, %v698_v21 }
 0x119   :  { %v2396_v18 = vpop.f32.mrf.mxu0 }
 0x11a   :  { %v2452_v19 = vpop.f32.mrf.mxu1  ;;  %v701_v32 = vadd.f32 %v2396_v18, %v458_v23 }
 0x11b   :  { %v629_v6 = vpop.f32.mrf.mxu0 }
 0x11c   :  { %v822_v33 = vpop.f32.mrf.mxu1  ;;  %v3580_v5 = vadd.f32 %v2452_v19, %v701_v32  ;;  %v700_v3 = vadd.f32 %v629_v6, %v453_v41 }
 0x11e   :  { %v3582_v55 = vadd.f32 %v822_v33, %v700_v3 }
 0x11f   :  { %v2399_v13 = vpop.f32.mrf.mxu0 }
 0x120   :  { %v2455_v26 = vpop.f32.mrf.mxu1  ;;  %v703_v15 = vadd.f32 %v2399_v13, %v468_v28 }
 0x121   :  { %v639_v54 = vpop.f32.mrf.mxu0 }
 0x122   :  { %v832_v29 = vpop.f32.mrf.mxu1  ;;  %v3584_v59 = vadd.f32 %v2455_v26, %v703_v15  ;;  %v702_v14 = vadd.f32 %v639_v54, %v463_v27 }
 0x124   :  { %v3586_v25 = vadd.f32 %v832_v29, %v702_v14 }
 0x125   :  { %v2402_v60 = vpop.f32.mrf.mxu0 }
 0x126   :  { %v2458_v39 = vpop.f32.mrf.mxu1  ;;  %v705_v23 = vadd.f32 %v2402_v60, %v478_v37 }
 0x127   :  { %v649_v16 = vpop.f32.mrf.mxu0 }
 0x128   :  { %v842_v52 = vpop.f32.mrf.mxu1  ;;  %v3588_v24 = vadd.f32 %v2458_v39, %v705_v23  ;;  %v704_v41 = vadd.f32 %v649_v16, %v473_v34 }
 0x12a   :  { %v3590_v35 = vadd.f32 %v842_v52, %v704_v41 }
 0x12b   :  { %v2405_v2 = vpop.f32.mrf.mxu0 }
 0x12c   :  { %v2461_v36 = vpop.f32.mrf.mxu1  ;;  %v707_v28 = vadd.f32 %v2405_v2, %v488_v42 }
 0x12d   :  { %v659_v30 = vpop.f32.mrf.mxu0 }
 0x12e   :  { %v852_v45 = vpop.f32.mrf.mxu1  ;;  %v3592_v10 = vadd.f32 %v2461_v36, %v707_v28  ;;  %v706_v27 = vadd.f32 %v659_v30, %v483_v38 }
 0x130   :  { %v3594_v46 = vadd.f32 %v852_v45, %v706_v27 }
 0x131   :  { %v2408_v48 = vpop.f32.mrf.mxu0 }
 0x132   :  { %v2464_v56 = vpop.f32.mrf.mxu1  ;;  %v709_v37 = vadd.f32 %v2408_v48, %v498_v0 }
 0x133   :  { %v669_v47 = vpop.f32.mrf.mxu0 }
 0x134   :  { %v862_v63 = vpop.f32.mrf.mxu1  ;;  %v3596_v1 = vadd.f32 %v2464_v56, %v709_v37  ;;  %v708_v34 = vadd.f32 %v669_v47, %v493_v31 }
 0x136   :  { %v3598_v20 = vadd.f32 %v862_v63, %v708_v34 }
 0x137   :  { %v2411_v40 = vpop.f32.mrf.mxu0 }
 0x138   :  { %v2467_v43 = vpop.f32.mrf.mxu1  ;;  %v711_v42 = vadd.f32 %v2411_v40, %v508_v44 }
 0x139   :  { %v679_v7 = vpop.f32.mrf.mxu0 }
 0x13a   :  { %v872_v50 = vpop.f32.mrf.mxu1  ;;  %v3600_v58 = vadd.f32 %v2467_v43, %v711_v42  ;;  %v710_v38 = vadd.f32 %v679_v7, %v503_v49 }
 0x13c   :  { %v3602_v8 = vadd.f32 %v872_v50, %v710_v38 }
 0x13d   :  { %v2414_v53 = vpop.f32.mrf.mxu0 }
 0x13e   :  { %v2470_v51 = vpop.f32.mrf.mxu1  ;;  %v713_v0 = vadd.f32 %v2414_v53, %v518_v62 }
 0x13f   :  { %v689_v9 = vpop.f32.mrf.mxu0 }
 0x140   :  { %v882_v57 = vpop.f32.mrf.mxu1  ;;  %v3604_v11 = vadd.f32 %v2470_v51, %v713_v0  ;;  %v712_v31 = vadd.f32 %v689_v9, %v3574_v4 }
 0x142   :  { %3829 = vst [vmem:[#allocation3_spill] sm:$0xff] %v3604_v11  ;;  %v3607_v12 = vadd.f32 %v882_v57, %v712_v31 }
 0x143   :  { %v2505_v17 = vpop.f32.mrf.mxu0 }
 0x144   :  { %3830 = vst [vmem:[#allocation4_spill] sm:$0xff] %v3607_v12  ;;  %v3609_v44 = vpop.f32.mrf.mxu1 }
 0x145   :  { %v1005_v21 = vpop.f32.mrf.mxu0 }
 0x146   :  { %v3611_v18 = vpop.f32.mrf.mxu1 }
 0x149   :  { %v2508_v49 = vpop.f32.mrf.mxu0 }
 0x14a   :  { %v3613_v19 = vpop.f32.mrf.mxu1 }
 0x14b   :  { %v1015_v32 = vpop.f32.mrf.mxu0 }
 0x14c   :  { %v3615_v6 = vpop.f32.mrf.mxu1 }
 0x14f   :  { %v2511_v62 = vpop.f32.mrf.mxu0 }
 0x150   :  { %v3617_v33 = vpop.f32.mrf.mxu1 }
 0x151   :  { %v1025_v3 = vpop.f32.mrf.mxu0 }
 0x152   :  { %v3619_v13 = vpop.f32.mrf.mxu1 }
 0x155   :  { %v3621_v4 = vpop.f32.mrf.mxu0 }
 0x156   :  { %v3623_v26 = vpop.f32.mrf.mxu1 }
 0x157   :  { %v3625_v15 = vpop.f32.mrf.mxu0 }
 0x158   :  { %v3627_v54 = vpop.f32.mrf.mxu1 }
 0x15b   :  { %v2517_v29 = vpop.f32.mrf.mxu0 }
 0x15c   :  { %v2573_v14 = vpop.f32.mrf.mxu1 }
 0x15d   :  { %v1045_v60 = vpop.f32.mrf.mxu0 }
 0x15e   :  { %v1238_v39 = vpop.f32.mrf.mxu1  ;;  %v1092_v11 = vadd.f32 %v1045_v60, %v3594_v46 }
 0x161   :  { %v2520_v23 = vpop.f32.mrf.mxu0 }
 0x162   :  { %v3629_v16 = vpop.f32.mrf.mxu1 }
 0x163   :  { %v1055_v52 = vpop.f32.mrf.mxu0 }
 0x164   :  { %v3631_v41 = vpop.f32.mrf.mxu1 }
 0x167   :  { %v2523_v2 = vpop.f32.mrf.mxu0 }
 0x168   :  { %v3633_v36 = vpop.f32.mrf.mxu1 }
 0x169   :  { %v3635_v28 = vpop.f32.mrf.mxu0 }
 0x16a   :  { %v3637_v30 = vpop.f32.mrf.mxu1 }
 0x16d   :  { %v3639_v45 = vpop.f32.mrf.mxu0 }
 0x16e   :  { %3831 = vst [vmem:[#allocation5_spill] sm:$0xff] %v3639_v45  ;;  %v3641_v27 = vpop.f32.mrf.mxu1 }
 0x16f   :  { %3832 = vst [vmem:[#allocation6_spill] sm:$0xff] %v3641_v27  ;;  %v3643_v48 = vpop.f32.mrf.mxu0 }
 0x170   :  { %3833 = vst [vmem:[#allocation7_spill] sm:$0xff] %v3643_v48  ;;  %v3645_v56 = vpop.f32.mrf.mxu1 }
 0x171   :  { %3834 = vst [vmem:[#allocation8_spill] sm:$0xff] %v3645_v56 }
 0x173   :  { %v2617_v37 = vpop.f32.mrf.mxu0 }
 0x174   :  { %v2673_v47 = vpop.f32.mrf.mxu1 }
 0x175   :  { %v1392_v63 = vpop.f32.mrf.mxu0 }
 0x176   :  { %v3647_v34 = vpop.f32.mrf.mxu1 }
 0x179   :  { %v2620_v40 = vpop.f32.mrf.mxu0 }
 0x17a   :  { %v3649_v43 = vpop.f32.mrf.mxu1 }
 0x17b   :  { %3835 = vst [vmem:[#allocation9_spill] sm:$0xff] %v3649_v43  ;;  %v1402_v42 = vpop.f32.mrf.mxu0 }
 0x17c   :  { %v3651_v7 = vpop.f32.mrf.mxu1 }
 0x17d   :  { %3836 = vst [vmem:[#allocation10_spill] sm:$0xff] %v3651_v7 }
 0x17f   :  { %v3653_v50 = vpop.f32.mrf.mxu0 }
 0x180   :  { %3837 = vst [vmem:[#allocation11_spill] sm:$0xff] %v3653_v50  ;;  %v3655_v38 = vpop.f32.mrf.mxu1 }
 0x181   :  { %3838 = vst [vmem:[#allocation12_spill] sm:$0xff] %v3655_v38  ;;  %v3657_v53 = vpop.f32.mrf.mxu0 }
 0x182   :  { %3839 = vst [vmem:[#allocation13_spill] sm:$0xff] %v3657_v53  ;;  %v3659_v51 = vpop.f32.mrf.mxu1 }
 0x183   :  { %3840 = vst [vmem:[#allocation14_spill] sm:$0xff] %v3659_v51 }
 0x185   :  { %v3661_v0 = vpop.f32.mrf.mxu0 }
 0x186   :  { %3841 = vst [vmem:[#allocation15_spill] sm:$0xff] %v3661_v0  ;;  %v3663_v9 = vpop.f32.mrf.mxu1 }
 0x187   :  { %3842 = vst [vmem:[#allocation16_spill] sm:$0xff] %v3663_v9  ;;  %v3665_v57 = vpop.f32.mrf.mxu0  ;;  %v1085_v9 = vadd.f32 %v2505_v17, %v3576_v61  ;;  %v1088_v61 = vadd.f32 %v1025_v3, %v3586_v25 }
 0x188   :  { %3843 = vst [vmem:[#allocation17_spill] sm:$0xff] %v3665_v57  ;;  %v3667_v31 = vpop.f32.mrf.mxu1  ;;  %v1093_v57 = vadd.f32 %v2517_v29, %v3592_v10 }
 0x189   :  { %3844 = vst [vmem:[#allocation18_spill] sm:$0xff] %v3667_v31  ;;  %v1084_v31 = vadd.f32 %v1005_v21, %v3578_v22  ;;  %v1095_v22 = vadd.f32 %v2520_v23, %v3596_v1  ;;  %v1094_v21 = vadd.f32 %v1055_v52, %v3598_v20  ;;  %v1097_v1 = vadd.f32 %v2523_v2, %v3600_v58 }
 0x18a   :  { %v1286_v17 = vadd.f32 %v2573_v14, %v1093_v57 }
 0x18b   :  { %v2629_v56 = vpop.f32.mrf.mxu0  ;;  %v1277_v10 = vadd.f32 %v3611_v18, %v1084_v31  ;;  %v1090_v18 = vadd.f32 %v3625_v15, %v3590_v35 }
 0x18c   :  { %v2685_v27 = vpop.f32.mrf.mxu1 }
 0x18d   :  { %v1432_v43 = vpop.f32.mrf.mxu0  ;;  %v1283_v60 = vadd.f32 %v3627_v54, %v1090_v18 }
 0x18e   :  { %v1625_v7 = vpop.f32.mrf.mxu1 }
 0x191   :  { %v2632_v48 = vpop.f32.mrf.mxu0 }
 0x192   :  { %v3669_v50 = vpop.f32.mrf.mxu1 }
 0x193   :  { %3845 = vst [vmem:[#allocation19_spill] sm:$0xff] %v3669_v50  ;;  %v1442_v38 = vpop.f32.mrf.mxu0  ;;  %v1087_v50 = vadd.f32 %v2508_v49, %v3580_v5  ;;  %v1091_v5 = vadd.f32 %v3621_v4, %v3588_v24  ;;  %v1480_v49 = vadd.f32 %v2629_v56, %v1286_v17  ;;  %v1281_v24 = vadd.f32 %v3619_v13, %v1088_v61 }
 0x194   :  { %v3671_v12 = vpop.f32.mrf.mxu1  ;;  %v1288_v4 = vadd.f32 %v3629_v16, %v1095_v22 }
 0x195   :  { %3846 = vst [vmem:[#allocation20_spill] sm:$0xff] %v3671_v12  ;;  %v1086_v12 = vadd.f32 %v1015_v32, %v3582_v55  ;;  %v1285_v55 = vadd.f32 %v1238_v39, %v1092_v11  ;;  %v1471_v11 = vadd.f32 %v1392_v63, %v1277_v10  ;;  %v1284_v58 = vadd.f32 %v3623_v26, %v1091_v5  ;;  %v3849_v26 = vld [vmem:[#allocation3_spill] sm:$0xff]  ;;  %v3853_v63 = vld [vmem:[#allocation9_spill] sm:$0xff] }
 0x196   :  { %v1673_v14 = vadd.f32 %v2685_v27, %v1480_v49  ;;  %v1482_v13 = vadd.f32 %v2632_v48, %v1288_v4  ;;  %v3851_v27 = vld [vmem:[#allocation4_spill] sm:$0xff]  ;;  %v3860_v49 = vld [vmem:[#allocation6_spill] sm:$0xff] }
 0x197   :  { %v3673_v53 = vpop.f32.mrf.mxu0  ;;  %v1279_v25 = vadd.f32 %v3615_v6, %v1086_v12  ;;  %v1479_v3 = vadd.f32 %v1432_v43, %v1285_v55  ;;  %v1096_v12 = vadd.f32 %v3635_v28, %v3602_v8  ;;  %v1664_v16 = vadd.f32 %v3647_v34, %v1471_v11  ;;  %v3850_v28 = vld [vmem:[#allocation5_spill] sm:$0xff]  ;;  %v3854_v43 = vld [vmem:[#allocation10_spill] sm:$0xff] }
 0x198   :  { %3847 = vst [vmem:[#allocation21_spill] sm:$0xff] %v3673_v53  ;;  %v3675_v51 = vpop.f32.mrf.mxu1  ;;  %v1278_v53 = vadd.f32 %v3609_v44, %v1085_v9 }
 0x199   :  { %3848 = vst [vmem:[#allocation22_spill] sm:$0xff] %v3675_v51  ;;  %v3680_v0 = vpop.f32.mrf.mxu0  ;;  %v1089_v51 = vadd.f32 %v2511_v62, %v3584_v59  ;;  %v1280_v59 = vadd.f32 %v3613_v19, %v1087_v50  ;;  %v1287_v19 = vadd.f32 %v3631_v41, %v1094_v21  ;;  %v1473_v15 = vadd.f32 %v1402_v42, %v1279_v25  ;;  %v3855_v50 = vld [vmem:[#allocation11_spill] sm:$0xff] }
 0x19a   :  { %v3682_v45 = vpop.f32.mrf.mxu1  ;;  %v1472_v44 = vadd.f32 %v2617_v37, %v1278_v53  ;;  %v1672_v41 = vadd.f32 %v1625_v7, %v1479_v3  ;;  %v1289_v8 = vadd.f32 %v3637_v30, %v1096_v12  ;;  %v1099_v37 = vadd.f32 %v3850_v28, %v3849_v26  ;;  %v3861_v25 = vld [vmem:[#allocation15_spill] sm:$0xff]  ;;  %v3862_v3 = vld [vmem:[#allocation12_spill] sm:$0xff] }
 0x19b   :  { %v1282_v62 = vadd.f32 %v3617_v33, %v1089_v51  ;;  %v1474_v35 = vadd.f32 %v2620_v40, %v1280_v59  ;;  %v1290_v33 = vadd.f32 %v3633_v36, %v1097_v1  ;;  %v1481_v39 = vadd.f32 %v1442_v38, %v1287_v19  ;;  %v3856_v38 = vld [vmem:[#allocation13_spill] sm:$0xff]  ;;  %v3857_v51 = vld [vmem:[#allocation19_spill] sm:$0xff] }
 0x19c   :  { %v1665_v6 = vadd.f32 %v2673_v47, %v1472_v44  ;;  %v3852_v47 = vld [vmem:[#allocation7_spill] sm:$0xff]  ;;  %v1666_v42 = vadd.f32 %v3854_v43, %v1473_v15  ;;  %v1475_v53 = vadd.f32 %v3856_v38, %v1281_v24  ;;  %v1675_v9 = vadd.f32 %v3857_v51, %v1482_v13  ;;  %v3858_v57 = vld [vmem:[#allocation20_spill] sm:$0xff] }
 0x19d   :  { %v3693_v29 = vpop.f32.mrf.mxu0  ;;  %v1098_v54 = vadd.f32 %v3852_v47, %v3851_v27  ;;  %v1667_v36 = vadd.f32 %v3853_v63, %v1474_v35  ;;  %v1476_v34 = vadd.f32 %v3855_v50, %v1282_v62  ;;  %v1674_v31 = vadd.f32 %v3858_v57, %v1481_v39 }
 0x19e   :  { %v3695_v46 = vpop.f32.mrf.mxu1  ;;  %v1292_v59 = vadd.f32 %v3860_v49, %v1099_v37  ;;  %v1478_v18 = vadd.f32 %v3861_v25, %v1284_v58  ;;  %v1483_v1 = vadd.f32 %v3680_v0, %v1289_v8 }
 0x19f   :  { %v3704_v20 = vpop.f32.mrf.mxu0  ;;  %v3859_v61 = vld [vmem:[#allocation21_spill] sm:$0xff]  ;;  %v1669_v4 = vadd.f32 %v3862_v3, %v1476_v34 }
 0x1a0   :  { %v3706_v32 = vpop.f32.mrf.mxu1  ;;  %v1484_v17 = vadd.f32 %v3859_v61, %v1290_v33  ;;  %v3865_v33 = vld [vmem:[#allocation22_spill] sm:$0xff]  ;;  %v1486_v13 = vadd.f32 %v3693_v29, %v1292_v59  ;;  %v1676_v26 = vadd.f32 %v3682_v45, %v1483_v1 }
 0x1a2   :  { %v1677_v0 = vadd.f32 %v3865_v33, %v1484_v17 }
 0x1a3   :  { %v2729_v23 = vpop.f32.mrf.mxu0 }
 0x1a4   :  { %v2741_v52 = vpop.f32.mrf.mxu1  ;;  %v1858_v2 = vadd.f32 %v2729_v23, %v1665_v6  ;;  %v3863_v6 = vld [vmem:[#allocation8_spill] sm:$0xff] }
 0x1a5   :  { %v3718_v56 = vadd.f32 %v2741_v52, %v1673_v14  ;;  %v1778_v48 = vpop.f32.mrf.mxu0  ;;  %v1291_v15 = vadd.f32 %v3863_v6, %v1098_v54  ;;  %v3864_v14 = vld [vmem:[#allocation17_spill] sm:$0xff]  ;;  %v3866_v52 = vld [vmem:[#allocation14_spill] sm:$0xff] }
 0x1a6   :  { %v1818_v40 = vpop.f32.mrf.mxu1  ;;  %1874 = vst [vmem:[%s3827_s4 + $0x8] sm:$0xff] %v1858_v2  ;;  %v1857_v30 = vadd.f32 %v1778_v48, %v1664_v16  ;;  %v1912_v21 = vmul.f32 %v1858_v2, %v1858_v2  ;;  %v1477_v58 = vadd.f32 %v3864_v14, %v1283_v60  ;;  %v1668_v16 = vadd.f32 %v3866_v52, %v1475_v53  ;;  %v3867_v60 = vld [vmem:[#allocation16_spill] sm:$0xff] }
 0x1a7   :  { %1882 = vst [vmem:[%s3827_s4 + $0x48] sm:$0xff] %v3718_v56  ;;  %v3735_v7 = vadd.f32 %v1818_v40, %v1672_v41  ;;  %v2732_v10 = vpop.f32.mrf.mxu0  ;;  %v1671_v8 = vadd.f32 %v3867_v60, %v1478_v18  ;;  %v1485_v28 = vadd.f32 %v3704_v20, %v1291_v15  ;;  %v3868_v40 = vld [vmem:[#allocation18_spill] sm:$0xff]  ;;  %v1920_v1 = vmul.f32 %v3718_v56, %v3718_v56 }
 0x1a8   :  { %v2744_v22 = vpop.f32.mrf.mxu1  ;;  %1873 = vst [vmem:[%s3827_s4] sm:$0xff] %v1857_v30  ;;  %v1889_v5 = vadd.f32 %v1858_v2, %v1857_v30  ;;  %v1911_v55 = vmul.f32 %v1857_v30, %v1857_v30  ;;  %v1860_v44 = vadd.f32 %v2732_v10, %v1667_v36  ;;  %v1670_v43 = vadd.f32 %v3868_v40, %v1477_v58 }
 0x1a9   :  { %1881 = vst [vmem:[%s3827_s4 + $0x40] sm:$0xff] %v3735_v7  ;;  %v3751_v62 = vadd.f32 %v2744_v22, %v1675_v9  ;;  %v1788_v24 = vpop.f32.mrf.mxu0  ;;  %v1678_v51 = vadd.f32 %v3706_v32, %v1485_v28  ;;  %v1919_v59 = vmul.f32 %v3735_v7, %v3735_v7 }
 0x1aa   :  { %v1828_v11 = vpop.f32.mrf.mxu1  ;;  %v1927_v19 = vadd.f32 %v1912_v21, %v1911_v55  ;;  %1876 = vst [vmem:[%s3827_s4 + $0x18] sm:$0xff] %v1860_v44  ;;  %v1859_v12 = vadd.f32 %v1788_v24, %v1666_v42  ;;  %v1914_v54 = vmul.f32 %v1860_v44, %v1860_v44  ;;  %v1679_v42 = vadd.f32 %v3695_v46, %v1486_v13 }
 0x1ab   :  { %v3757_v35 = vadd.f32 %v1828_v11, %v1674_v31  ;;  %1884 = vst [vmem:[%s3827_s4 + $0x58] sm:$0xff] %v3751_v62  ;;  %v2735_v39 = vpop.f32.mrf.mxu0 }
 0x1ac   :  { %v2747_v23 = vpop.f32.mrf.mxu1  ;;  %1875 = vst [vmem:[%s3827_s4 + $0x10] sm:$0xff] %v1859_v12  ;;  %v1890_v41 = vadd.f32 %v1889_v5, %v1859_v12  ;;  %v1913_v2 = vmul.f32 %v1859_v12, %v1859_v12  ;;  %v1862_v29 = vadd.f32 %v2735_v39, %v1669_v4  ;;  %v1922_v12 = vmul.f32 %v3751_v62, %v3751_v62 }
 0x1ad   :  { %1883 = vst [vmem:[%s3827_s4 + $0x50] sm:$0xff] %v3757_v35  ;;  %v1870_v37 = vadd.f32 %v2747_v23, %v1677_v0  ;;  %v1798_v27 = vpop.f32.mrf.mxu0  ;;  %v1921_v3 = vmul.f32 %v3757_v35, %v3757_v35 }
 0x1ae   :  { %v1838_v47 = vpop.f32.mrf.mxu1  ;;  %v1928_v63 = vadd.f32 %v1927_v19, %v1913_v2  ;;  %1878 = vst [vmem:[%s3827_s4 + $0x28] sm:$0xff] %v1862_v29  ;;  %v1861_v36 = vadd.f32 %v1798_v27, %v1668_v16  ;;  %v1891_v48 = vadd.f32 %v1890_v41, %v1860_v44  ;;  %v1916_v31 = vmul.f32 %v1862_v29, %v1862_v29 }
 0x1af   :  { %1886 = vst [vmem:[%s3827_s4 + $0x68] sm:$0xff] %v1870_v37  ;;  %v1869_v45 = vadd.f32 %v1838_v47, %v1676_v26  ;;  %v2738_v20 = vpop.f32.mrf.mxu0  ;;  %v1924_v33 = vmul.f32 %v1870_v37, %v1870_v37 }
 0x1b0   :  { %v2750_v50 = vpop.f32.mrf.mxu1  ;;  %1877 = vst [vmem:[%s3827_s4 + $0x20] sm:$0xff] %v1861_v36  ;;  %v1892_v34 = vadd.f32 %v1891_v48, %v1861_v36  ;;  %v1915_v30 = vmul.f32 %v1861_v36, %v1861_v36  ;;  %v1929_v38 = vadd.f32 %v1928_v63, %v1914_v54  ;;  %v1864_v53 = vadd.f32 %v2738_v20, %v1671_v8 }
 0x1b1   :  { %1885 = vst [vmem:[%s3827_s4 + $0x60] sm:$0xff] %v1869_v45  ;;  %v1872_v46 = vadd.f32 %v2750_v50, %v1679_v42  ;;  %v1808_v9 = vpop.f32.mrf.mxu0 }
 0x1b2   :  { %v1848_v57 = vpop.f32.mrf.mxu1  ;;  %v1930_v61 = vadd.f32 %v1929_v38, %v1915_v30  ;;  %1880 = vst [vmem:[%s3827_s4 + $0x38] sm:$0xff] %v1864_v53  ;;  %v1863_v17 = vadd.f32 %v1808_v9, %v1670_v43  ;;  %v1893_v10 = vadd.f32 %v1892_v34, %v1862_v29  ;;  %v1918_v55 = vmul.f32 %v1864_v53, %v1864_v53 }
 0x1b3   :  { %1888 = vst [vmem:[%s3827_s4 + $0x78] sm:$0xff] %v1872_v46  ;;  %v1871_v32 = vadd.f32 %v1848_v57, %v1678_v51  ;;  %v1926_v52 = vmul.f32 %v1872_v46, %v1872_v46 }
 0x1b4   :  { %1879 = vst [vmem:[%s3827_s4 + $0x30] sm:$0xff] %v1863_v17  ;;  %v1894_v22 = vadd.f32 %v1893_v10, %v1863_v17  ;;  %v1917_v21 = vmul.f32 %v1863_v17, %v1863_v17  ;;  %v1931_v5 = vadd.f32 %v1930_v61, %v1916_v31 }
 0x1b5   :  { %1887 = vst [vmem:[%s3827_s4 + $0x70] sm:$0xff] %v1871_v32  ;;  %v1925_v39 = vmul.f32 %v1871_v32, %v1871_v32 }
 0x1b6   :  { %v1895_v44 = vadd.f32 %v1894_v22, %v1864_v53  ;;  %v1932_v49 = vadd.f32 %v1931_v5, %v1917_v21 }
 0x1b8   :  { %v1896_v25 = vadd.f32 %v1895_v44, %v3735_v7  ;;  %v1933_v18 = vadd.f32 %v1932_v49, %v1918_v55  ;;  %v1923_v7 = vmul.f32 %v1869_v45, %v1869_v45 }
 0x1ba   :  { %v1897_v24 = vadd.f32 %v1896_v25, %v3718_v56  ;;  %v1934_v11 = vadd.f32 %v1933_v18, %v1919_v59 }
 0x1bc   :  { %v1935_v4 = vadd.f32 %v1934_v11, %v1920_v1  ;;  %v1898_v19 = vadd.f32 %v1897_v24, %v3757_v35 }
 0x1be   :  { %v1899_v6 = vadd.f32 %v1898_v19, %v3751_v62  ;;  %v1936_v15 = vadd.f32 %v1935_v4, %v1921_v3 }
 0x1c0   :  { %v1900_v14 = vadd.f32 %v1899_v6, %v1869_v45  ;;  %v1937_v58 = vadd.f32 %v1936_v15, %v1922_v12 }
 0x1c2   :  { %v1901_v0 = vadd.f32 %v1900_v14, %v1870_v37  ;;  %v1938_v13 = vadd.f32 %v1937_v58, %v1923_v7 }
 0x1c4   :  { %v1902_v56 = vadd.f32 %v1901_v0, %v1871_v32  ;;  %v1939_v23 = vadd.f32 %v1938_v13, %v1924_v33 }
 0x1c6   :  { %v1903_v16 = vadd.f32 %v1902_v56, %v1872_v46  ;;  %v1940_v41 = vadd.f32 %v1939_v23, %v1925_v39 }
 0x1c8   :  { %v1904_v2 = vrot.slane %v1903_v16, 4  ;;  %v1941_v35 = vadd.f32 %v1940_v41, %v1926_v52 }
 0x1ca   :  { %v1905_v29 = vadd.f32 %v1904_v2, %v1903_v16  ;;  %v1942_v60 = vrot.slane %v1941_v35, 4 }
 0x1cc   :  { %v1906_v8 = vrot.slane %v1905_v29, 2  ;;  %v1943_v26 = vadd.f32 %v1942_v60, %v1941_v35 }
 0x1ce   :  { %v1907_v62 = vadd.f32 %v1906_v8, %v1905_v29  ;;  %v1944_v28 = vrot.slane %v1943_v26, 2 }
 0x1d0   :  { %v1908_v27 = vrot.slane %v1907_v62, 1  ;;  %v1945_v47 = vadd.f32 %v1944_v28, %v1943_v26 }
 0x1d2   :  { %v1909_v54 = vadd.f32 %v1908_v27, %v1907_v62  ;;  %v1946_v63 = vrot.slane %v1945_v47, 1 }
 0x1d4   :  { %1910 = vst [vmem:[%s3828_s5] sm:$0x1] %v1909_v54  ;;  %v1947_v37 = vadd.f32 %v1946_v63, %v1945_v47 }
 0x1d6   :  { %1948 = vst [vmem:[%s3828_s5 + $0x1] sm:$0x1] %v1947_v37 }

// kernel: resblk_forward.2
= control target key start
LH: loop header
LB: loop body
LE: loop exit
PB: predicated region body
PF: predicated region fallthrough
CT: control target
= control target key end

     0   :  { %v2730_v3 = vmov 0.0   ;;  %vm497_vm0 = vcmask 1046528   ;;  %s4974_s1 = inlined_call_operand.vmem [shape: f32[1152,256], index: 1, kind: input, shape index: {}]   ;;  %s4975_s0 = inlined_call_operand.vmem [shape: f32[2,9,9,512], index: 0, kind: input, shape index: {}]   ;;  %s4976_s2 = inlined_call_operand.vmem [shape: f32[2,64,128], index: 2, kind: output, shape index: {0}]   ;;  %s4977_s4 = inlined_call_operand.vmem [shape: f32[2,64,128], index: 4, kind: output, shape index: {2}]   ;;  %s4978_s3 = inlined_call_operand.vmem [shape: f32[1,2,128], index: 3, kind: output, shape index: {1}]   ;;  %s4979_s5 = inlined_call_operand.vmem [shape: f32[1,2,128], index: 5, kind: output, shape index: {3}]  }
   0x1   :  { %v110_v0 = vld [vmem:[%s4974_s1 + $0x1f8] sm:$0xff]  ;;  %v109_v1 = vld [vmem:[%s4974_s1 + $0x1f0] sm:$0xff]  ;;  %v108_v2 = vld [vmem:[%s4974_s1 + $0x1e8] sm:$0xff]  ;;  %223 = vmatprep.mubr.f32.mxu1 %v2730_v3  ;;  %175 = vmatprep.mubr.f32.mxu0 %v2730_v3 }
   0x2   :  { %2690 = vmatprep.subr.mxu1 %v110_v0  ;;  %111 = vmatprep.subr.mxu0 %v110_v0  ;;  %v107_v4 = vld [vmem:[%s4974_s1 + $0x1e0] sm:$0xff]  ;;  %v106_v5 = vld [vmem:[%s4974_s1 + $0x1d8] sm:$0xff]  ;;  %v105_v6 = vld [vmem:[%s4974_s1 + $0x1d0] sm:$0xff] }
   0x3   :  { %2706 = vmatpush1.msra.mxu1 %v109_v1  ;;  %112 = vmatpush1.msra.mxu0 %v109_v1  ;;  %v104_v7 = vld [vmem:[%s4974_s1 + $0x1c8] sm:$0xff]  ;;  %v103_v8 = vld [vmem:[%s4974_s1 + $0x1c0] sm:$0xff]  ;;  %v102_v9 = vld [vmem:[%s4974_s1 + $0x1b8] sm:$0xff] }
   0x4   :  { %2691 = vmatprep.subr.mxu1 %v108_v2  ;;  %113 = vmatprep.subr.mxu0 %v108_v2  ;;  %v101_v10 = vld [vmem:[%s4974_s1 + $0x1b0] sm:$0xff]  ;;  %v100_v11 = vld [vmem:[%s4974_s1 + $0x1a8] sm:$0xff]  ;;  %v99_v12 = vld [vmem:[%s4974_s1 + $0x1a0] sm:$0xff] }
   0x5   :  { %2707 = vmatpush1.msra.mxu1 %v107_v4  ;;  %114 = vmatpush1.msra.mxu0 %v107_v4  ;;  %v98_v13 = vld [vmem:[%s4974_s1 + $0x198] sm:$0xff]  ;;  %v97_v14 = vld [vmem:[%s4974_s1 + $0x190] sm:$0xff]  ;;  %v96_v15 = vld [vmem:[%s4974_s1 + $0x188] sm:$0xff] }
   0x6   :  { %2692 = vmatprep.subr.mxu1 %v106_v5  ;;  %115 = vmatprep.subr.mxu0 %v106_v5  ;;  %v95_v16 = vld [vmem:[%s4974_s1 + $0x180] sm:$0xff]  ;;  %v94_v17 = vld [vmem:[%s4974_s1 + $0x178] sm:$0xff]  ;;  %v93_v18 = vld [vmem:[%s4974_s1 + $0x170] sm:$0xff] }
   0x7   :  { %2708 = vmatpush1.msra.mxu1 %v105_v6  ;;  %116 = vmatpush1.msra.mxu0 %v105_v6  ;;  %v92_v19 = vld [vmem:[%s4974_s1 + $0x168] sm:$0xff]  ;;  %v91_v20 = vld [vmem:[%s4974_s1 + $0x160] sm:$0xff]  ;;  %v90_v21 = vld [vmem:[%s4974_s1 + $0x158] sm:$0xff] }
   0x8   :  { %2693 = vmatprep.subr.mxu1 %v104_v7  ;;  %117 = vmatprep.subr.mxu0 %v104_v7  ;;  %v89_v22 = vld [vmem:[%s4974_s1 + $0x150] sm:$0xff]  ;;  %v88_v23 = vld [vmem:[%s4974_s1 + $0x148] sm:$0xff]  ;;  %v87_v24 = vld [vmem:[%s4974_s1 + $0x140] sm:$0xff] }
   0x9   :  { %2709 = vmatpush1.msra.mxu1 %v103_v8  ;;  %118 = vmatpush1.msra.mxu0 %v103_v8  ;;  %v86_v25 = vld [vmem:[%s4974_s1 + $0x138] sm:$0xff]  ;;  %v85_v26 = vld [vmem:[%s4974_s1 + $0x130] sm:$0xff]  ;;  %v84_v27 = vld [vmem:[%s4974_s1 + $0x128] sm:$0xff] }
   0xa   :  { %2694 = vmatprep.subr.mxu1 %v102_v9  ;;  %119 = vmatprep.subr.mxu0 %v102_v9  ;;  %v83_v28 = vld [vmem:[%s4974_s1 + $0x120] sm:$0xff]  ;;  %v82_v29 = vld [vmem:[%s4974_s1 + $0x118] sm:$0xff]  ;;  %v81_v30 = vld [vmem:[%s4974_s1 + $0x110] sm:$0xff] }
   0xb   :  { %2710 = vmatpush1.msra.mxu1 %v101_v10  ;;  %120 = vmatpush1.msra.mxu0 %v101_v10  ;;  %v80_v31 = vld [vmem:[%s4974_s1 + $0x108] sm:$0xff]  ;;  %v79_v32 = vld [vmem:[%s4974_s1 + $0x100] sm:$0xff]  ;;  %v62_v34 = vld [vmem:[%s4974_s1 + $0xf8] sm:$0xff] }
   0xc   :  { %2695 = vmatprep.subr.mxu1 %v100_v11  ;;  %121 = vmatprep.subr.mxu0 %v100_v11  ;;  %v71_v33 = vld [vmem:[%s4975_s0 + $0x248] sm:$0xff]  ;;  %v61_v36 = vld [vmem:[%s4974_s1 + $0xf0] sm:$0xff]  ;;  %v593_v37 = vld [vmem:[%s4974_s1 + $0x2f8] sm:$0xff] }
   0xd   :  { %2711 = vmatpush1.msra.mxu1 %v99_v12  ;;  %122 = vmatpush1.msra.mxu0 %v99_v12  ;;  %v63_v35 = vld [vmem:[%s4975_s0 + $0x8] sm:$0xff]  ;;  %v592_v39 = vld [vmem:[%s4974_s1 + $0x2f0] sm:$0xff]  ;;  %v59_v40 = vld [vmem:[%s4974_s1 + $0xe0] sm:$0xff] }
   0xe   :  { %2696 = vmatprep.subr.mxu1 %v98_v13  ;;  %123 = vmatprep.subr.mxu0 %v98_v13  ;;  %v60_v38 = vld [vmem:[%s4974_s1 + $0xe8] sm:$0xff]  ;;  %v58_v43 = vld [vmem:[%s4974_s1 + $0xd8] sm:$0xff]  ;;  %v590_v44 = vld [vmem:[%s4974_s1 + $0x2e0] sm:$0xff] }
   0xf   :  { %2712 = vmatpush1.msra.mxu1 %v97_v14  ;;  %124 = vmatpush1.msra.mxu0 %v97_v14  ;;  %v591_v41 = vld [vmem:[%s4974_s1 + $0x2e8] sm:$0xff]  ;;  %v57_v46 = vld [vmem:[%s4974_s1 + $0xd0] sm:$0xff]  ;;  %v589_v47 = vld [vmem:[%s4974_s1 + $0x2d8] sm:$0xff] }
  0x10   :  { %2697 = vmatprep.subr.mxu1 %v96_v15  ;;  %125 = vmatprep.subr.mxu0 %v96_v15  ;;  %v72_v42 = vld [vmem:[%s4975_s0 + $0x288] sm:$0xff]  ;;  %v588_v49 = vld [vmem:[%s4974_s1 + $0x2d0] sm:$0xff]  ;;  %v55_v50 = vld [vmem:[%s4974_s1 + $0xc0] sm:$0xff] }
  0x11   :  { %2713 = vmatpush1.msra.mxu1 %v95_v16  ;;  %126 = vmatpush1.msra.mxu0 %v95_v16  ;;  %v64_v45 = vld [vmem:[%s4975_s0 + $0x48] sm:$0xff]  ;;  %v54_v53 = vld [vmem:[%s4974_s1 + $0xb8] sm:$0xff]  ;;  %v586_v54 = vld [vmem:[%s4974_s1 + $0x2c0] sm:$0xff] }
  0x12   :  { %2698 = vmatprep.subr.mxu1 %v94_v17  ;;  %127 = vmatprep.subr.mxu0 %v94_v17  ;;  %v56_v48 = vld [vmem:[%s4974_s1 + $0xc8] sm:$0xff]  ;;  %v53_v56 = vld [vmem:[%s4974_s1 + $0xb0] sm:$0xff]  ;;  %v585_v57 = vld [vmem:[%s4974_s1 + $0x2b8] sm:$0xff] }
  0x13   :  { %2714 = vmatpush1.msra.mxu1 %v93_v18  ;;  %128 = vmatpush1.msra.mxu0 %v93_v18  ;;  %v587_v51 = vld [vmem:[%s4974_s1 + $0x2c8] sm:$0xff]  ;;  %v584_v59 = vld [vmem:[%s4974_s1 + $0x2b0] sm:$0xff]  ;;  %v51_v60 = vld [vmem:[%s4974_s1 + $0xa0] sm:$0xff] }
  0x14   :  { %2699 = vmatprep.subr.mxu1 %v92_v19  ;;  %129 = vmatprep.subr.mxu0 %v92_v19  ;;  %v73_v52 = vld [vmem:[%s4975_s0 + $0x2c8] sm:$0xff]  ;;  %v50_v63 = vld [vmem:[%s4974_s1 + $0x98] sm:$0xff]  ;;  %v582_v0 = vld [vmem:[%s4974_s1 + $0x2a0] sm:$0xff] }
  0x15   :  { %2715 = vmatpush1.msra.mxu1 %v91_v20  ;;  %130 = vmatpush1.msra.mxu0 %v91_v20  ;;  %v65_v55 = vld [vmem:[%s4975_s0 + $0x88] sm:$0xff]  ;;  %v49_v2 = vld [vmem:[%s4974_s1 + $0x90] sm:$0xff]  ;;  %v581_v4 = vld [vmem:[%s4974_s1 + $0x298] sm:$0xff] }
  0x16   :  { %2700 = vmatprep.subr.mxu1 %v90_v21  ;;  %131 = vmatprep.subr.mxu0 %v90_v21  ;;  %v52_v58 = vld [vmem:[%s4974_s1 + $0xa8] sm:$0xff]  ;;  %v580_v6 = vld [vmem:[%s4974_s1 + $0x290] sm:$0xff]  ;;  %v47_v7 = vld [vmem:[%s4974_s1 + $0x80] sm:$0xff] }
  0x17   :  { %2716 = vmatpush1.msra.mxu1 %v89_v22  ;;  %132 = vmatpush1.msra.mxu0 %v89_v22  ;;  %v583_v61 = vld [vmem:[%s4974_s1 + $0x2a8] sm:$0xff]  ;;  %v46_v10 = vld [vmem:[%s4974_s1 + $0x78] sm:$0xff]  ;;  %v578_v11 = vld [vmem:[%s4974_s1 + $0x280] sm:$0xff] }
  0x18   :  { %2701 = vmatprep.subr.mxu1 %v88_v23  ;;  %133 = vmatprep.subr.mxu0 %v88_v23  ;;  %v74_v62 = vld [vmem:[%s4975_s0 + $0x308] sm:$0xff]  ;;  %v45_v13 = vld [vmem:[%s4974_s1 + $0x70] sm:$0xff]  ;;  %v577_v14 = vld [vmem:[%s4974_s1 + $0x278] sm:$0xff] }
  0x19   :  { %2717 = vmatpush1.msra.mxu1 %v87_v24  ;;  %134 = vmatpush1.msra.mxu0 %v87_v24  ;;  %v66_v1 = vld [vmem:[%s4975_s0 + $0xc8] sm:$0xff]  ;;  %v576_v16 = vld [vmem:[%s4974_s1 + $0x270] sm:$0xff]  ;;  %v43_v17 = vld [vmem:[%s4974_s1 + $0x60] sm:$0xff] }
  0x1a   :  { %2702 = vmatprep.subr.mxu1 %v86_v25  ;;  %135 = vmatprep.subr.mxu0 %v86_v25  ;;  %v48_v5 = vld [vmem:[%s4974_s1 + $0x88] sm:$0xff]  ;;  %v42_v20 = vld [vmem:[%s4974_s1 + $0x58] sm:$0xff]  ;;  %v574_v21 = vld [vmem:[%s4974_s1 + $0x260] sm:$0xff] }
  0x1b   :  { %2718 = vmatpush1.msra.mxu1 %v85_v26  ;;  %136 = vmatpush1.msra.mxu0 %v85_v26  ;;  %v579_v8 = vld [vmem:[%s4974_s1 + $0x288] sm:$0xff]  ;;  %v41_v23 = vld [vmem:[%s4974_s1 + $0x50] sm:$0xff]  ;;  %v573_v24 = vld [vmem:[%s4974_s1 + $0x258] sm:$0xff] }
  0x1c   :  { %2703 = vmatprep.subr.mxu1 %v84_v27  ;;  %137 = vmatprep.subr.mxu0 %v84_v27  ;;  %v75_v9 = vld [vmem:[%s4975_s0 + $0x348] sm:$0xff]  ;;  %v572_v26 = vld [vmem:[%s4974_s1 + $0x250] sm:$0xff]  ;;  %v39_v27 = vld [vmem:[%s4974_s1 + $0x40] sm:$0xff] }
  0x1d   :  { %2719 = vmatpush1.msra.mxu1 %v83_v28  ;;  %138 = vmatpush1.msra.mxu0 %v83_v28  ;;  %v67_v12 = vld [vmem:[%s4975_s0 + $0x108] sm:$0xff] }
  0x1e   :  { %2704 = vmatprep.subr.mxu1 %v82_v29  ;;  %139 = vmatprep.subr.mxu0 %v82_v29  ;;  %v44_v15 = vld [vmem:[%s4974_s1 + $0x68] sm:$0xff] }
  0x1f   :  { %2720 = vmatpush1.msra.mxu1 %v81_v30  ;;  %140 = vmatpush1.msra.mxu0 %v81_v30  ;;  %v575_v18 = vld [vmem:[%s4974_s1 + $0x268] sm:$0xff]  ;;  %v38_v30 = vld [vmem:[%s4974_s1 + $0x38] sm:$0xff] }
  0x20   :  { %2705 = vmatprep.subr.mxu1 %v80_v31  ;;  %141 = vmatprep.subr.mxu0 %v80_v31  ;;  %v76_v19 = vld [vmem:[%s4975_s0 + $0x388] sm:$0xff]  ;;  %v570_v31 = vld [vmem:[%s4974_s1 + $0x240] sm:$0xff] }
  0x21   :  { %2721 = vmatpush1.msra.mxu1 %v79_v32  ;;  %142 = vmatpush1.msra.mxu0 %v79_v32  ;;  %v68_v22 = vld [vmem:[%s4975_s0 + $0x148] sm:$0xff] }
  0x22   :  { %224 = vmatmul.mubr.f32.vlgmr.msra.gmra.mxu1 %v71_v33  ;;  %272 = vmatprep.subr.mxu1 %v62_v34  ;;  %v40_v25 = vld [vmem:[%s4974_s1 + $0x48] sm:$0xff]  ;;  %v37_v33 = vld [vmem:[%s4974_s1 + $0x30] sm:$0xff]  ;;  %v569_v34 = vld [vmem:[%s4974_s1 + $0x238] sm:$0xff] }
  0x23   :  { %176 = vmatmul.mubr.f32.vlgmr.msra.gmra.mxu0 %v63_v35  ;;  %273 = vmatpush1.msra.mxu1 %v61_v36  ;;  %v571_v28 = vld [vmem:[%s4974_s1 + $0x248] sm:$0xff]  ;;  %v568_v36 = vld [vmem:[%s4974_s1 + $0x230] sm:$0xff] }
  0x24   :  { %594 = vmatprep.subr.mxu0 %v593_v37  ;;  %274 = vmatprep.subr.mxu1 %v60_v38  ;;  %v77_v29 = vld [vmem:[%s4975_s0 + $0x3c8] sm:$0xff]  ;;  %v35_v37 = vld [vmem:[%s4974_s1 + $0x20] sm:$0xff] }
  0x25   :  { %595 = vmatpush1.msra.mxu0 %v592_v39  ;;  %229 = vmatprep.mubr.f32.mxu1 %v2730_v3  ;;  %v69_v32 = vld [vmem:[%s4975_s0 + $0x188] sm:$0xff] }
  0x26   :  { %275 = vmatpush1.msra.mxu1 %v59_v40  ;;  %596 = vmatprep.subr.mxu0 %v591_v41  ;;  %v36_v35 = vld [vmem:[%s4974_s1 + $0x28] sm:$0xff]  ;;  %v34_v40 = vld [vmem:[%s4974_s1 + $0x18] sm:$0xff]  ;;  %v566_v41 = vld [vmem:[%s4974_s1 + $0x220] sm:$0xff] }
  0x27   :  { %181 = vmatprep.mubr.f32.mxu0 %v2730_v3  ;;  %230 = vmatmul.mubr.f32.gmra.mxu1 %v72_v42  ;;  %v567_v38 = vld [vmem:[%s4974_s1 + $0x228] sm:$0xff]  ;;  %v433_v42 = vld [vmem:[%s4975_s0] sm:$0xfe] }
  0x28   :  { %276 = vmatprep.subr.mxu1 %v58_v43  ;;  %597 = vmatpush1.msra.mxu0 %v590_v44  ;;  %v78_v39 = vld [vmem:[%s4975_s0 + $0x408] sm:$0xff]  ;;  %v434_v43 = vld [vmem:[%s4975_s0 + $0x20] sm:$0x1] }
  0x29   :  { %182 = vmatmul.mubr.f32.gmra.mxu0 %v64_v45  ;;  %277 = vmatpush1.msra.mxu1 %v57_v46  ;;  %v70_v44 = vld [vmem:[%s4975_s0 + $0x1c8] sm:$0xff]  ;;  %v33_v45 = vld [vmem:[%s4974_s1 + $0x10] sm:$0xff]  ;;  %v565_v46 = vld [vmem:[%s4974_s1 + $0x218] sm:$0xff] }
  0x2a   :  { %598 = vmatprep.subr.mxu0 %v589_v47  ;;  %278 = vmatprep.subr.mxu1 %v56_v48  ;;  %v32_v47 = vld [vmem:[%s4974_s1 + $0x8] sm:$0xff]  ;;  %v564_v48 = vld [vmem:[%s4974_s1 + $0x210] sm:$0xff] }
  0x2b   :  { %599 = vmatpush1.msra.mxu0 %v588_v49  ;;  %235 = vmatprep.mubr.f32.mxu1 %v2730_v3  ;;  %v31_v49 = vld [vmem:[%s4974_s1] sm:$0xff] }
  0x2c   :  { %279 = vmatpush1.msra.mxu1 %v55_v50  ;;  %600 = vmatprep.subr.mxu0 %v587_v51  ;;  %v498_v50 = vrot.slane %v433_v42, 1  ;;  %v499_v51 = vrot.slane %v434_v43, 1  ;;  %v1066_v42 = vld [vmem:[%s4974_s1 + $0x4b0] sm:$0xff]  ;;  %v3251_v43 = vld [vmem:[%s4975_s0 + $0x140] sm:$0xff] }
  0x2d   :  { %187 = vmatprep.mubr.f32.mxu0 %v2730_v3  ;;  %236 = vmatmul.mubr.f32.gmra.mxu1 %v73_v52  ;;  %v563_v52 = vld [vmem:[%s4974_s1 + $0x208] sm:$0xff] }
  0x2e   :  { %280 = vmatprep.subr.mxu1 %v54_v53  ;;  %601 = vmatpush1.msra.mxu0 %v586_v54  ;;  %v435_v53 = vld [vmem:[%s4975_s0 + $0x40] sm:$0xfe]  ;;  %v436_v54 = vld [vmem:[%s4975_s0 + $0x60] sm:$0x1] }
  0x2f   :  { %188 = vmatmul.mubr.f32.gmra.mxu0 %v65_v55  ;;  %281 = vmatpush1.msra.mxu1 %v53_v56  ;;  %v15_v55 = vld [vmem:[%s4975_s0] sm:$0xff] }
  0x30   :  { %602 = vmatprep.subr.mxu0 %v585_v57  ;;  %282 = vmatprep.subr.mxu1 %v52_v58  ;;  %v562_v56 = vld [vmem:[%s4974_s1 + $0x200] sm:$0xff]  ;;  %v834_v57 = vld [vmem:[%s4974_s1 + $0x3f8] sm:$0xff]  ;;  %v500_v58 = vsel %vm497_vm0, %v498_v50, %v499_v51 }
  0x31   :  { %603 = vmatpush1.msra.mxu0 %v584_v59  ;;  %241 = vmatprep.mubr.f32.mxu1 %v2730_v3  ;;  %v833_v59 = vld [vmem:[%s4974_s1 + $0x3f0] sm:$0xff]  ;;  %v447_v50 = vld [vmem:[%s4975_s0 + $0x1c0] sm:$0xfe]  ;;  %v448_v51 = vld [vmem:[%s4975_s0 + $0x1e0] sm:$0x1] }
  0x32   :  { %283 = vmatpush1.msra.mxu1 %v51_v60  ;;  %604 = vmatprep.subr.mxu0 %v583_v61  ;;  %v501_v60 = vrot.slane %v435_v53, 1  ;;  %v502_v61 = vrot.slane %v436_v54, 1  ;;  %v21_v53 = vld [vmem:[%s4975_s0 + $0x180] sm:$0xff]  ;;  %v822_v54 = vld [vmem:[%s4974_s1 + $0x398] sm:$0xff] }
  0x33   :  { %193 = vmatprep.mubr.f32.mxu0 %v2730_v3  ;;  %242 = vmatmul.mubr.f32.gmra.mxu1 %v74_v62  ;;  %v1075_v62 = vld [vmem:[%s4974_s1 + $0x4f8] sm:$0xff] }
  0x34   :  { %284 = vmatprep.subr.mxu1 %v50_v63  ;;  %605 = vmatpush1.msra.mxu0 %v582_v0  ;;  %v437_v63 = vld [vmem:[%s4975_s0 + $0x80] sm:$0xfe]  ;;  %v438_v0 = vld [vmem:[%s4975_s0 + $0xa0] sm:$0x1] }
  0x35   :  { %194 = vmatmul.mubr.f32.gmra.mxu0 %v66_v1  ;;  %285 = vmatpush1.msra.mxu1 %v49_v2  ;;  %v1074_v1 = vld [vmem:[%s4974_s1 + $0x4f0] sm:$0xff]  ;;  %v16_v2 = vld [vmem:[%s4975_s0 + $0x40] sm:$0xff] }
  0x36   :  { %606 = vmatprep.subr.mxu0 %v581_v4  ;;  %286 = vmatprep.subr.mxu1 %v48_v5  ;;  %v832_v4 = vld [vmem:[%s4974_s1 + $0x3e8] sm:$0xff]  ;;  %v503_v5 = vsel %vm497_vm0, %v501_v60, %v502_v61  ;;  %v449_v60 = vld [vmem:[%s4975_s0 + $0x240] sm:$0xfe]  ;;  %v450_v61 = vld [vmem:[%s4975_s0 + $0x260] sm:$0x1] }
  0x37   :  { %607 = vmatpush1.msra.mxu0 %v580_v6  ;;  %247 = vmatprep.mubr.f32.mxu1 %v2730_v3  ;;  %v831_v6 = vld [vmem:[%s4974_s1 + $0x3e0] sm:$0xff] }
  0x38   :  { %287 = vmatpush1.msra.mxu1 %v47_v7  ;;  %608 = vmatprep.subr.mxu0 %v579_v8  ;;  %v504_v7 = vrot.slane %v437_v63, 1  ;;  %v505_v8 = vrot.slane %v438_v0, 1  ;;  %v22_v63 = vld [vmem:[%s4975_s0 + $0x1c0] sm:$0xff]  ;;  %v820_v0 = vld [vmem:[%s4974_s1 + $0x388] sm:$0xff] }
  0x39   :  { %199 = vmatprep.mubr.f32.mxu0 %v2730_v3  ;;  %248 = vmatmul.mubr.f32.gmra.mxu1 %v75_v9  ;;  %v1073_v9 = vld [vmem:[%s4974_s1 + $0x4e8] sm:$0xff] }
  0x3a   :  { %288 = vmatprep.subr.mxu1 %v46_v10  ;;  %609 = vmatpush1.msra.mxu0 %v578_v11  ;;  %v439_v10 = vld [vmem:[%s4975_s0 + $0xc0] sm:$0xfe]  ;;  %v440_v11 = vld [vmem:[%s4975_s0 + $0xe0] sm:$0x1] }
  0x3b   :  { %200 = vmatmul.mubr.f32.gmra.mxu0 %v67_v12  ;;  %289 = vmatpush1.msra.mxu1 %v45_v13  ;;  %v1072_v12 = vld [vmem:[%s4974_s1 + $0x4e0] sm:$0xff] }
  0x3c   :  { %610 = vmatprep.subr.mxu0 %v577_v14  ;;  %290 = vmatprep.subr.mxu1 %v44_v15  ;;  %v17_v13 = vld [vmem:[%s4975_s0 + $0x80] sm:$0xff]  ;;  %v830_v14 = vld [vmem:[%s4974_s1 + $0x3d8] sm:$0xff]  ;;  %v506_v15 = vsel %vm497_vm0, %v504_v7, %v505_v8 }
  0x3d   :  { %611 = vmatpush1.msra.mxu0 %v576_v16  ;;  %253 = vmatprep.mubr.f32.mxu1 %v2730_v3  ;;  %v829_v16 = vld [vmem:[%s4974_s1 + $0x3d0] sm:$0xff]  ;;  %v451_v7 = vld [vmem:[%s4975_s0 + $0x280] sm:$0xfe]  ;;  %v452_v8 = vld [vmem:[%s4975_s0 + $0x2a0] sm:$0x1] }
  0x3e   :  { %291 = vmatpush1.msra.mxu1 %v43_v17  ;;  %612 = vmatprep.subr.mxu0 %v575_v18  ;;  %v507_v17 = vrot.slane %v439_v10, 1  ;;  %v508_v18 = vrot.slane %v440_v11, 1  ;;  %v23_v10 = vld [vmem:[%s4975_s0 + $0x240] sm:$0xff]  ;;  %v818_v11 = vld [vmem:[%s4974_s1 + $0x378] sm:$0xff] }
  0x3f   :  { %205 = vmatprep.mubr.f32.mxu0 %v2730_v3  ;;  %254 = vmatmul.mubr.f32.gmra.mxu1 %v76_v19  ;;  %v1071_v19 = vld [vmem:[%s4974_s1 + $0x4d8] sm:$0xff] }
  0x40   :  { %292 = vmatprep.subr.mxu1 %v42_v20  ;;  %613 = vmatpush1.msra.mxu0 %v574_v21  ;;  %v441_v20 = vld [vmem:[%s4975_s0 + $0x100] sm:$0xfe]  ;;  %v442_v21 = vld [vmem:[%s4975_s0 + $0x120] sm:$0x1] }
  0x41   :  { %206 = vmatmul.mubr.f32.gmra.mxu0 %v68_v22  ;;  %293 = vmatpush1.msra.mxu1 %v41_v23  ;;  %v1070_v22 = vld [vmem:[%s4974_s1 + $0x4d0] sm:$0xff]  ;;  %v18_v23 = vld [vmem:[%s4975_s0 + $0xc0] sm:$0xff] }
  0x42   :  { %614 = vmatprep.subr.mxu0 %v573_v24  ;;  %294 = vmatprep.subr.mxu1 %v40_v25  ;;  %v828_v24 = vld [vmem:[%s4974_s1 + $0x3c8] sm:$0xff]  ;;  %v509_v25 = vsel %vm497_vm0, %v507_v17, %v508_v18  ;;  %v453_v17 = vld [vmem:[%s4975_s0 + $0x2c0] sm:$0xfe]  ;;  %v454_v18 = vld [vmem:[%s4975_s0 + $0x2e0] sm:$0x1] }
  0x43   :  { %615 = vmatpush1.msra.mxu0 %v572_v26  ;;  %259 = vmatprep.mubr.f32.mxu1 %v2730_v3  ;;  %v827_v26 = vld [vmem:[%s4974_s1 + $0x3c0] sm:$0xff] }
  0x44   :  { %295 = vmatpush1.msra.mxu1 %v39_v27  ;;  %616 = vmatprep.subr.mxu0 %v571_v28  ;;  %v510_v27 = vrot.slane %v441_v20, 1  ;;  %v511_v28 = vrot.slane %v442_v21, 1  ;;  %v24_v20 = vld [vmem:[%s4975_s0 + $0x280] sm:$0xff]  ;;  %v816_v21 = vld [vmem:[%s4974_s1 + $0x368] sm:$0xff] }
  0x45   :  { %211 = vmatprep.mubr.f32.mxu0 %v2730_v3  ;;  %260 = vmatmul.mubr.f32.gmra.mxu1 %v77_v29  ;;  %v1069_v29 = vld [vmem:[%s4974_s1 + $0x4c8] sm:$0xff] }
  0x46   :  { %296 = vmatprep.subr.mxu1 %v38_v30  ;;  %617 = vmatpush1.msra.mxu0 %v570_v31  ;;  %v443_v30 = vld [vmem:[%s4975_s0 + $0x140] sm:$0xfe]  ;;  %v444_v31 = vld [vmem:[%s4975_s0 + $0x160] sm:$0x1] }
  0x47   :  { %212 = vmatmul.mubr.f32.gmra.mxu0 %v69_v32  ;;  %297 = vmatpush1.msra.mxu1 %v37_v33  ;;  %v1068_v32 = vld [vmem:[%s4974_s1 + $0x4c0] sm:$0xff] }
  0x48   :  { %618 = vmatprep.subr.mxu0 %v569_v34  ;;  %298 = vmatprep.subr.mxu1 %v36_v35  ;;  %v3224_v33 = vld [vmem:[%s4975_s0 + $0x100] sm:$0xff]  ;;  %v826_v34 = vld [vmem:[%s4974_s1 + $0x3b8] sm:$0xff]  ;;  %v512_v35 = vsel %vm497_vm0, %v510_v27, %v511_v28 }
  0x49   :  { %619 = vmatpush1.msra.mxu0 %v568_v36  ;;  %265 = vmatprep.mubr.f32.mxu1 %v2730_v3  ;;  %v825_v36 = vld [vmem:[%s4974_s1 + $0x3b0] sm:$0xff]  ;;  %v455_v27 = vld [vmem:[%s4975_s0 + $0x300] sm:$0xfe]  ;;  %v456_v28 = vld [vmem:[%s4975_s0 + $0x320] sm:$0x1] }
  0x4a   :  { %299 = vmatpush1.msra.mxu1 %v35_v37  ;;  %620 = vmatprep.subr.mxu0 %v567_v38  ;;  %v513_v37 = vrot.slane %v443_v30, 1  ;;  %v514_v38 = vrot.slane %v444_v31, 1  ;;  %v25_v30 = vld [vmem:[%s4975_s0 + $0x2c0] sm:$0xff]  ;;  %v814_v31 = vld [vmem:[%s4974_s1 + $0x358] sm:$0xff] }
  0x4b   :  { %217 = vmatprep.mubr.f32.mxu0 %v2730_v3  ;;  %266 = vmatmul.mubr.f32.gmra.mxu1 %v78_v39  ;;  %v1067_v39 = vld [vmem:[%s4974_s1 + $0x4b8] sm:$0xff] }
  0x4c   :  { %300 = vmatprep.subr.mxu1 %v34_v40  ;;  %621 = vmatpush1.msra.mxu0 %v566_v41  ;;  %v445_v40 = vld [vmem:[%s4975_s0 + $0x180] sm:$0xfe]  ;;  %v446_v41 = vld [vmem:[%s4975_s0 + $0x1a0] sm:$0x1] }
  0x4d   :  { %218 = vmatmul.mubr.f32.gmra.mxu0 %v70_v44  ;;  %301 = vmatpush1.msra.mxu1 %v33_v45  ;;  %v824_v44 = vld [vmem:[%s4974_s1 + $0x3a8] sm:$0xff]  ;;  %v515_v45 = vsel %vm497_vm0, %v513_v37, %v514_v38  ;;  %v1055_v37 = vld [vmem:[%s4974_s1 + $0x458] sm:$0xff]  ;;  %v457_v38 = vld [vmem:[%s4975_s0 + $0x340] sm:$0xfe] }
  0x4e   :  { %622 = vmatprep.subr.mxu0 %v565_v46  ;;  %302 = vmatprep.subr.mxu1 %v32_v47  ;;  %v823_v46 = vld [vmem:[%s4974_s1 + $0x3a0] sm:$0xff]  ;;  %v516_v47 = vrot.slane %v445_v40, 1  ;;  %v1054_v40 = vld [vmem:[%s4974_s1 + $0x450] sm:$0xff] }
  0x4f   :  { %623 = vmatpush1.msra.mxu0 %v564_v48  ;;  %303 = vmatpush1.msra.mxu1 %v31_v49  ;;  %v517_v48 = vrot.slane %v446_v41, 1  ;;  %v1065_v49 = vld [vmem:[%s4974_s1 + $0x4a8] sm:$0xff]  ;;  %v26_v41 = vld [vmem:[%s4975_s0 + $0x300] sm:$0xff] }
  0x50   :  { %336 = vmatprep.mubr.f32.mxu1 %v2730_v3  ;;  %624 = vmatprep.subr.mxu0 %v563_v52  ;;  %v1064_v52 = vld [vmem:[%s4974_s1 + $0x4a0] sm:$0xff] }
  0x51   :  { %337 = vmatmul.mubr.f32.vlgmr.msra.gmra.mxu1 %v15_v55  ;;  %625 = vmatpush1.msra.mxu0 %v562_v56  ;;  %v518_v55 = vsel %vm497_vm0, %v516_v47, %v517_v48  ;;  %v821_v56 = vld [vmem:[%s4974_s1 + $0x390] sm:$0xff]  ;;  %v1053_v48 = vld [vmem:[%s4974_s1 + $0x448] sm:$0xff] }
  0x52   :  { %658 = vmatprep.mubr.f32.mxu0 %v2730_v3  ;;  %835 = vmatprep.subr.mxu1 %v834_v57  ;;  %v519_v57 = vrot.slane %v447_v50, 1  ;;  %v460_v50 = vld [vmem:[%s4975_s0 + $0x3a0] sm:$0x1] }
  0x53   :  { %659 = vmatmul.mubr.f32.vlgmr.msra.gmra.mxu0 %v500_v58  ;;  %836 = vmatpush1.msra.mxu1 %v833_v59  ;;  %v520_v58 = vrot.slane %v448_v51, 1  ;;  %v1063_v59 = vld [vmem:[%s4974_s1 + $0x498] sm:$0xff]  ;;  %v1052_v51 = vld [vmem:[%s4974_s1 + $0x440] sm:$0xff] }
  0x54   :  { %1076 = vmatprep.subr.mxu0 %v1075_v62  ;;  %342 = vmatprep.mubr.f32.mxu1 %v2730_v3  ;;  %v1062_v62 = vld [vmem:[%s4974_s1 + $0x490] sm:$0xff] }
  0x55   :  { %1077 = vmatpush1.msra.mxu0 %v1074_v1  ;;  %343 = vmatmul.mubr.f32.gmra.mxu1 %v16_v2  ;;  %v521_v1 = vsel %vm497_vm0, %v519_v57, %v520_v58  ;;  %v819_v2 = vld [vmem:[%s4974_s1 + $0x380] sm:$0xff]  ;;  %v538_v57 = vrot.slane %v460_v50, 1  ;;  %v1051_v58 = vld [vmem:[%s4974_s1 + $0x438] sm:$0xff] }
  0x56   :  { %664 = vmatprep.mubr.f32.mxu0 %v2730_v3  ;;  %837 = vmatprep.subr.mxu1 %v832_v4  ;;  %v522_v4 = vrot.slane %v449_v60, 1  ;;  %v462_v60 = vld [vmem:[%s4975_s0 + $0x3e0] sm:$0x1]  ;;  %v1420_v50 = vld [vmem:[%s4974_s1 + $0x5b8] sm:$0xff] }
  0x57   :  { %665 = vmatmul.mubr.f32.gmra.mxu0 %v503_v5  ;;  %838 = vmatpush1.msra.mxu1 %v831_v6  ;;  %v523_v5 = vrot.slane %v450_v61, 1  ;;  %v1061_v6 = vld [vmem:[%s4974_s1 + $0x488] sm:$0xff]  ;;  %v1050_v61 = vld [vmem:[%s4974_s1 + $0x430] sm:$0xff] }
  0x58   :  { %1078 = vmatprep.subr.mxu0 %v1073_v9  ;;  %348 = vmatprep.mubr.f32.mxu1 %v2730_v3  ;;  %v1060_v9 = vld [vmem:[%s4974_s1 + $0x480] sm:$0xff] }
  0x59   :  { %1079 = vmatpush1.msra.mxu0 %v1072_v12  ;;  %349 = vmatmul.mubr.f32.gmra.mxu1 %v17_v13  ;;  %v524_v12 = vsel %vm497_vm0, %v522_v4, %v523_v5  ;;  %v817_v13 = vld [vmem:[%s4974_s1 + $0x370] sm:$0xff]  ;;  %v541_v4 = vrot.slane %v462_v60, 1  ;;  %v1049_v5 = vld [vmem:[%s4974_s1 + $0x428] sm:$0xff]  ;;  %v1659_v60 = vld [vmem:[%s4974_s1 + $0x6a0] sm:$0xff] }
  0x5a   :  { %670 = vmatprep.mubr.f32.mxu0 %v2730_v3  ;;  %839 = vmatprep.subr.mxu1 %v830_v14  ;;  %v525_v14 = vrot.slane %v451_v7, 1  ;;  %v464_v7 = vld [vmem:[%s4975_s0 + $0x420] sm:$0x1] }
  0x5b   :  { %671 = vmatmul.mubr.f32.gmra.mxu0 %v506_v15  ;;  %840 = vmatpush1.msra.mxu1 %v829_v16  ;;  %v526_v15 = vrot.slane %v452_v8, 1  ;;  %v1059_v16 = vld [vmem:[%s4974_s1 + $0x478] sm:$0xff]  ;;  %v1048_v8 = vld [vmem:[%s4974_s1 + $0x420] sm:$0xff] }
  0x5c   :  { %1080 = vmatprep.subr.mxu0 %v1071_v19  ;;  %354 = vmatprep.mubr.f32.mxu1 %v2730_v3  ;;  %v1058_v19 = vld [vmem:[%s4974_s1 + $0x470] sm:$0xff] }
  0x5d   :  { %1081 = vmatpush1.msra.mxu0 %v1070_v22  ;;  %355 = vmatmul.mubr.f32.gmra.mxu1 %v18_v23  ;;  %v527_v22 = vsel %vm497_vm0, %v525_v14, %v526_v15  ;;  %v815_v23 = vld [vmem:[%s4974_s1 + $0x360] sm:$0xff]  ;;  %v544_v14 = vrot.slane %v464_v7, 1  ;;  %v1047_v15 = vld [vmem:[%s4974_s1 + $0x418] sm:$0xff] }
  0x5e   :  { %676 = vmatprep.mubr.f32.mxu0 %v2730_v3  ;;  %841 = vmatprep.subr.mxu1 %v828_v24  ;;  %v528_v24 = vrot.slane %v453_v17, 1  ;;  %v30_v17 = vld [vmem:[%s4975_s0 + $0x400] sm:$0xff] }
  0x5f   :  { %677 = vmatmul.mubr.f32.gmra.mxu0 %v509_v25  ;;  %842 = vmatpush1.msra.mxu1 %v827_v26  ;;  %v529_v25 = vrot.slane %v454_v18, 1  ;;  %v1057_v26 = vld [vmem:[%s4974_s1 + $0x468] sm:$0xff]  ;;  %v1413_v7 = vld [vmem:[%s4974_s1 + $0x580] sm:$0xff] }
  0x60   :  { %1082 = vmatprep.subr.mxu0 %v1069_v29  ;;  %360 = vmatprep.mubr.f32.mxu1 %v2730_v3  ;;  %v1056_v29 = vld [vmem:[%s4974_s1 + $0x460] sm:$0xff]  ;;  %v804_v18 = vld [vmem:[%s4974_s1 + $0x308] sm:$0xff] }
  0x61   :  { %1083 = vmatpush1.msra.mxu0 %v1068_v32  ;;  %361 = vmatmul.mubr.f32.gmra.mxu1 %v3224_v33  ;;  %v530_v32 = vsel %vm497_vm0, %v528_v24, %v529_v25  ;;  %v1428_v24 = vld [vmem:[%s4974_s1 + $0x5f8] sm:$0xff] }
  0x62   :  { %682 = vmatprep.mubr.f32.mxu0 %v2730_v3  ;;  %843 = vmatprep.subr.mxu1 %v826_v34  ;;  %v813_v34 = vld [vmem:[%s4974_s1 + $0x350] sm:$0xff]  ;;  %v1028_v25 = vld [vmem:[%s4975_s0 + $0x18] sm:$0xff] }
  0x63   :  { %683 = vmatmul.mubr.f32.gmra.mxu0 %v512_v35  ;;  %844 = vmatpush1.msra.mxu1 %v825_v36  ;;  %v531_v35 = vrot.slane %v455_v27, 1  ;;  %v532_v36 = vrot.slane %v456_v28, 1  ;;  %v1670_v27 = vld [vmem:[%s4974_s1 + $0x6f8] sm:$0xff]  ;;  %v1669_v28 = vld [vmem:[%s4974_s1 + $0x6f0] sm:$0xff] }
  0x64   :  { %1084 = vmatprep.subr.mxu0 %v1067_v39  ;;  %366 = vmatprep.mubr.f32.mxu1 %v2730_v3  ;;  %v458_v39 = vld [vmem:[%s4975_s0 + $0x360] sm:$0x1] }
  0x65   :  { %1085 = vmatpush1.msra.mxu0 %v1066_v42  ;;  %367 = vmatmul.mubr.f32.gmra.mxu1 %v3251_v43  ;;  %v812_v42 = vld [vmem:[%s4974_s1 + $0x348] sm:$0xff]  ;;  %v535_v47 = vrot.slane %v458_v39, 1  ;;  %v1423_v39 = vld [vmem:[%s4974_s1 + $0x5d0] sm:$0xff] }
  0x66   :  { %688 = vmatprep.mubr.f32.mxu0 %v2730_v3  ;;  %845 = vmatprep.subr.mxu1 %v824_v44  ;;  %v533_v44 = vsel %vm497_vm0, %v531_v35, %v532_v36  ;;  %v1667_v35 = vld [vmem:[%s4974_s1 + $0x6e0] sm:$0xff]  ;;  %v789_v36 = vld [vmem:[%s4975_s0 + $0x90] sm:$0xff] }
  0x67   :  { %689 = vmatmul.mubr.f32.gmra.mxu0 %v515_v45  ;;  %846 = vmatpush1.msra.mxu1 %v823_v46  ;;  %v811_v45 = vld [vmem:[%s4974_s1 + $0x340] sm:$0xff]  ;;  %v534_v46 = vrot.slane %v457_v38, 1  ;;  %v1030_v38 = vld [vmem:[%s4975_s0 + $0x98] sm:$0xff] }
  0x68   :  { %1086 = vmatprep.subr.mxu0 %v1065_v49  ;;  %372 = vmatprep.mubr.f32.mxu1 %v2730_v3  ;;  %v459_v49 = vld [vmem:[%s4975_s0 + $0x380] sm:$0xfe] }
  0x69   :  { %1087 = vmatpush1.msra.mxu0 %v1064_v52  ;;  %373 = vmatmul.mubr.f32.gmra.mxu1 %v21_v53  ;;  %v27_v52 = vld [vmem:[%s4975_s0 + $0x340] sm:$0xff]  ;;  %v810_v53 = vld [vmem:[%s4974_s1 + $0x338] sm:$0xff] }
  0x6a   :  { %694 = vmatprep.mubr.f32.mxu0 %v2730_v3  ;;  %847 = vmatprep.subr.mxu1 %v822_v54  ;;  %v536_v54 = vsel %vm497_vm0, %v534_v46, %v535_v47  ;;  %v1421_v46 = vld [vmem:[%s4974_s1 + $0x5c0] sm:$0xff]  ;;  %v1664_v47 = vld [vmem:[%s4974_s1 + $0x6c8] sm:$0xff] }
  0x6b   :  { %695 = vmatmul.mubr.f32.gmra.mxu0 %v518_v55  ;;  %848 = vmatpush1.msra.mxu1 %v821_v56  ;;  %v809_v55 = vld [vmem:[%s4974_s1 + $0x330] sm:$0xff]  ;;  %v537_v56 = vrot.slane %v459_v49, 1 }
  0x6c   :  { %1088 = vmatprep.subr.mxu0 %v1063_v59  ;;  %378 = vmatprep.mubr.f32.mxu1 %v2730_v3  ;;  %v461_v59 = vld [vmem:[%s4975_s0 + $0x3c0] sm:$0xfe]  ;;  %v791_v49 = vld [vmem:[%s4975_s0 + $0x110] sm:$0xff] }
  0x6d   :  { %1089 = vmatpush1.msra.mxu0 %v1062_v62  ;;  %379 = vmatmul.mubr.f32.gmra.mxu1 %v22_v63  ;;  %v28_v62 = vld [vmem:[%s4975_s0 + $0x380] sm:$0xff]  ;;  %v808_v63 = vld [vmem:[%s4974_s1 + $0x328] sm:$0xff] }
  0x6e   :  { %700 = vmatprep.mubr.f32.mxu0 %v2730_v3  ;;  %849 = vmatprep.subr.mxu1 %v820_v0  ;;  %v539_v0 = vsel %vm497_vm0, %v537_v56, %v538_v57  ;;  %v1418_v56 = vld [vmem:[%s4974_s1 + $0x5a8] sm:$0xff]  ;;  %v1033_v57 = vld [vmem:[%s4975_s0 + $0x158] sm:$0xff] }
  0x6f   :  { %701 = vmatmul.mubr.f32.gmra.mxu0 %v521_v1  ;;  %850 = vmatpush1.msra.mxu1 %v819_v2  ;;  %v807_v1 = vld [vmem:[%s4974_s1 + $0x320] sm:$0xff]  ;;  %v540_v2 = vrot.slane %v461_v59, 1  ;;  %v1660_v59 = vld [vmem:[%s4974_s1 + $0x6a8] sm:$0xff] }
  0x70   :  { %1090 = vmatprep.subr.mxu0 %v1061_v6  ;;  %384 = vmatprep.mubr.f32.mxu1 %v2730_v3  ;;  %v463_v6 = vld [vmem:[%s4975_s0 + $0x400] sm:$0xfe] }
  0x71   :  { %1091 = vmatpush1.msra.mxu0 %v1060_v9  ;;  %385 = vmatmul.mubr.f32.gmra.mxu1 %v23_v10  ;;  %v29_v9 = vld [vmem:[%s4975_s0 + $0x3c0] sm:$0xff]  ;;  %v806_v10 = vld [vmem:[%s4974_s1 + $0x318] sm:$0xff] }
  0x72   :  { %706 = vmatprep.mubr.f32.mxu0 %v2730_v3  ;;  %851 = vmatprep.subr.mxu1 %v818_v11  ;;  %v542_v11 = vsel %vm497_vm0, %v540_v2, %v541_v4  ;;  %v1657_v2 = vld [vmem:[%s4974_s1 + $0x690] sm:$0xff] }
  0x73   :  { %707 = vmatmul.mubr.f32.gmra.mxu0 %v524_v12  ;;  %852 = vmatpush1.msra.mxu1 %v817_v13  ;;  %v805_v12 = vld [vmem:[%s4974_s1 + $0x310] sm:$0xff]  ;;  %v543_v13 = vrot.slane %v463_v6, 1  ;;  %v1035_v6 = vld [vmem:[%s4975_s0 + $0x1d8] sm:$0xff] }
  0x74   :  { %1092 = vmatprep.subr.mxu0 %v1059_v16  ;;  %390 = vmatprep.mubr.f32.mxu1 %v2730_v3  ;;  %v1046_v16 = vld [vmem:[%s4974_s1 + $0x410] sm:$0xff] }
  0x75   :  { %1093 = vmatpush1.msra.mxu0 %v1058_v19  ;;  %391 = vmatmul.mubr.f32.gmra.mxu1 %v24_v20  ;;  %v545_v19 = vsel %vm497_vm0, %v543_v13, %v544_v14  ;;  %v803_v20 = vld [vmem:[%s4974_s1 + $0x300] sm:$0xff]  ;;  %v794_v4 = vld [vmem:[%s4975_s0 + $0x1d0] sm:$0xff]  ;;  %v1654_v14 = vld [vmem:[%s4974_s1 + $0x678] sm:$0xff] }
  0x76   :  { %712 = vmatprep.mubr.f32.mxu0 %v2730_v3  ;;  %853 = vmatprep.subr.mxu1 %v816_v21  ;;  %v1045_v21 = vld [vmem:[%s4974_s1 + $0x408] sm:$0xff]  ;;  %v1411_v13 = vld [vmem:[%s4974_s1 + $0x570] sm:$0xff] }
  0x77   :  { %713 = vmatmul.mubr.f32.gmra.mxu0 %v527_v22  ;;  %854 = vmatpush1.msra.mxu1 %v815_v23  ;;  %v1044_v22 = vld [vmem:[%s4974_s1 + $0x400] sm:$0xff]  ;;  %v787_v23 = vld [vmem:[%s4975_s0 + $0x10] sm:$0xff] }
  0x78   :  { %1094 = vmatprep.subr.mxu0 %v1057_v26  ;;  %396 = vmatprep.mubr.f32.mxu1 %v2730_v3  ;;  %v1427_v26 = vld [vmem:[%s4974_s1 + $0x5f0] sm:$0xff] }
  0x79   :  { %1095 = vmatpush1.msra.mxu0 %v1056_v29  ;;  %397 = vmatmul.mubr.f32.gmra.mxu1 %v25_v30  ;;  %v788_v29 = vld [vmem:[%s4975_s0 + $0x50] sm:$0xff]  ;;  %v1426_v30 = vld [vmem:[%s4974_s1 + $0x5e8] sm:$0xff] }
  0x7a   :  { %718 = vmatprep.mubr.f32.mxu0 %v2730_v3  ;;  %855 = vmatprep.subr.mxu1 %v814_v31  ;;  %v1029_v31 = vld [vmem:[%s4975_s0 + $0x58] sm:$0xff] }
  0x7b   :  { %719 = vmatmul.mubr.f32.gmra.mxu0 %v530_v32  ;;  %856 = vmatpush1.msra.mxu1 %v813_v34  ;;  %v1425_v32 = vld [vmem:[%s4974_s1 + $0x5e0] sm:$0xff]  ;;  %v1668_v34 = vld [vmem:[%s4974_s1 + $0x6e8] sm:$0xff] }
  0x7c   :  { %1096 = vmatprep.subr.mxu0 %v1055_v37  ;;  %402 = vmatprep.mubr.f32.mxu1 %v2730_v3  ;;  %v1424_v37 = vld [vmem:[%s4974_s1 + $0x5d8] sm:$0xff] }
  0x7d   :  { %1097 = vmatpush1.msra.mxu0 %v1054_v40  ;;  %403 = vmatmul.mubr.f32.gmra.mxu1 %v26_v41  ;;  %v1666_v40 = vld [vmem:[%s4974_s1 + $0x6d8] sm:$0xff]  ;;  %v1665_v41 = vld [vmem:[%s4974_s1 + $0x6d0] sm:$0xff] }
  0x7e   :  { %724 = vmatprep.mubr.f32.mxu0 %v2730_v3  ;;  %857 = vmatprep.subr.mxu1 %v812_v42  ;;  %v790_v42 = vld [vmem:[%s4975_s0 + $0xd0] sm:$0xff] }
  0x7f   :  { %725 = vmatmul.mubr.f32.gmra.mxu0 %v533_v44  ;;  %858 = vmatpush1.msra.mxu1 %v811_v45  ;;  %v1422_v44 = vld [vmem:[%s4974_s1 + $0x5c8] sm:$0xff]  ;;  %v1031_v45 = vld [vmem:[%s4975_s0 + $0xd8] sm:$0xff] }
  0x80   :  { %1098 = vmatprep.subr.mxu0 %v1053_v48  ;;  %408 = vmatprep.mubr.f32.mxu1 %v2730_v3  ;;  %v1663_v48 = vld [vmem:[%s4974_s1 + $0x6c0] sm:$0xff] }
  0x81   :  { %1099 = vmatpush1.msra.mxu0 %v1052_v51  ;;  %409 = vmatmul.mubr.f32.gmra.mxu1 %v27_v52  ;;  %v1032_v51 = vld [vmem:[%s4975_s0 + $0x118] sm:$0xff]  ;;  %v1419_v52 = vld [vmem:[%s4974_s1 + $0x5b0] sm:$0xff] }
  0x82   :  { %730 = vmatprep.mubr.f32.mxu0 %v2730_v3  ;;  %859 = vmatprep.subr.mxu1 %v810_v53  ;;  %v1662_v53 = vld [vmem:[%s4974_s1 + $0x6b8] sm:$0xff] }
  0x83   :  { %731 = vmatmul.mubr.f32.gmra.mxu0 %v536_v54  ;;  %860 = vmatpush1.msra.mxu1 %v809_v55  ;;  %v1661_v54 = vld [vmem:[%s4974_s1 + $0x6b0] sm:$0xff] }
  0x84   :  { %1100 = vmatprep.subr.mxu0 %v1051_v58  ;;  %414 = vmatprep.mubr.f32.mxu1 %v2730_v3  ;;  %v792_v55 = vld [vmem:[%s4975_s0 + $0x150] sm:$0xff]  ;;  %v1417_v58 = vld [vmem:[%s4974_s1 + $0x5a0] sm:$0xff] }
  0x85   :  { %1101 = vmatpush1.msra.mxu0 %v1050_v61  ;;  %415 = vmatmul.mubr.f32.gmra.mxu1 %v28_v62  ;;  %v793_v61 = vld [vmem:[%s4975_s0 + $0x190] sm:$0xff]  ;;  %v1416_v62 = vld [vmem:[%s4974_s1 + $0x598] sm:$0xff] }
  0x86   :  { %736 = vmatprep.mubr.f32.mxu0 %v2730_v3  ;;  %861 = vmatprep.subr.mxu1 %v808_v63  ;;  %v1034_v63 = vld [vmem:[%s4975_s0 + $0x198] sm:$0xff] }
  0x87   :  { %737 = vmatmul.mubr.f32.gmra.mxu0 %v539_v0  ;;  %862 = vmatpush1.msra.mxu1 %v807_v1  ;;  %v1415_v0 = vld [vmem:[%s4974_s1 + $0x590] sm:$0xff]  ;;  %v1658_v1 = vld [vmem:[%s4974_s1 + $0x698] sm:$0xff] }
  0x88   :  { %1102 = vmatprep.subr.mxu0 %v1049_v5  ;;  %420 = vmatprep.mubr.f32.mxu1 %v2730_v3  ;;  %v1414_v5 = vld [vmem:[%s4974_s1 + $0x588] sm:$0xff] }
  0x89   :  { %1103 = vmatpush1.msra.mxu0 %v1048_v8  ;;  %421 = vmatmul.mubr.f32.gmra.mxu1 %v29_v9  ;;  %v1656_v8 = vld [vmem:[%s4974_s1 + $0x688] sm:$0xff]  ;;  %v1655_v9 = vld [vmem:[%s4974_s1 + $0x680] sm:$0xff] }
  0x8a   :  { %742 = vmatprep.mubr.f32.mxu0 %v2730_v3  ;;  %863 = vmatprep.subr.mxu1 %v806_v10  ;;  %v795_v10 = vld [vmem:[%s4975_s0 + $0x250] sm:$0xff] }
  0x8b   :  { %743 = vmatmul.mubr.f32.gmra.mxu0 %v542_v11  ;;  %864 = vmatpush1.msra.mxu1 %v805_v12  ;;  %v1412_v11 = vld [vmem:[%s4974_s1 + $0x578] sm:$0xff] }
  0x8c   :  { %1104 = vmatprep.subr.mxu0 %v1047_v15  ;;  %426 = vmatprep.mubr.f32.mxu1 %v2730_v3  ;;  %v1036_v12 = vld [vmem:[%s4975_s0 + $0x258] sm:$0xff]  ;;  %v1653_v15 = vld [vmem:[%s4974_s1 + $0x670] sm:$0xff] }
  0x8d   :  { %1105 = vmatpush1.msra.mxu0 %v1046_v16  ;;  %427 = vmatmul.mubr.f32.gmra.mxu1 %v30_v17  ;;  %v796_v16 = vld [vmem:[%s4975_s0 + $0x290] sm:$0xff]  ;;  %v1410_v17 = vld [vmem:[%s4974_s1 + $0x568] sm:$0xff] }
  0x8e   :  { %748 = vmatprep.mubr.f32.mxu0 %v2730_v3  ;;  %865 = vmatprep.subr.mxu1 %v804_v18  ;;  %v1037_v18 = vld [vmem:[%s4975_s0 + $0x298] sm:$0xff] }
  0x8f   :  { %749 = vmatmul.mubr.f32.gmra.mxu0 %v545_v19  ;;  %866 = vmatpush1.msra.mxu1 %v803_v20  ;;  %v1409_v19 = vld [vmem:[%s4974_s1 + $0x560] sm:$0xff]  ;;  %v1652_v20 = vld [vmem:[%s4974_s1 + $0x668] sm:$0xff] }
  0x90   :  { %1106 = vmatprep.subr.mxu0 %v1045_v21  ;;  %899 = vmatprep.mubr.f32.mxu1 %v2730_v3  ;;  %v1651_v21 = vld [vmem:[%s4974_s1 + $0x660] sm:$0xff] }
  0x91   :  { %1107 = vmatpush1.msra.mxu0 %v1044_v22  ;;  %900 = vmatmul.mubr.f32.vlgmr.msra.gmra.mxu1 %v787_v23  ;;  %v797_v22 = vld [vmem:[%s4975_s0 + $0x2d0] sm:$0xff]  ;;  %v1408_v23 = vld [vmem:[%s4974_s1 + $0x558] sm:$0xff] }
  0x92   :  { %1140 = vmatprep.mubr.f32.mxu0 %v2730_v3  ;;  %1429 = vmatprep.subr.mxu1 %v1428_v24  ;;  %v1038_v24 = vld [vmem:[%s4975_s0 + $0x2d8] sm:$0xff] }
  0x93   :  { %1141 = vmatmul.mubr.f32.vlgmr.msra.gmra.mxu0 %v1028_v25  ;;  %1430 = vmatpush1.msra.mxu1 %v1427_v26  ;;  %v1407_v25 = vld [vmem:[%s4974_s1 + $0x550] sm:$0xff]  ;;  %v1650_v26 = vld [vmem:[%s4974_s1 + $0x658] sm:$0xff] }
  0x94   :  { %1671 = vmatprep.subr.mxu0 %v1670_v27  ;;  %905 = vmatprep.mubr.f32.mxu1 %v2730_v3  ;;  %v1649_v27 = vld [vmem:[%s4974_s1 + $0x650] sm:$0xff] }
  0x95   :  { %1672 = vmatpush1.msra.mxu0 %v1669_v28  ;;  %906 = vmatmul.mubr.f32.gmra.mxu1 %v788_v29  ;;  %v798_v28 = vld [vmem:[%s4975_s0 + $0x310] sm:$0xff]  ;;  %v1406_v29 = vld [vmem:[%s4974_s1 + $0x548] sm:$0xff] }
  0x96   :  { %1146 = vmatprep.mubr.f32.mxu0 %v2730_v3  ;;  %1431 = vmatprep.subr.mxu1 %v1426_v30  ;;  %v1039_v30 = vld [vmem:[%s4975_s0 + $0x318] sm:$0xff] }
  0x97   :  { %1147 = vmatmul.mubr.f32.gmra.mxu0 %v1029_v31  ;;  %1432 = vmatpush1.msra.mxu1 %v1425_v32  ;;  %v1405_v31 = vld [vmem:[%s4974_s1 + $0x540] sm:$0xff]  ;;  %v1648_v32 = vld [vmem:[%s4974_s1 + $0x648] sm:$0xff] }
  0x98   :  { %1673 = vmatprep.subr.mxu0 %v1668_v34  ;;  %911 = vmatprep.mubr.f32.mxu1 %v2730_v3  ;;  %v1647_v34 = vld [vmem:[%s4974_s1 + $0x640] sm:$0xff] }
  0x99   :  { %1674 = vmatpush1.msra.mxu0 %v1667_v35  ;;  %912 = vmatmul.mubr.f32.gmra.mxu1 %v789_v36  ;;  %v799_v35 = vld [vmem:[%s4975_s0 + $0x350] sm:$0xff]  ;;  %v1404_v36 = vld [vmem:[%s4974_s1 + $0x538] sm:$0xff] }
  0x9a   :  { %1152 = vmatprep.mubr.f32.mxu0 %v2730_v3  ;;  %1433 = vmatprep.subr.mxu1 %v1424_v37  ;;  %v1040_v37 = vld [vmem:[%s4975_s0 + $0x358] sm:$0xff] }
  0x9b   :  { %1153 = vmatmul.mubr.f32.gmra.mxu0 %v1030_v38  ;;  %1434 = vmatpush1.msra.mxu1 %v1423_v39  ;;  %v1403_v38 = vld [vmem:[%s4974_s1 + $0x530] sm:$0xff]  ;;  %v1646_v39 = vld [vmem:[%s4974_s1 + $0x638] sm:$0xff] }
  0x9c   :  { %1675 = vmatprep.subr.mxu0 %v1666_v40  ;;  %917 = vmatprep.mubr.f32.mxu1 %v2730_v3  ;;  %v1645_v40 = vld [vmem:[%s4974_s1 + $0x630] sm:$0xff] }
  0x9d   :  { %1676 = vmatpush1.msra.mxu0 %v1665_v41  ;;  %918 = vmatmul.mubr.f32.gmra.mxu1 %v790_v42  ;;  %v800_v41 = vld [vmem:[%s4975_s0 + $0x390] sm:$0xff]  ;;  %v1402_v42 = vld [vmem:[%s4974_s1 + $0x528] sm:$0xff] }
  0x9e   :  { %1158 = vmatprep.mubr.f32.mxu0 %v2730_v3  ;;  %1435 = vmatprep.subr.mxu1 %v1422_v44  ;;  %v1041_v44 = vld [vmem:[%s4975_s0 + $0x398] sm:$0xff] }
  0x9f   :  { %1159 = vmatmul.mubr.f32.gmra.mxu0 %v1031_v45  ;;  %1436 = vmatpush1.msra.mxu1 %v1421_v46  ;;  %v1401_v45 = vld [vmem:[%s4974_s1 + $0x520] sm:$0xff]  ;;  %v1644_v46 = vld [vmem:[%s4974_s1 + $0x628] sm:$0xff] }
  0xa0   :  { %1677 = vmatprep.subr.mxu0 %v1664_v47  ;;  %923 = vmatprep.mubr.f32.mxu1 %v2730_v3  ;;  %v1643_v47 = vld [vmem:[%s4974_s1 + $0x620] sm:$0xff] }
  0xa1   :  { %1678 = vmatpush1.msra.mxu0 %v1663_v48  ;;  %924 = vmatmul.mubr.f32.gmra.mxu1 %v791_v49  ;;  %v801_v48 = vld [vmem:[%s4975_s0 + $0x3d0] sm:$0xff]  ;;  %v1400_v49 = vld [vmem:[%s4974_s1 + $0x518] sm:$0xff] }
  0xa2   :  { %1164 = vmatprep.mubr.f32.mxu0 %v2730_v3  ;;  %1437 = vmatprep.subr.mxu1 %v1420_v50  ;;  %v1269_v50 = vld [vmem:[%s4975_s0 + $0x10] sm:$0xfe] }
  0xa3   :  { %1165 = vmatmul.mubr.f32.gmra.mxu0 %v1032_v51  ;;  %1438 = vmatpush1.msra.mxu1 %v1419_v52  ;;  %v1270_v51 = vld [vmem:[%s4975_s0 + $0x30] sm:$0x1]  ;;  %v1042_v52 = vld [vmem:[%s4975_s0 + $0x3d8] sm:$0xff] }
  0xa4   :  { %1679 = vmatprep.subr.mxu0 %v1662_v53  ;;  %929 = vmatprep.mubr.f32.mxu1 %v2730_v3  ;;  %v1399_v53 = vld [vmem:[%s4974_s1 + $0x510] sm:$0xff] }
  0xa5   :  { %1680 = vmatpush1.msra.mxu0 %v1661_v54  ;;  %930 = vmatmul.mubr.f32.gmra.mxu1 %v792_v55  ;;  %v1642_v54 = vld [vmem:[%s4974_s1 + $0x618] sm:$0xff]  ;;  %v1641_v55 = vld [vmem:[%s4974_s1 + $0x610] sm:$0xff] }
  0xa6   :  { %1170 = vmatprep.mubr.f32.mxu0 %v2730_v3  ;;  %1439 = vmatprep.subr.mxu1 %v1418_v56  ;;  %v802_v56 = vld [vmem:[%s4975_s0 + $0x410] sm:$0xff] }
  0xa7   :  { %1171 = vmatmul.mubr.f32.gmra.mxu0 %v1033_v57  ;;  %1440 = vmatpush1.msra.mxu1 %v1417_v58  ;;  %v1333_v57 = vrot.slane %v1269_v50, 1  ;;  %v1334_v58 = vrot.slane %v1270_v51, 1  ;;  %v2256_v50 = vld [vmem:[%s4974_s1 + $0x8b8] sm:$0xff]  ;;  %v2255_v51 = vld [vmem:[%s4974_s1 + $0x8b0] sm:$0xff] }
  0xa8   :  { %1681 = vmatprep.subr.mxu0 %v1660_v59  ;;  %935 = vmatprep.mubr.f32.mxu1 %v2730_v3  ;;  %v1398_v59 = vld [vmem:[%s4974_s1 + $0x508] sm:$0xff] }
  0xa9   :  { %1682 = vmatpush1.msra.mxu0 %v1659_v60  ;;  %936 = vmatmul.mubr.f32.gmra.mxu1 %v793_v61  ;;  %v1271_v60 = vld [vmem:[%s4975_s0 + $0x50] sm:$0xfe]  ;;  %v1272_v61 = vld [vmem:[%s4975_s0 + $0x70] sm:$0x1] }
  0xaa   :  { %1176 = vmatprep.mubr.f32.mxu0 %v2730_v3  ;;  %1441 = vmatprep.subr.mxu1 %v1416_v62  ;;  %v1043_v62 = vld [vmem:[%s4975_s0 + $0x418] sm:$0xff] }
  0xab   :  { %1177 = vmatmul.mubr.f32.gmra.mxu0 %v1034_v63  ;;  %1442 = vmatpush1.msra.mxu1 %v1415_v0  ;;  %v1397_v63 = vld [vmem:[%s4974_s1 + $0x500] sm:$0xff]  ;;  %v1640_v0 = vld [vmem:[%s4974_s1 + $0x608] sm:$0xff] }
  0xac   :  { %1683 = vmatprep.subr.mxu0 %v1658_v1  ;;  %941 = vmatprep.mubr.f32.mxu1 %v2730_v3  ;;  %v1639_v1 = vld [vmem:[%s4974_s1 + $0x600] sm:$0xff] }
  0xad   :  { %1684 = vmatpush1.msra.mxu0 %v1657_v2  ;;  %942 = vmatmul.mubr.f32.gmra.mxu1 %v794_v4  ;;  %v1335_v2 = vsel %vm497_vm0, %v1333_v57, %v1334_v58  ;;  %v1336_v4 = vrot.slane %v1271_v60, 1  ;;  %v1283_v57 = vld [vmem:[%s4975_s0 + $0x1d0] sm:$0xfe]  ;;  %v1284_v58 = vld [vmem:[%s4975_s0 + $0x1f0] sm:$0x1] }
  0xae   :  { %1182 = vmatprep.mubr.f32.mxu0 %v2730_v3  ;;  %1443 = vmatprep.subr.mxu1 %v1414_v5  ;;  %v1337_v5 = vrot.slane %v1272_v61, 1  ;;  %v2254_v61 = vld [vmem:[%s4974_s1 + $0x8a8] sm:$0xff] }
  0xaf   :  { %1183 = vmatmul.mubr.f32.gmra.mxu0 %v1035_v6  ;;  %1444 = vmatpush1.msra.mxu1 %v1413_v7  ;;  %v1911_v6 = vld [vmem:[%s4974_s1 + $0x7f8] sm:$0xff]  ;;  %v1273_v7 = vld [vmem:[%s4975_s0 + $0x90] sm:$0xfe] }
  0xb0   :  { %1685 = vmatprep.subr.mxu0 %v1656_v8  ;;  %947 = vmatprep.mubr.f32.mxu1 %v2730_v3  ;;  %v1274_v8 = vld [vmem:[%s4975_s0 + $0xb0] sm:$0x1] }
  0xb1   :  { %1686 = vmatpush1.msra.mxu0 %v1655_v9  ;;  %948 = vmatmul.mubr.f32.gmra.mxu1 %v795_v10  ;;  %v1910_v9 = vld [vmem:[%s4974_s1 + $0x7f0] sm:$0xff]  ;;  %v2264_v10 = vld [vmem:[%s4974_s1 + $0x8f8] sm:$0xff] }
  0xb2   :  { %1188 = vmatprep.mubr.f32.mxu0 %v2730_v3  ;;  %1445 = vmatprep.subr.mxu1 %v1412_v11  ;;  %v2263_v11 = vld [vmem:[%s4974_s1 + $0x8f0] sm:$0xff] }
  0xb3   :  { %1189 = vmatmul.mubr.f32.gmra.mxu0 %v1036_v12  ;;  %1446 = vmatpush1.msra.mxu1 %v1411_v13  ;;  %v1338_v12 = vsel %vm497_vm0, %v1336_v4, %v1337_v5  ;;  %v1339_v13 = vrot.slane %v1273_v7, 1  ;;  %v2726_v4 = vld [vmem:[%s4975_s0 + $0x180] sm:$0xff]  ;;  %v1899_v5 = vld [vmem:[%s4974_s1 + $0x798] sm:$0xff]  ;;  %v1286_v7 = vld [vmem:[%s4975_s0 + $0x270] sm:$0x1] }
  0xb4   :  { %1687 = vmatprep.subr.mxu0 %v1654_v14  ;;  %953 = vmatprep.mubr.f32.mxu1 %v2730_v3  ;;  %v1340_v14 = vrot.slane %v1274_v8, 1 }
  0xb5   :  { %1688 = vmatpush1.msra.mxu0 %v1653_v15  ;;  %954 = vmatmul.mubr.f32.gmra.mxu1 %v796_v16  ;;  %v2723_v15 = vld [vmem:[%s4975_s0 + $0x40] sm:$0xff]  ;;  %v1909_v16 = vld [vmem:[%s4974_s1 + $0x7e8] sm:$0xff] }
  0xb6   :  { %1194 = vmatprep.mubr.f32.mxu0 %v2730_v3  ;;  %1447 = vmatprep.subr.mxu1 %v1410_v17  ;;  %v1275_v17 = vld [vmem:[%s4975_s0 + $0xd0] sm:$0xfe] }
  0xb7   :  { %1195 = vmatmul.mubr.f32.gmra.mxu0 %v1037_v18  ;;  %1448 = vmatpush1.msra.mxu1 %v1409_v19  ;;  %v1276_v18 = vld [vmem:[%s4975_s0 + $0xf0] sm:$0x1]  ;;  %v1908_v19 = vld [vmem:[%s4974_s1 + $0x7e0] sm:$0xff] }
  0xb8   :  { %1689 = vmatprep.subr.mxu0 %v1652_v20  ;;  %959 = vmatprep.mubr.f32.mxu1 %v2730_v3  ;;  %v2262_v20 = vld [vmem:[%s4974_s1 + $0x8e8] sm:$0xff] }
  0xb9   :  { %1690 = vmatpush1.msra.mxu0 %v1651_v21  ;;  %960 = vmatmul.mubr.f32.gmra.mxu1 %v797_v22  ;;  %v2261_v21 = vld [vmem:[%s4974_s1 + $0x8e0] sm:$0xff]  ;;  %v1341_v22 = vsel %vm497_vm0, %v1339_v13, %v1340_v14  ;;  %v2251_v13 = vld [vmem:[%s4974_s1 + $0x890] sm:$0xff] }
  0xba   :  { %1200 = vmatprep.mubr.f32.mxu0 %v2730_v3  ;;  %1449 = vmatprep.subr.mxu1 %v1408_v23  ;;  %v1342_v23 = vrot.slane %v1275_v17, 1  ;;  %v2727_v17 = vld [vmem:[%s4975_s0 + $0x1c0] sm:$0xff] }
  0xbb   :  { %1201 = vmatmul.mubr.f32.gmra.mxu0 %v1038_v24  ;;  %1450 = vmatpush1.msra.mxu1 %v1407_v25  ;;  %v1343_v24 = vrot.slane %v1276_v18, 1  ;;  %v2724_v25 = vld [vmem:[%s4975_s0 + $0x80] sm:$0xff]  ;;  %v1897_v18 = vld [vmem:[%s4974_s1 + $0x788] sm:$0xff] }
  0xbc   :  { %1691 = vmatprep.subr.mxu0 %v1650_v26  ;;  %965 = vmatprep.mubr.f32.mxu1 %v2730_v3  ;;  %v1907_v26 = vld [vmem:[%s4974_s1 + $0x7d8] sm:$0xff] }
  0xbd   :  { %1692 = vmatpush1.msra.mxu0 %v1649_v27  ;;  %966 = vmatmul.mubr.f32.gmra.mxu1 %v798_v28  ;;  %v1277_v27 = vld [vmem:[%s4975_s0 + $0x110] sm:$0xfe]  ;;  %v1278_v28 = vld [vmem:[%s4975_s0 + $0x130] sm:$0x1] }
  0xbe   :  { %1206 = vmatprep.mubr.f32.mxu0 %v2730_v3  ;;  %1451 = vmatprep.subr.mxu1 %v1406_v29  ;;  %v1906_v29 = vld [vmem:[%s4974_s1 + $0x7d0] sm:$0xff] }
  0xbf   :  { %1207 = vmatmul.mubr.f32.gmra.mxu0 %v1039_v30  ;;  %1452 = vmatpush1.msra.mxu1 %v1405_v31  ;;  %v2260_v30 = vld [vmem:[%s4974_s1 + $0x8d8] sm:$0xff]  ;;  %v2259_v31 = vld [vmem:[%s4974_s1 + $0x8d0] sm:$0xff] }
  0xc0   :  { %1693 = vmatprep.subr.mxu0 %v1648_v32  ;;  %971 = vmatprep.mubr.f32.mxu1 %v2730_v3  ;;  %v1344_v32 = vsel %vm497_vm0, %v1342_v23, %v1343_v24  ;;  %v1896_v23 = vld [vmem:[%s4974_s1 + $0x780] sm:$0xff]  ;;  %v2250_v24 = vld [vmem:[%s4974_s1 + $0x888] sm:$0xff] }
  0xc1   :  { %1694 = vmatpush1.msra.mxu0 %v1647_v34  ;;  %972 = vmatmul.mubr.f32.gmra.mxu1 %v799_v35  ;;  %v1345_v34 = vrot.slane %v1277_v27, 1  ;;  %v1346_v35 = vrot.slane %v1278_v28, 1 }
  0xc2   :  { %1212 = vmatprep.mubr.f32.mxu0 %v2730_v3  ;;  %1453 = vmatprep.subr.mxu1 %v1404_v36  ;;  %v2725_v36 = vld [vmem:[%s4975_s0 + $0xc0] sm:$0xff] }
  0xc3   :  { %1213 = vmatmul.mubr.f32.gmra.mxu0 %v1040_v37  ;;  %1454 = vmatpush1.msra.mxu1 %v1403_v38  ;;  %v1905_v37 = vld [vmem:[%s4974_s1 + $0x7c8] sm:$0xff]  ;;  %v1279_v38 = vld [vmem:[%s4975_s0 + $0x150] sm:$0xfe] }
  0xc4   :  { %1695 = vmatprep.subr.mxu0 %v1646_v39  ;;  %977 = vmatprep.mubr.f32.mxu1 %v2730_v3  ;;  %v1280_v39 = vld [vmem:[%s4975_s0 + $0x170] sm:$0x1] }
  0xc5   :  { %1696 = vmatpush1.msra.mxu0 %v1645_v40  ;;  %978 = vmatmul.mubr.f32.gmra.mxu1 %v800_v41  ;;  %v1904_v40 = vld [vmem:[%s4974_s1 + $0x7c0] sm:$0xff]  ;;  %v2258_v41 = vld [vmem:[%s4974_s1 + $0x8c8] sm:$0xff] }
  0xc6   :  { %1218 = vmatprep.mubr.f32.mxu0 %v2730_v3  ;;  %1455 = vmatprep.subr.mxu1 %v1402_v42  ;;  %v2257_v42 = vld [vmem:[%s4974_s1 + $0x8c0] sm:$0xff] }
  0xc7   :  { %1219 = vmatmul.mubr.f32.gmra.mxu0 %v1041_v44  ;;  %1456 = vmatpush1.msra.mxu1 %v1401_v45  ;;  %v1347_v44 = vsel %vm497_vm0, %v1345_v34, %v1346_v35  ;;  %v1348_v45 = vrot.slane %v1279_v38, 1 }
  0xc8   :  { %1697 = vmatprep.subr.mxu0 %v1644_v46  ;;  %983 = vmatprep.mubr.f32.mxu1 %v2730_v3  ;;  %v1349_v46 = vrot.slane %v1280_v39, 1  ;;  %v2247_v39 = vld [vmem:[%s4974_s1 + $0x870] sm:$0xff] }
  0xc9   :  { %1698 = vmatpush1.msra.mxu0 %v1643_v47  ;;  %984 = vmatmul.mubr.f32.gmra.mxu1 %v801_v48  ;;  %v1903_v47 = vld [vmem:[%s4974_s1 + $0x7b8] sm:$0xff]  ;;  %v1281_v48 = vld [vmem:[%s4975_s0 + $0x190] sm:$0xfe] }
  0xca   :  { %1224 = vmatprep.mubr.f32.mxu0 %v2730_v3  ;;  %1457 = vmatprep.subr.mxu1 %v1400_v49  ;;  %v1282_v49 = vld [vmem:[%s4975_s0 + $0x1b0] sm:$0x1] }
  0xcb   :  { %1225 = vmatmul.mubr.f32.gmra.mxu0 %v1042_v52  ;;  %1458 = vmatpush1.msra.mxu1 %v1399_v53  ;;  %v1350_v52 = vsel %vm497_vm0, %v1348_v45, %v1349_v46  ;;  %v1351_v53 = vrot.slane %v1281_v48, 1  ;;  %v1893_v45 = vld [vmem:[%s4974_s1 + $0x768] sm:$0xff]  ;;  %v1292_v48 = vld [vmem:[%s4975_s0 + $0x330] sm:$0x1] }
  0xcc   :  { %1699 = vmatprep.subr.mxu0 %v1642_v54  ;;  %989 = vmatprep.mubr.f32.mxu1 %v2730_v3  ;;  %v1352_v54 = vrot.slane %v1282_v49, 1  ;;  %v1892_v49 = vld [vmem:[%s4974_s1 + $0x760] sm:$0xff] }
  0xcd   :  { %1700 = vmatpush1.msra.mxu0 %v1641_v55  ;;  %990 = vmatmul.mubr.f32.gmra.mxu1 %v802_v56  ;;  %v1901_v56 = vld [vmem:[%s4974_s1 + $0x7a8] sm:$0xff] }
  0xce   :  { %1230 = vmatprep.mubr.f32.mxu0 %v2730_v3  ;;  %1459 = vmatprep.subr.mxu1 %v1398_v59 }
  0xcf   :  { %1231 = vmatmul.mubr.f32.gmra.mxu0 %v1043_v62  ;;  %1460 = vmatpush1.msra.mxu1 %v1397_v63  ;;  %v2253_v63 = vld [vmem:[%s4974_s1 + $0x8a0] sm:$0xff] }
  0xd0   :  { %1701 = vmatprep.subr.mxu0 %v1640_v0  ;;  %1493 = vmatprep.mubr.f32.mxu1 %v2730_v3  ;;  %v1353_v0 = vsel %vm497_vm0, %v1351_v53, %v1352_v54 }
  0xd1   :  { %1702 = vmatpush1.msra.mxu0 %v1639_v1  ;;  %1494 = vmatmul.mubr.f32.vlgmr.msra.gmra.mxu1 %v1335_v2  ;;  %v1354_v1 = vrot.slane %v1283_v57, 1  ;;  %v1355_v2 = vrot.slane %v1284_v58, 1  ;;  %v2729_v57 = vld [vmem:[%s4975_s0 + $0x2c0] sm:$0xff]  ;;  %v1891_v58 = vld [vmem:[%s4974_s1 + $0x758] sm:$0xff] }
  0xd2   :  { %1735 = vmatprep.mubr.f32.mxu0 %v2730_v3  ;;  %1912 = vmatprep.subr.mxu1 %v1911_v6  ;;  %v1285_v6 = vld [vmem:[%s4975_s0 + $0x250] sm:$0xfe] }
  0xd3   :  { %1736 = vmatmul.mubr.f32.vlgmr.msra.gmra.mxu0 %v2723_v15  ;;  %1913 = vmatpush1.msra.mxu1 %v1910_v9  ;;  %v1898_v9 = vld [vmem:[%s4974_s1 + $0x790] sm:$0xff]  ;;  %v1356_v14 = vsel %vm497_vm0, %v1354_v1, %v1355_v2  ;;  %v1357_v15 = vrot.slane %v1285_v6, 1  ;;  %v2244_v2 = vld [vmem:[%s4974_s1 + $0x858] sm:$0xff] }
  0xd4   :  { %2265 = vmatprep.subr.mxu0 %v2264_v10  ;;  %1499 = vmatprep.mubr.f32.mxu1 %v2730_v3  ;;  %v2252_v10 = vld [vmem:[%s4974_s1 + $0x898] sm:$0xff]  ;;  %v1890_v1 = vld [vmem:[%s4974_s1 + $0x750] sm:$0xff] }
  0xd5   :  { %2266 = vmatpush1.msra.mxu0 %v2263_v11  ;;  %1500 = vmatmul.mubr.f32.gmra.mxu1 %v1338_v12 }
  0xd6   :  { %1741 = vmatprep.mubr.f32.mxu0 %v2730_v3  ;;  %1914 = vmatprep.subr.mxu1 %v1909_v16  ;;  %v1358_v16 = vrot.slane %v1286_v7, 1 }
  0xd7   :  { %1742 = vmatmul.mubr.f32.gmra.mxu0 %v2724_v25  ;;  %1915 = vmatpush1.msra.mxu1 %v1908_v19  ;;  %v1287_v19 = vld [vmem:[%s4975_s0 + $0x290] sm:$0xfe] }
  0xd8   :  { %2267 = vmatprep.subr.mxu0 %v2262_v20  ;;  %1505 = vmatprep.mubr.f32.mxu1 %v2730_v3  ;;  %v1288_v20 = vld [vmem:[%s4975_s0 + $0x2b0] sm:$0x1]  ;;  %v1359_v27 = vsel %vm497_vm0, %v1357_v15, %v1358_v16  ;;  %v1360_v28 = vrot.slane %v1287_v19, 1  ;;  %v1295_v15 = vld [vmem:[%s4975_s0 + $0x390] sm:$0xfe]  ;;  %v2242_v19 = vld [vmem:[%s4974_s1 + $0x848] sm:$0xff] }
  0xd9   :  { %2268 = vmatpush1.msra.mxu0 %v2261_v21  ;;  %1506 = vmatmul.mubr.f32.gmra.mxu1 %v1341_v22  ;;  %v2633_v22 = vld [vmem:[%s4975_s0 + $0x200] sm:$0xff]  ;;  %v1296_v16 = vld [vmem:[%s4975_s0 + $0x3b0] sm:$0x1] }
  0xda   :  { %1747 = vmatprep.mubr.f32.mxu0 %v2730_v3  ;;  %1916 = vmatprep.subr.mxu1 %v1907_v26  ;;  %v2249_v26 = vld [vmem:[%s4974_s1 + $0x880] sm:$0xff] }
  0xdb   :  { %1748 = vmatmul.mubr.f32.gmra.mxu0 %v2725_v36  ;;  %1917 = vmatpush1.msra.mxu1 %v1906_v29  ;;  %v1361_v29 = vrot.slane %v1288_v20, 1  ;;  %v1894_v36 = vld [vmem:[%s4974_s1 + $0x770] sm:$0xff] }
  0xdc   :  { %2269 = vmatprep.subr.mxu0 %v2260_v30  ;;  %1511 = vmatprep.mubr.f32.mxu1 %v2730_v3  ;;  %v1895_v30 = vld [vmem:[%s4974_s1 + $0x778] sm:$0xff] }
  0xdd   :  { %2270 = vmatpush1.msra.mxu0 %v2259_v31  ;;  %1512 = vmatmul.mubr.f32.gmra.mxu1 %v1344_v32  ;;  %v1289_v31 = vld [vmem:[%s4975_s0 + $0x2d0] sm:$0xfe]  ;;  %v1290_v32 = vld [vmem:[%s4975_s0 + $0x2f0] sm:$0x1] }
  0xde   :  { %1753 = vmatprep.mubr.f32.mxu0 %v2730_v3  ;;  %1918 = vmatprep.subr.mxu1 %v1905_v37  ;;  %v2248_v37 = vld [vmem:[%s4974_s1 + $0x878] sm:$0xff] }
  0xdf   :  { %1754 = vmatmul.mubr.f32.gmra.mxu0 %v3224_v33  ;;  %1919 = vmatpush1.msra.mxu1 %v1904_v40  ;;  %v1902_v33 = vld [vmem:[%s4974_s1 + $0x7b0] sm:$0xff]  ;;  %v1362_v40 = vsel %vm497_vm0, %v1360_v28, %v1361_v29 }
  0xe0   :  { %2271 = vmatprep.subr.mxu0 %v2258_v41  ;;  %1517 = vmatprep.mubr.f32.mxu1 %v2730_v3  ;;  %v1363_v41 = vrot.slane %v1289_v31, 1  ;;  %v1297_v29 = vld [vmem:[%s4975_s0 + $0x3d0] sm:$0xfe]  ;;  %v2638_v31 = vld [vmem:[%s4975_s0 + $0x380] sm:$0xff] }
  0xe1   :  { %2272 = vmatpush1.msra.mxu0 %v2257_v42  ;;  %1518 = vmatmul.mubr.f32.gmra.mxu1 %v1347_v44  ;;  %v1364_v42 = vrot.slane %v1290_v32, 1  ;;  %v2728_v44 = vld [vmem:[%s4975_s0 + $0x280] sm:$0xff]  ;;  %v1886_v32 = vld [vmem:[%s4974_s1 + $0x730] sm:$0xff] }
  0xe2   :  { %1759 = vmatprep.mubr.f32.mxu0 %v2730_v3  ;;  %1920 = vmatprep.subr.mxu1 %v1903_v47  ;;  %v3951_v55 = vpop.f32.mrf.mxu1  ;;  %v1291_v47 = vld [vmem:[%s4975_s0 + $0x310] sm:$0xfe] }
  0xe3   :  { %1760 = vmatmul.mubr.f32.gmra.mxu0 %v3251_v43  ;;  %1921 = vmatpush1.msra.mxu1 %v1902_v33  ;;  %v3963_v59 = vpop.f32.mrf.mxu0  ;;  %v1900_v43 = vld [vmem:[%s4974_s1 + $0x7a0] sm:$0xff]  ;;  %v2246_v33 = vld [vmem:[%s4974_s1 + $0x868] sm:$0xff]  ;;  %v1365_v53 = vsel %vm497_vm0, %v1363_v41, %v1364_v42  ;;  %v1366_v54 = vrot.slane %v1291_v47, 1  ;;  %v1375_v42 = vrot.slane %v1297_v29, 1 }
  0xe4   :  { %2273 = vmatprep.subr.mxu0 %v2256_v50  ;;  %1523 = vmatprep.mubr.f32.mxu1 %v2730_v3  ;;  %v3969_v60 = vpop.f32.mrf.mxu1  ;;  %v2234_v29 = vld [vmem:[%s4974_s1 + $0x808] sm:$0xff] }
  0xe5   :  { %2274 = vmatpush1.msra.mxu0 %v2255_v51  ;;  %1524 = vmatmul.mubr.f32.gmra.mxu1 %v1350_v52  ;;  %v3974_v62 = vpop.f32.mrf.mxu0  ;;  %v2245_v52 = vld [vmem:[%s4974_s1 + $0x860] sm:$0xff] }
  0xe6   :  { %1765 = vmatprep.mubr.f32.mxu0 %v2730_v3  ;;  %1922 = vmatprep.subr.mxu1 %v1901_v56  ;;  %v1367_v56 = vrot.slane %v1292_v48, 1  ;;  %v1299_v48 = vld [vmem:[%s4975_s0 + $0x410] sm:$0xfe] }
  0xe7   :  { %1766 = vmatmul.mubr.f32.gmra.mxu0 %v2726_v4  ;;  %1923 = vmatpush1.msra.mxu1 %v1900_v43  ;;  %v3993_v8 = vpop.f32.mrf.mxu1 }
  0xe8   :  { %2275 = vmatprep.subr.mxu0 %v2254_v61  ;;  %1529 = vmatprep.mubr.f32.mxu1 %v2730_v3  ;;  %v1293_v61 = vld [vmem:[%s4975_s0 + $0x350] sm:$0xfe]  ;;  %v1368_v6 = vsel %vm497_vm0, %v1366_v54, %v1367_v56  ;;  %v2237_v56 = vld [vmem:[%s4974_s1 + $0x820] sm:$0xff] }
  0xe9   :  { %2276 = vmatpush1.msra.mxu0 %v2253_v63  ;;  %1530 = vmatmul.mubr.f32.gmra.mxu1 %v1353_v0  ;;  %v4002_v11 = vpop.f32.mrf.mxu0  ;;  %v4004_v12 = vpop.f32.mrf.mxu1  ;;  %v1294_v63 = vld [vmem:[%s4975_s0 + $0x370] sm:$0x1]  ;;  %v2636_v0 = vld [vmem:[%s4975_s0 + $0x300] sm:$0xff]  ;;  %v1369_v7 = vrot.slane %v1293_v61, 1 }
  0xea   :  { %1771 = vmatprep.mubr.f32.mxu0 %v2730_v3  ;;  %1924 = vmatprep.subr.mxu1 %v1899_v5  ;;  %v2243_v5 = vld [vmem:[%s4974_s1 + $0x850] sm:$0xff] }
  0xeb   :  { %1772 = vmatmul.mubr.f32.gmra.mxu0 %v2727_v17  ;;  %1925 = vmatpush1.msra.mxu1 %v1898_v9  ;;  %v4023_v21 = vpop.f32.mrf.mxu0  ;;  %v1370_v9 = vrot.slane %v1294_v63, 1  ;;  %v2637_v17 = vld [vmem:[%s4975_s0 + $0x340] sm:$0xff]  ;;  %v1883_v63 = vld [vmem:[%s4974_s1 + $0x718] sm:$0xff] }
  0xec   :  { %2277 = vmatprep.subr.mxu0 %v2252_v10  ;;  %1535 = vmatprep.mubr.f32.mxu1 %v2730_v3  ;;  %v1889_v10 = vld [vmem:[%s4974_s1 + $0x748] sm:$0xff] }
  0xed   :  { %2278 = vmatpush1.msra.mxu0 %v2251_v13  ;;  %1536 = vmatmul.mubr.f32.gmra.mxu1 %v1356_v14  ;;  %v4035_v25 = vpop.f32.mrf.mxu1 }
  0xee   :  { %1777 = vmatprep.mubr.f32.mxu0 %v2730_v3  ;;  %1926 = vmatprep.subr.mxu1 %v1897_v18  ;;  %v1888_v18 = vld [vmem:[%s4974_s1 + $0x740] sm:$0xff] }
  0xef   :  { %1778 = vmatmul.mubr.f32.gmra.mxu0 %v2633_v22  ;;  %1927 = vmatpush1.msra.mxu1 %v1896_v23  ;;  %v4051_v34 = vpop.f32.mrf.mxu0  ;;  %v4053_v35 = vpop.f32.mrf.mxu1  ;;  %v2241_v22 = vld [vmem:[%s4974_s1 + $0x840] sm:$0xff]  ;;  %v1371_v23 = vsel %vm497_vm0, %v1369_v7, %v1370_v9 }
  0xf0   :  { %2279 = vmatprep.subr.mxu0 %v2250_v24  ;;  %1541 = vmatprep.mubr.f32.mxu1 %v2730_v3  ;;  %v1372_v24 = vrot.slane %v1295_v15, 1  ;;  %v2658_v9 = vld [vmem:[%s4975_s0 + $0x40] sm:$0xfe]  ;;  %v2235_v15 = vld [vmem:[%s4974_s1 + $0x810] sm:$0xff] }
  0xf1   :  { %2280 = vmatpush1.msra.mxu0 %v2249_v26  ;;  %1542 = vmatmul.mubr.f32.gmra.mxu1 %v1359_v27  ;;  %v4062_v38 = vpop.f32.mrf.mxu0  ;;  %v1373_v26 = vrot.slane %v1296_v16, 1  ;;  %v1887_v27 = vld [vmem:[%s4974_s1 + $0x738] sm:$0xff] }
  0xf2   :  { %1783 = vmatprep.mubr.f32.mxu0 %v2730_v3  ;;  %1928 = vmatprep.subr.mxu1 %v1895_v30  ;;  %v1298_v30 = vld [vmem:[%s4975_s0 + $0x3f0] sm:$0x1] }
  0xf3   :  { %1784 = vmatmul.mubr.f32.gmra.mxu0 %v2728_v44  ;;  %1929 = vmatpush1.msra.mxu1 %v1894_v36  ;;  %v4075_v46 = vpop.f32.mrf.mxu1  ;;  %v2240_v36 = vld [vmem:[%s4974_s1 + $0x838] sm:$0xff]  ;;  %v1374_v41 = vsel %vm497_vm0, %v1372_v24, %v1373_v26  ;;  %v1376_v44 = vrot.slane %v1298_v30, 1  ;;  %v2660_v30 = vld [vmem:[%s4975_s0 + $0x80] sm:$0xfe] }
  0xf4   :  { %2281 = vmatprep.subr.mxu0 %v2248_v37  ;;  %1547 = vmatprep.mubr.f32.mxu1 %v2730_v3 }
  0xf5   :  { %2282 = vmatpush1.msra.mxu0 %v2247_v39  ;;  %1548 = vmatmul.mubr.f32.gmra.mxu1 %v1362_v40  ;;  %v4090_v50 = vpop.f32.mrf.mxu0  ;;  %v4092_v51 = vpop.f32.mrf.mxu1  ;;  %v2239_v40 = vld [vmem:[%s4974_s1 + $0x830] sm:$0xff] }
  0xf6   :  { %1789 = vmatprep.mubr.f32.mxu0 %v2730_v3  ;;  %1930 = vmatprep.subr.mxu1 %v1893_v45  ;;  %v1885_v45 = vld [vmem:[%s4974_s1 + $0x728] sm:$0xff] }
  0xf7   :  { %1790 = vmatmul.mubr.f32.gmra.mxu0 %v2729_v57  ;;  %1931 = vmatpush1.msra.mxu1 %v1892_v49  ;;  %v4105_v43 = vpop.f32.mrf.mxu0  ;;  %v1300_v49 = vld [vmem:[%s4975_s0 + $0x430] sm:$0x1]  ;;  %v1377_v57 = vsel %vm497_vm0, %v1375_v42, %v1376_v44  ;;  %v2172_v42 = vrot.slane %v2660_v30, 1  ;;  %v2667_v30 = vld [vmem:[%s4975_s0 + $0x160] sm:$0x1] }
  0xf8   :  { %2283 = vmatprep.subr.mxu0 %v2246_v33  ;;  %1553 = vmatprep.mubr.f32.mxu1 %v2730_v3  ;;  %v2639_v33 = vld [vmem:[%s4975_s0 + $0x3c0] sm:$0xff]  ;;  %v1379_v61 = vrot.slane %v1300_v49, 1 }
  0xf9   :  { %2284 = vmatpush1.msra.mxu0 %v2245_v52  ;;  %1554 = vmatmul.mubr.f32.gmra.mxu1 %v1365_v53  ;;  %v4123_v4 = vpop.f32.mrf.mxu1  ;;  %v1884_v52 = vld [vmem:[%s4974_s1 + $0x720] sm:$0xff]  ;;  %v2238_v53 = vld [vmem:[%s4974_s1 + $0x828] sm:$0xff] }
  0xfa   :  { %1795 = vmatprep.mubr.f32.mxu0 %v2730_v3  ;;  %1932 = vmatprep.subr.mxu1 %v1891_v58  ;;  %v1378_v58 = vrot.slane %v1299_v48, 1  ;;  %v2663_v48 = vld [vmem:[%s4975_s0 + $0xe0] sm:$0x1] }
  0xfb   :  { %1796 = vmatmul.mubr.f32.gmra.mxu0 %v2636_v0  ;;  %1933 = vmatpush1.msra.mxu1 %v1890_v1  ;;  %v4133_v13 = vpop.f32.mrf.mxu0  ;;  %v4135_v14 = vpop.f32.mrf.mxu1 }
  0xfc   :  { %2285 = vmatprep.subr.mxu0 %v2244_v2  ;;  %1559 = vmatprep.mubr.f32.mxu1 %v2730_v3  ;;  %v2640_v2 = vld [vmem:[%s4975_s0 + $0x400] sm:$0xff]  ;;  %v1380_v16 = vsel %vm497_vm0, %v1378_v58, %v1379_v61  ;;  %v2176_v58 = vrot.slane %v2663_v48, 1  ;;  %v2182_v48 = vrot.slane %v2667_v30, 1 }
  0xfd   :  { %2286 = vmatpush1.msra.mxu0 %v2243_v5  ;;  %1560 = vmatmul.mubr.f32.gmra.mxu1 %v1368_v6  ;;  %v4153_v20 = vpop.f32.mrf.mxu0  ;;  %v1882_v5 = vld [vmem:[%s4974_s1 + $0x710] sm:$0xff]  ;;  %v2236_v6 = vld [vmem:[%s4974_s1 + $0x818] sm:$0xff] }
  0xfe   :  { %1801 = vmatprep.mubr.f32.mxu0 %v2730_v3  ;;  %1934 = vmatprep.subr.mxu1 %v1889_v10  ;;  %v2659_v10 = vld [vmem:[%s4975_s0 + $0x60] sm:$0x1] }
  0xff   :  { %1802 = vmatmul.mubr.f32.gmra.mxu0 %v2637_v17  ;;  %1935 = vmatpush1.msra.mxu1 %v1888_v18  ;;  %v4163_v28 = vpop.f32.mrf.mxu1  ;;  %v1881_v18 = vld [vmem:[%s4974_s1 + $0x708] sm:$0xff]  ;;  %v2170_v24 = vrot.slane %v2659_v10, 1 }
 0x100   :  { %2287 = vmatprep.subr.mxu0 %v2242_v19  ;;  %1565 = vmatprep.mubr.f32.mxu1 %v2730_v3  ;;  %v2641_v19 = vld [vmem:[%s4975_s0 + $0x440] sm:$0xff] }
 0x101   :  { %2288 = vmatpush1.msra.mxu0 %v2241_v22  ;;  %1566 = vmatmul.mubr.f32.gmra.mxu1 %v1371_v23  ;;  %v4181_v37 = vpop.f32.mrf.mxu0  ;;  %v4183_v39 = vpop.f32.mrf.mxu1  ;;  %v1880_v22 = vld [vmem:[%s4974_s1 + $0x700] sm:$0xff]  ;;  %v2169_v23 = vrot.slane %v2658_v9, 1 }
 0x102   :  { %1807 = vmatprep.mubr.f32.mxu0 %v2730_v3  ;;  %1936 = vmatprep.subr.mxu1 %v1887_v27  ;;  %v2665_v9 = vld [vmem:[%s4975_s0 + $0x120] sm:$0x1] }
 0x103   :  { %1808 = vmatmul.mubr.f32.gmra.mxu0 %v2638_v31  ;;  %1937 = vmatpush1.msra.mxu1 %v1886_v32  ;;  %v4193_v47 = vpop.f32.mrf.mxu0  ;;  %v2661_v31 = vld [vmem:[%s4975_s0 + $0xa0] sm:$0x1] }
 0x104   :  { %2289 = vmatprep.subr.mxu0 %v2240_v36  ;;  %1571 = vmatprep.mubr.f32.mxu1 %v2730_v3  ;;  %v2233_v32 = vld [vmem:[%s4974_s1 + $0x800] sm:$0xff]  ;;  %v2642_v36 = vld [vmem:[%s4975_s0 + $0x48] sm:$0xff]  ;;  %v2173_v44 = vrot.slane %v2661_v31, 1 }
 0x105   :  { %2290 = vmatpush1.msra.mxu0 %v2239_v40  ;;  %1572 = vmatmul.mubr.f32.gmra.mxu1 %v1374_v41  ;;  %v4211_v54 = vpop.f32.mrf.mxu1  ;;  %v2171_v41 = vsel %vm497_vm0, %v2169_v23, %v2170_v24 }
 0x106   :  { %1813 = vmatprep.mubr.f32.mxu0 %v2730_v3  ;;  %1938 = vmatprep.subr.mxu1 %v1885_v45  ;;  %v2662_v45 = vld [vmem:[%s4975_s0 + $0xc0] sm:$0xfe] }
 0x107   :  { %1814 = vmatmul.mubr.f32.gmra.mxu0 %v2639_v33  ;;  %1939 = vmatpush1.msra.mxu1 %v1884_v52  ;;  %v4221_v0 = vpop.f32.mrf.mxu0  ;;  %v4223_v1 = vpop.f32.mrf.mxu1  ;;  %v2643_v52 = vld [vmem:[%s4975_s0 + $0x88] sm:$0xff] }
 0x108   :  { %2291 = vmatprep.subr.mxu0 %v2238_v53  ;;  %1577 = vmatprep.mubr.f32.mxu1 %v2730_v3 }
 0x109   :  { %2292 = vmatpush1.msra.mxu0 %v2237_v56  ;;  %1578 = vmatmul.mubr.f32.gmra.mxu1 %v1377_v57  ;;  %v4235_v7 = vpop.f32.mrf.mxu0  ;;  %v2175_v57 = vrot.slane %v2662_v45, 1 }
 0x10a   :  { %1819 = vmatprep.mubr.f32.mxu0 %v2730_v3  ;;  %1940 = vmatprep.subr.mxu1 %v1883_v63 }
 0x10b   :  { %1820 = vmatmul.mubr.f32.gmra.mxu0 %v2640_v2  ;;  %1941 = vmatpush1.msra.mxu1 %v1882_v5  ;;  %v4248_v17 = vpop.f32.mrf.mxu1 }
 0x10c   :  { %2293 = vmatprep.subr.mxu0 %v2236_v6  ;;  %1583 = vmatprep.mubr.f32.mxu1 %v2730_v3  ;;  %v2664_v6 = vld [vmem:[%s4975_s0 + $0x100] sm:$0xfe] }
 0x10d   :  { %2294 = vmatpush1.msra.mxu0 %v2235_v15  ;;  %1584 = vmatmul.mubr.f32.gmra.mxu1 %v1380_v16  ;;  %v4260_v26 = vpop.f32.mrf.mxu0  ;;  %v4262_v27 = vpop.f32.mrf.mxu1  ;;  %v2178_v24 = vrot.slane %v2664_v6, 1 }
 0x10e   :  { %1825 = vmatprep.mubr.f32.mxu0 %v2730_v3  ;;  %1942 = vmatprep.subr.mxu1 %v1881_v18 }
 0x10f   :  { %1826 = vmatmul.mubr.f32.gmra.mxu0 %v2641_v19  ;;  %1943 = vmatpush1.msra.mxu1 %v1880_v22  ;;  %v4280_v40 = vpop.f32.mrf.mxu0  ;;  %v2177_v19 = vsel %vm497_vm0, %v2175_v57, %v2176_v58  ;;  %v2669_v57 = vld [vmem:[%s4975_s0 + $0x1a0] sm:$0x1] }
 0x110   :  { %2295 = vmatprep.subr.mxu0 %v2234_v29  ;;  %1976 = vmatprep.mubr.f32.mxu1 %v2730_v3  ;;  %v2179_v29 = vrot.slane %v2665_v9, 1 }
 0x111   :  { %2296 = vmatpush1.msra.mxu0 %v2233_v32  ;;  %v338_v49 = vpop.f32.mrf.mxu1  ;;  %1977 = vmatmul.mubr.f32.vlgmr.msra.gmra.mxu1 %v2642_v36 }
 0x112   :  { %v339_v33 = vadd.f32 %v338_v49, %v3963_v59  ;;  %2329 = vmatprep.mubr.f32.mxu0 %v2730_v3  ;;  %1982 = vmatprep.mubr.f32.mxu1 %v2730_v3  ;;  %v2174_v59 = vsel %vm497_vm0, %v2172_v42, %v2173_v44 }
 0x113   :  { %v660_v53 = vpop.f32.mrf.mxu0  ;;  %2330 = vmatmul.mubr.f32.vlgmr.msra.gmra.mxu0 %v2171_v41  ;;  %v340_v56 = vpop.f32.mrf.mxu1 }
 0x114   :  { %v4296_v61 = vadd.f32 %v660_v53, %v339_v33  ;;  %v341_v63 = vadd.f32 %v340_v56, %v3974_v62  ;;  %2335 = vmatprep.mubr.f32.mxu0 %v2730_v3  ;;  %v2644_v62 = vld [vmem:[%s4975_s0 + $0xc8] sm:$0xff]  ;;  %v2668_v56 = vld [vmem:[%s4975_s0 + $0x180] sm:$0xfe] }
 0x115   :  { %v662_v2 = vpop.f32.mrf.mxu0  ;;  %v344_v5 = vpop.f32.mrf.mxu1  ;;  %1983 = vmatmul.mubr.f32.gmra.mxu1 %v2643_v52  ;;  %v2180_v52 = vsel %vm497_vm0, %v2178_v24, %v2179_v29 }
 0x116   :  { %v4307_v10 = vadd.f32 %v662_v2, %v341_v63  ;;  %v345_v15 = vadd.f32 %v344_v5, %v4002_v11  ;;  %1988 = vmatprep.mubr.f32.mxu1 %v2730_v3  ;;  %v2666_v11 = vld [vmem:[%s4975_s0 + $0x140] sm:$0xfe] }
 0x117   :  { %v666_v16 = vpop.f32.mrf.mxu0  ;;  %2336 = vmatmul.mubr.f32.gmra.mxu0 %v2174_v59  ;;  %v346_v18 = vpop.f32.mrf.mxu1  ;;  %v2181_v45 = vrot.slane %v2666_v11, 1 }
 0x118   :  { %v4315_v22 = vadd.f32 %v666_v16, %v345_v15  ;;  %v347_v23 = vadd.f32 %v346_v18, %v4023_v21  ;;  %2341 = vmatprep.mubr.f32.mxu0 %v2730_v3  ;;  %v2645_v21 = vld [vmem:[%s4975_s0 + $0x108] sm:$0xff]  ;;  %v2184_v15 = vrot.slane %v2668_v56, 1  ;;  %v2671_v16 = vld [vmem:[%s4975_s0 + $0x1e0] sm:$0x1] }
 0x119   :  { %v668_v31 = vpop.f32.mrf.mxu0  ;;  %v350_v32 = vpop.f32.mrf.mxu1  ;;  %1989 = vmatmul.mubr.f32.gmra.mxu1 %v2644_v62  ;;  %v2183_v5 = vsel %vm497_vm0, %v2181_v45, %v2182_v48  ;;  %v2185_v62 = vrot.slane %v2669_v57, 1  ;;  %v2673_v45 = vld [vmem:[%s4975_s0 + $0x220] sm:$0x1] }
 0x11a   :  { %v4325_v36 = vadd.f32 %v668_v31, %v347_v23  ;;  %v351_v41 = vadd.f32 %v350_v32, %v4051_v34  ;;  %1994 = vmatprep.mubr.f32.mxu1 %v2730_v3  ;;  %v2188_v31 = vrot.slane %v2671_v16, 1 }
 0x11b   :  { %v672_v42 = vpop.f32.mrf.mxu0  ;;  %2342 = vmatmul.mubr.f32.gmra.mxu0 %v2177_v19  ;;  %v352_v44 = vpop.f32.mrf.mxu1 }
 0x11c   :  { %v4332_v49 = vadd.f32 %v672_v42, %v351_v41  ;;  %v353_v33 = vadd.f32 %v352_v44, %v4062_v38  ;;  %2347 = vmatprep.mubr.f32.mxu0 %v2730_v3  ;;  %v2646_v38 = vld [vmem:[%s4975_s0 + $0x148] sm:$0xff]  ;;  %v2672_v44 = vld [vmem:[%s4975_s0 + $0x200] sm:$0xfe] }
 0x11d   :  { %v674_v34 = vpop.f32.mrf.mxu0  ;;  %v356_v53 = vpop.f32.mrf.mxu1  ;;  %1995 = vmatmul.mubr.f32.gmra.mxu1 %v2645_v21  ;;  %v2186_v21 = vsel %vm497_vm0, %v2184_v15, %v2185_v62 }
 0x11e   :  { %v4343_v58 = vadd.f32 %v674_v34, %v353_v33  ;;  %v357_v63 = vadd.f32 %v356_v53, %v4090_v50  ;;  %2000 = vmatprep.mubr.f32.mxu1 %v2730_v3  ;;  %v2670_v50 = vld [vmem:[%s4975_s0 + $0x1c0] sm:$0xfe] }
 0x11f   :  { %v678_v59 = vpop.f32.mrf.mxu0  ;;  %2348 = vmatmul.mubr.f32.gmra.mxu0 %v2180_v52  ;;  %v358_v2 = vpop.f32.mrf.mxu1  ;;  %v2187_v30 = vrot.slane %v2670_v50, 1 }
 0x120   :  { %v4351_v6 = vadd.f32 %v678_v59, %v357_v63  ;;  %v359_v9 = vadd.f32 %v358_v2, %v4105_v43  ;;  %2353 = vmatprep.mubr.f32.mxu0 %v2730_v3  ;;  %v2647_v43 = vld [vmem:[%s4975_s0 + $0x188] sm:$0xff]  ;;  %v2190_v63 = vrot.slane %v2672_v44, 1  ;;  %v2675_v59 = vld [vmem:[%s4975_s0 + $0x2a0] sm:$0x1] }
 0x121   :  { %v680_v18 = vpop.f32.mrf.mxu0  ;;  %v362_v19 = vpop.f32.mrf.mxu1  ;;  %2001 = vmatmul.mubr.f32.gmra.mxu1 %v2646_v38  ;;  %v2189_v53 = vsel %vm497_vm0, %v2187_v30, %v2188_v31  ;;  %v2191_v38 = vrot.slane %v2673_v45, 1  ;;  %v2677_v30 = vld [vmem:[%s4975_s0 + $0x2e0] sm:$0x1] }
 0x122   :  { %v4361_v23 = vadd.f32 %v680_v18, %v359_v9  ;;  %v363_v24 = vadd.f32 %v362_v19, %v4133_v13  ;;  %2006 = vmatprep.mubr.f32.mxu1 %v2730_v3  ;;  %v2194_v18 = vrot.slane %v2675_v59, 1 }
 0x123   :  { %v684_v29 = vpop.f32.mrf.mxu0  ;;  %2354 = vmatmul.mubr.f32.gmra.mxu0 %v2183_v5  ;;  %v364_v11 = vpop.f32.mrf.mxu1 }
 0x124   :  { %v4368_v32 = vadd.f32 %v684_v29, %v363_v24  ;;  %v365_v41 = vadd.f32 %v364_v11, %v4153_v20  ;;  %2359 = vmatprep.mubr.f32.mxu0 %v2730_v3  ;;  %v2648_v20 = vld [vmem:[%s4975_s0 + $0x1c8] sm:$0xff]  ;;  %v2676_v11 = vld [vmem:[%s4975_s0 + $0x2c0] sm:$0xfe] }
 0x125   :  { %v686_v13 = vpop.f32.mrf.mxu0  ;;  %v368_v42 = vpop.f32.mrf.mxu1  ;;  %2007 = vmatmul.mubr.f32.gmra.mxu1 %v2647_v43  ;;  %v2192_v43 = vsel %vm497_vm0, %v2190_v63, %v2191_v38 }
 0x126   :  { %v4379_v48 = vadd.f32 %v686_v13, %v365_v41  ;;  %v369_v33 = vadd.f32 %v368_v42, %v4181_v37  ;;  %2012 = vmatprep.mubr.f32.mxu1 %v2730_v3  ;;  %v2674_v37 = vld [vmem:[%s4975_s0 + $0x280] sm:$0xfe] }
 0x127   :  { %v690_v52 = vpop.f32.mrf.mxu0  ;;  %2360 = vmatmul.mubr.f32.gmra.mxu0 %v2186_v21  ;;  %v370_v34 = vpop.f32.mrf.mxu1  ;;  %v2193_v16 = vrot.slane %v2674_v37, 1 }
 0x128   :  { %v4387_v56 = vadd.f32 %v690_v52, %v369_v33  ;;  %v371_v57 = vadd.f32 %v370_v34, %v4193_v47  ;;  %2365 = vmatprep.mubr.f32.mxu0 %v2730_v3  ;;  %v2649_v47 = vld [vmem:[%s4975_s0 + $0x208] sm:$0xff]  ;;  %v2196_v33 = vrot.slane %v2676_v11, 1  ;;  %v2679_v52 = vld [vmem:[%s4975_s0 + $0x320] sm:$0x1] }
 0x129   :  { %v692_v2 = vpop.f32.mrf.mxu0  ;;  %v374_v5 = vpop.f32.mrf.mxu1  ;;  %2013 = vmatmul.mubr.f32.gmra.mxu1 %v2648_v20  ;;  %v2195_v42 = vsel %vm497_vm0, %v2193_v16, %v2194_v18  ;;  %v2197_v20 = vrot.slane %v2677_v30, 1  ;;  %v2681_v16 = vld [vmem:[%s4975_s0 + $0x360] sm:$0x1] }
 0x12a   :  { %v4397_v9 = vadd.f32 %v692_v2, %v371_v57  ;;  %v375_v15 = vadd.f32 %v374_v5, %v4221_v0  ;;  %2018 = vmatprep.mubr.f32.mxu1 %v2730_v3  ;;  %v2200_v2 = vrot.slane %v2679_v52, 1 }
 0x12b   :  { %v696_v62 = vpop.f32.mrf.mxu0  ;;  %2366 = vmatmul.mubr.f32.gmra.mxu0 %v2189_v53  ;;  %v376_v50 = vpop.f32.mrf.mxu1 }
 0x12c   :  { %v4404_v19 = vadd.f32 %v696_v62, %v375_v15  ;;  %v377_v24 = vadd.f32 %v376_v50, %v4235_v7  ;;  %2371 = vmatprep.mubr.f32.mxu0 %v2730_v3  ;;  %v2650_v7 = vld [vmem:[%s4975_s0 + $0x288] sm:$0xff]  ;;  %v2680_v50 = vld [vmem:[%s4975_s0 + $0x340] sm:$0xfe] }
 0x12d   :  { %v698_v0 = vpop.f32.mrf.mxu0  ;;  %v380_v29 = vpop.f32.mrf.mxu1  ;;  %2019 = vmatmul.mubr.f32.gmra.mxu1 %v2649_v47  ;;  %v2198_v47 = vsel %vm497_vm0, %v2196_v33, %v2197_v20 }
 0x12e   :  { %v4415_v31 = vadd.f32 %v698_v0, %v377_v24  ;;  %v381_v41 = vadd.f32 %v380_v29, %v4260_v26  ;;  %2024 = vmatprep.mubr.f32.mxu1 %v2730_v3  ;;  %v2678_v26 = vld [vmem:[%s4975_s0 + $0x300] sm:$0xfe] }
 0x12f   :  { %v702_v21 = vpop.f32.mrf.mxu0  ;;  %2372 = vmatmul.mubr.f32.gmra.mxu0 %v2192_v43  ;;  %v382_v13 = vpop.f32.mrf.mxu1  ;;  %v2199_v59 = vrot.slane %v2678_v26, 1 }
 0x130   :  { %v4423_v44 = vadd.f32 %v702_v21, %v381_v41  ;;  %v383_v45 = vadd.f32 %v382_v13, %v4280_v40  ;;  %2377 = vmatprep.mubr.f32.mxu0 %v2730_v3  ;;  %v2651_v40 = vld [vmem:[%s4975_s0 + $0x2c8] sm:$0xff]  ;;  %v2202_v41 = vrot.slane %v2680_v50, 1  ;;  %v2683_v21 = vld [vmem:[%s4975_s0 + $0x3a0] sm:$0x1] }
 0x131   :  { %v704_v34 = vpop.f32.mrf.mxu0  ;;  %v386_v53 = vpop.f32.mrf.mxu1  ;;  %2025 = vmatmul.mubr.f32.gmra.mxu1 %v2650_v7  ;;  %v2201_v29 = vsel %vm497_vm0, %v2199_v59, %v2200_v2  ;;  %v2203_v7 = vrot.slane %v2681_v16, 1  ;;  %v2685_v59 = vld [vmem:[%s4975_s0 + $0x3e0] sm:$0x1] }
 0x132   :  { %v4433_v57 = vadd.f32 %v704_v34, %v383_v45  ;;  %v387_v63 = vadd.f32 %v386_v53, %v3951_v55  ;;  %2030 = vmatprep.mubr.f32.mxu1 %v2730_v3  ;;  %v2206_v34 = vrot.slane %v2683_v21, 1 }
 0x133   :  { %v708_v38 = vpop.f32.mrf.mxu0  ;;  %2378 = vmatmul.mubr.f32.gmra.mxu0 %v2195_v42  ;;  %v388_v37 = vpop.f32.mrf.mxu1 }
 0x134   :  { %v4440_v5 = vadd.f32 %v708_v38, %v387_v63  ;;  %v389_v15 = vadd.f32 %v388_v37, %v3969_v60  ;;  %2383 = vmatprep.mubr.f32.mxu0 %v2730_v3  ;;  %v2652_v60 = vld [vmem:[%s4975_s0 + $0x308] sm:$0xff]  ;;  %v2684_v37 = vld [vmem:[%s4975_s0 + $0x3c0] sm:$0xfe] }
 0x135   :  { %v710_v55 = vpop.f32.mrf.mxu0  ;;  %v392_v62 = vpop.f32.mrf.mxu1  ;;  %2031 = vmatmul.mubr.f32.gmra.mxu1 %v2651_v40  ;;  %v2204_v40 = vsel %vm497_vm0, %v2202_v41, %v2203_v7 }
 0x136   :  { %v4451_v18 = vadd.f32 %v710_v55, %v389_v15  ;;  %v393_v24 = vadd.f32 %v392_v62, %v3993_v8  ;;  %2036 = vmatprep.mubr.f32.mxu1 %v2730_v3  ;;  %v2682_v8 = vld [vmem:[%s4975_s0 + $0x380] sm:$0xfe] }
 0x137   :  { %v714_v43 = vpop.f32.mrf.mxu0  ;;  %2384 = vmatmul.mubr.f32.gmra.mxu0 %v2198_v47  ;;  %v394_v0 = vpop.f32.mrf.mxu1  ;;  %v2205_v52 = vrot.slane %v2682_v8, 1 }
 0x138   :  { %v4459_v11 = vadd.f32 %v714_v43, %v393_v24  ;;  %v395_v30 = vadd.f32 %v394_v0, %v4004_v12  ;;  %2389 = vmatprep.mubr.f32.mxu0 %v2730_v3  ;;  %v2653_v12 = vld [vmem:[%s4975_s0 + $0x348] sm:$0xff]  ;;  %v2208_v24 = vrot.slane %v2684_v37, 1  ;;  %v2687_v43 = vld [vmem:[%s4975_s0 + $0x420] sm:$0x1] }
 0x139   :  { %v716_v13 = vpop.f32.mrf.mxu0  ;;  %v398_v42 = vpop.f32.mrf.mxu1  ;;  %2037 = vmatmul.mubr.f32.gmra.mxu1 %v2652_v60  ;;  %v2207_v62 = vsel %vm497_vm0, %v2205_v52, %v2206_v34  ;;  %v2209_v60 = vrot.slane %v2685_v59, 1  ;;  %v2689_v52 = vld [vmem:[%s4975_s0 + $0x460] sm:$0x1] }
 0x13a   :  { %v4469_v45 = vadd.f32 %v716_v13, %v395_v30  ;;  %v399_v33 = vadd.f32 %v398_v42, %v4035_v25  ;;  %2042 = vmatprep.mubr.f32.mxu1 %v2730_v3  ;;  %v2212_v13 = vrot.slane %v2687_v43, 1 }
 0x13b   :  { %v720_v20 = vpop.f32.mrf.mxu0  ;;  %2390 = vmatmul.mubr.f32.gmra.mxu0 %v2201_v29  ;;  %v400_v26 = vpop.f32.mrf.mxu1 }
 0x13c   :  { %v4476_v53 = vadd.f32 %v720_v20, %v399_v33  ;;  %v401_v63 = vadd.f32 %v400_v26, %v4053_v35  ;;  %2395 = vmatprep.mubr.f32.mxu0 %v2730_v3  ;;  %v2654_v35 = vld [vmem:[%s4975_s0 + $0x388] sm:$0xff]  ;;  %v2688_v26 = vld [vmem:[%s4975_s0 + $0x440] sm:$0xfe] }
 0x13d   :  { %v722_v25 = vpop.f32.mrf.mxu0  ;;  %v404_v38 = vpop.f32.mrf.mxu1  ;;  %2043 = vmatmul.mubr.f32.gmra.mxu1 %v2653_v12  ;;  %v2210_v12 = vsel %vm497_vm0, %v2208_v24, %v2209_v60 }
 0x13e   :  { %v4487_v2 = vadd.f32 %v722_v25, %v401_v63  ;;  %v405_v15 = vadd.f32 %v404_v38, %v4075_v46  ;;  %2048 = vmatprep.mubr.f32.mxu1 %v2730_v3  ;;  %v2686_v46 = vld [vmem:[%s4975_s0 + $0x400] sm:$0xfe] }
 0x13f   :  { %v726_v47 = vpop.f32.mrf.mxu0  ;;  %2396 = vmatmul.mubr.f32.gmra.mxu0 %v2204_v40  ;;  %v406_v55 = vpop.f32.mrf.mxu1  ;;  %v2211_v21 = vrot.slane %v2686_v46, 1 }
 0x140   :  { %v4495_v50 = vadd.f32 %v726_v47, %v405_v15  ;;  %v407_v16 = vadd.f32 %v406_v55, %v4092_v51  ;;  %2401 = vmatprep.mubr.f32.mxu0 %v2730_v3  ;;  %v2655_v51 = vld [vmem:[%s4975_s0 + $0x3c8] sm:$0xff]  ;;  %v2214_v15 = vrot.slane %v2688_v26, 1 }
 0x141   :  { %v728_v0 = vpop.f32.mrf.mxu0  ;;  %v410_v29 = vpop.f32.mrf.mxu1  ;;  %2049 = vmatmul.mubr.f32.gmra.mxu1 %v2654_v35  ;;  %v2213_v38 = vsel %vm497_vm0, %v2211_v21, %v2212_v13  ;;  %v2215_v35 = vrot.slane %v2689_v52, 1 }
 0x142   :  { %v4505_v30 = vadd.f32 %v728_v0, %v407_v16  ;;  %v411_v41 = vadd.f32 %v410_v29, %v4123_v4  ;;  %2054 = vmatprep.mubr.f32.mxu1 %v2730_v3  ;;  %v2657_v16 = vld [vmem:[%s4975_s0 + $0x448] sm:$0xff] }
 0x143   :  { %v732_v7 = vpop.f32.mrf.mxu0  ;;  %2402 = vmatmul.mubr.f32.gmra.mxu0 %v2207_v62  ;;  %v412_v8 = vpop.f32.mrf.mxu1  ;;  %v2216_v43 = vsel %vm497_vm0, %v2214_v15, %v2215_v35 }
 0x144   :  { %v4512_v42 = vadd.f32 %v732_v7, %v411_v41  ;;  %v413_v33 = vadd.f32 %v412_v8, %v4135_v14  ;;  %2407 = vmatprep.mubr.f32.mxu0 %v2730_v3  ;;  %v2656_v14 = vld [vmem:[%s4975_s0 + $0x408] sm:$0xff] }
 0x145   :  { %v734_v4 = vpop.f32.mrf.mxu0  ;;  %v416_v20 = vpop.f32.mrf.mxu1  ;;  %2055 = vmatmul.mubr.f32.gmra.mxu1 %v2655_v51 }
 0x146   :  { %v4523_v34 = vadd.f32 %v734_v4, %v413_v33  ;;  %v417_v63 = vadd.f32 %v416_v20, %v4163_v28  ;;  %2060 = vmatprep.mubr.f32.mxu1 %v2730_v3 }
 0x147   :  { %v738_v40 = vpop.f32.mrf.mxu0  ;;  %2408 = vmatmul.mubr.f32.gmra.mxu0 %v2210_v12  ;;  %v418_v25 = vpop.f32.mrf.mxu1 }
 0x148   :  { %v4531_v37 = vadd.f32 %v738_v40, %v417_v63  ;;  %v419_v59 = vadd.f32 %v418_v25, %v4183_v39  ;;  %2413 = vmatprep.mubr.f32.mxu0 %v2730_v3 }
 0x149   :  { %v740_v28 = vpop.f32.mrf.mxu0  ;;  %v422_v47 = vpop.f32.mrf.mxu1  ;;  %2061 = vmatmul.mubr.f32.gmra.mxu1 %v2656_v14 }
 0x14a   :  { %v4535_v55 = vadd.f32 %v740_v28, %v419_v59  ;;  %v423_v62 = vadd.f32 %v422_v47, %v4211_v54  ;;  %2066 = vmatprep.mubr.f32.mxu1 %v2730_v3 }
 0x14b   :  { %v744_v24 = vpop.f32.mrf.mxu0  ;;  %2414 = vmatmul.mubr.f32.gmra.mxu0 %v2213_v38  ;;  %v424_v39 = vpop.f32.mrf.mxu1 }
 0x14c   :  { %v4542_v60 = vadd.f32 %v744_v24, %v423_v62  ;;  %v425_v46 = vadd.f32 %v424_v39, %v4223_v1  ;;  %2419 = vmatprep.mubr.f32.mxu0 %v2730_v3 }
 0x14d   :  { %v746_v0 = vpop.f32.mrf.mxu0  ;;  %v428_v29 = vpop.f32.mrf.mxu1  ;;  %2067 = vmatmul.mubr.f32.gmra.mxu1 %v2657_v16 }
 0x14e   :  { %v4547_v54 = vadd.f32 %v746_v0, %v425_v46  ;;  %v429_v41 = vadd.f32 %v428_v29, %v4248_v17 }
 0x14f   :  { %v750_v51 = vpop.f32.mrf.mxu0  ;;  %2420 = vmatmul.mubr.f32.gmra.mxu0 %v2216_v43  ;;  %v430_v7 = vpop.f32.mrf.mxu1 }
 0x150   :  { %v4550_v8 = vadd.f32 %v750_v51, %v429_v41  ;;  %v431_v21 = vadd.f32 %v430_v7, %v4262_v27 }
 0x151   :  { %v752_v13 = vpop.f32.mrf.mxu0  ;;  %v901_v1 = vpop.f32.mrf.mxu1 }
 0x152   :  { %v4553_v33 = vadd.f32 %v752_v13, %v431_v21  ;;  %v996_v3 = vadd.f32 %v901_v1, %v4296_v61 }
 0x153   :  { %v1142_v12 = vpop.f32.mrf.mxu0  ;;  %v903_v4 = vpop.f32.mrf.mxu1 }
 0x154   :  { %v4556_v20 = vadd.f32 %v1142_v12, %v996_v3  ;;  %v997_v26 = vadd.f32 %v903_v4, %v4307_v10 }
 0x155   :  { %v1144_v17 = vpop.f32.mrf.mxu0  ;;  %v907_v52 = vpop.f32.mrf.mxu1 }
 0x156   :  { %v4559_v63 = vadd.f32 %v1144_v17, %v997_v26  ;;  %v998_v14 = vadd.f32 %v907_v52, %v4315_v22 }
 0x157   :  { %v1148_v40 = vpop.f32.mrf.mxu0  ;;  %v909_v27 = vpop.f32.mrf.mxu1 }
 0x158   :  { %v4562_v25 = vadd.f32 %v1148_v40, %v998_v14  ;;  %v999_v38 = vadd.f32 %v909_v27, %v4325_v36 }
 0x159   :  { %v1150_v59 = vpop.f32.mrf.mxu0  ;;  %v913_v61 = vpop.f32.mrf.mxu1 }
 0x15a   :  { %v4565_v15 = vadd.f32 %v1150_v59, %v999_v38  ;;  %v1000_v35 = vadd.f32 %v913_v61, %v4332_v49 }
 0x15b   :  { %v1154_v28 = vpop.f32.mrf.mxu0  ;;  %v915_v10 = vpop.f32.mrf.mxu1 }
 0x15c   :  { %v4568_v47 = vadd.f32 %v1154_v28, %v1000_v35  ;;  %v1001_v62 = vadd.f32 %v915_v10, %v4343_v58 }
 0x15d   :  { %v1156_v16 = vpop.f32.mrf.mxu0  ;;  %v919_v22 = vpop.f32.mrf.mxu1 }
 0x15e   :  { %v4571_v24 = vadd.f32 %v1156_v16, %v1001_v62  ;;  %v1002_v39 = vadd.f32 %v919_v22, %v4351_v6 }
 0x15f   :  { %v1160_v46 = vpop.f32.mrf.mxu0  ;;  %v921_v36 = vpop.f32.mrf.mxu1 }
 0x160   :  { %v4574_v43 = vadd.f32 %v1160_v46, %v1002_v39  ;;  %v1003_v0 = vadd.f32 %v921_v36, %v4361_v23 }
 0x161   :  { %v1162_v29 = vpop.f32.mrf.mxu0  ;;  %v925_v49 = vpop.f32.mrf.mxu1 }
 0x162   :  { %v4577_v41 = vadd.f32 %v1162_v29, %v1003_v0  ;;  %v1004_v51 = vadd.f32 %v925_v49, %v4368_v32 }
 0x163   :  { %v1166_v7 = vpop.f32.mrf.mxu0  ;;  %v927_v58 = vpop.f32.mrf.mxu1 }
 0x164   :  { %v4580_v21 = vadd.f32 %v1166_v7, %v1004_v51  ;;  %v1005_v13 = vadd.f32 %v927_v58, %v4379_v48 }
 0x165   :  { %v1168_v1 = vpop.f32.mrf.mxu0  ;;  %v931_v6 = vpop.f32.mrf.mxu1 }
 0x166   :  { %v4583_v3 = vadd.f32 %v1168_v1, %v1005_v13  ;;  %v1006_v12 = vadd.f32 %v931_v6, %v4387_v56 }
 0x167   :  { %v1172_v4 = vpop.f32.mrf.mxu0  ;;  %v933_v23 = vpop.f32.mrf.mxu1 }
 0x168   :  { %v4586_v26 = vadd.f32 %v1172_v4, %v1006_v12  ;;  %v1007_v17 = vadd.f32 %v933_v23, %v4397_v9 }
 0x169   :  { %v1174_v52 = vpop.f32.mrf.mxu0  ;;  %v937_v32 = vpop.f32.mrf.mxu1 }
 0x16a   :  { %v4589_v14 = vadd.f32 %v1174_v52, %v1007_v17  ;;  %v1008_v40 = vadd.f32 %v937_v32, %v4404_v19 }
 0x16b   :  { %v1178_v27 = vpop.f32.mrf.mxu0  ;;  %v939_v48 = vpop.f32.mrf.mxu1 }
 0x16c   :  { %v4592_v38 = vadd.f32 %v1178_v27, %v1008_v40  ;;  %v1009_v59 = vadd.f32 %v939_v48, %v4415_v31 }
 0x16d   :  { %v1180_v61 = vpop.f32.mrf.mxu0  ;;  %v943_v56 = vpop.f32.mrf.mxu1 }
 0x16e   :  { %v4595_v35 = vadd.f32 %v1180_v61, %v1009_v59  ;;  %v1010_v28 = vadd.f32 %v943_v56, %v4423_v44 }
 0x16f   :  { %v1184_v10 = vpop.f32.mrf.mxu0  ;;  %v945_v9 = vpop.f32.mrf.mxu1 }
 0x170   :  { %v4598_v62 = vadd.f32 %v1184_v10, %v1010_v28  ;;  %v1011_v16 = vadd.f32 %v945_v9, %v4433_v57 }
 0x171   :  { %v1186_v22 = vpop.f32.mrf.mxu0  ;;  %v949_v19 = vpop.f32.mrf.mxu1 }
 0x172   :  { %v4601_v39 = vadd.f32 %v1186_v22, %v1011_v16  ;;  %v1012_v46 = vadd.f32 %v949_v19, %v4440_v5 }
 0x173   :  { %v1190_v36 = vpop.f32.mrf.mxu0  ;;  %v951_v31 = vpop.f32.mrf.mxu1 }
 0x174   :  { %v4604_v0 = vadd.f32 %v1190_v36, %v1012_v46  ;;  %v1013_v29 = vadd.f32 %v951_v31, %v4451_v18 }
 0x175   :  { %v1192_v49 = vpop.f32.mrf.mxu0  ;;  %v955_v44 = vpop.f32.mrf.mxu1 }
 0x176   :  { %v4607_v51 = vadd.f32 %v1192_v49, %v1013_v29  ;;  %v1014_v7 = vadd.f32 %v955_v44, %v4459_v11 }
 0x177   :  { %v1196_v58 = vpop.f32.mrf.mxu0  ;;  %v957_v57 = vpop.f32.mrf.mxu1 }
 0x178   :  { %v4610_v13 = vadd.f32 %v1196_v58, %v1014_v7  ;;  %v1015_v1 = vadd.f32 %v957_v57, %v4469_v45 }
 0x179   :  { %v1198_v6 = vpop.f32.mrf.mxu0  ;;  %v961_v5 = vpop.f32.mrf.mxu1 }
 0x17a   :  { %v4613_v12 = vadd.f32 %v1198_v6, %v1015_v1  ;;  %v1016_v4 = vadd.f32 %v961_v5, %v4476_v53 }
 0x17b   :  { %v1202_v23 = vpop.f32.mrf.mxu0  ;;  %v963_v18 = vpop.f32.mrf.mxu1 }
 0x17c   :  { %4980 = vst [vmem:[#allocation2_spill] sm:$0xff] %v4613_v12  ;;  %v4616_v17 = vadd.f32 %v1202_v23, %v1016_v4  ;;  %v1017_v52 = vadd.f32 %v963_v18, %v4487_v2 }
 0x17d   :  { %v1204_v32 = vpop.f32.mrf.mxu0  ;;  %v967_v11 = vpop.f32.mrf.mxu1 }
 0x17e   :  { %4981 = vst [vmem:[#allocation3_spill] sm:$0xff] %v4616_v17  ;;  %v4619_v40 = vadd.f32 %v1204_v32, %v1017_v52  ;;  %v1018_v27 = vadd.f32 %v967_v11, %v4495_v50 }
 0x17f   :  { %v1208_v48 = vpop.f32.mrf.mxu0  ;;  %v969_v45 = vpop.f32.mrf.mxu1 }
 0x180   :  { %4982 = vst [vmem:[#allocation4_spill] sm:$0xff] %v4619_v40  ;;  %v4622_v59 = vadd.f32 %v1208_v48, %v1018_v27  ;;  %v1019_v61 = vadd.f32 %v969_v45, %v4505_v30 }
 0x181   :  { %v1210_v56 = vpop.f32.mrf.mxu0  ;;  %v973_v53 = vpop.f32.mrf.mxu1 }
 0x182   :  { %4983 = vst [vmem:[#allocation5_spill] sm:$0xff] %v4622_v59  ;;  %v4625_v28 = vadd.f32 %v1210_v56, %v1019_v61  ;;  %v1020_v10 = vadd.f32 %v973_v53, %v4512_v42 }
 0x183   :  { %v1214_v9 = vpop.f32.mrf.mxu0  ;;  %v975_v2 = vpop.f32.mrf.mxu1 }
 0x184   :  { %4984 = vst [vmem:[#allocation6_spill] sm:$0xff] %v4625_v28  ;;  %v4628_v16 = vadd.f32 %v1214_v9, %v1020_v10  ;;  %v1021_v22 = vadd.f32 %v975_v2, %v4523_v34 }
 0x185   :  { %v1216_v19 = vpop.f32.mrf.mxu0  ;;  %v979_v50 = vpop.f32.mrf.mxu1 }
 0x186   :  { %4985 = vst [vmem:[#allocation7_spill] sm:$0xff] %v4628_v16  ;;  %v4631_v46 = vadd.f32 %v1216_v19, %v1021_v22  ;;  %v1022_v36 = vadd.f32 %v979_v50, %v4531_v37 }
 0x187   :  { %v1220_v31 = vpop.f32.mrf.mxu0  ;;  %v981_v30 = vpop.f32.mrf.mxu1 }
 0x188   :  { %4986 = vst [vmem:[#allocation8_spill] sm:$0xff] %v4631_v46  ;;  %v4634_v29 = vadd.f32 %v1220_v31, %v1022_v36  ;;  %v1023_v49 = vadd.f32 %v981_v30, %v4535_v55 }
 0x189   :  { %v1222_v44 = vpop.f32.mrf.mxu0  ;;  %v985_v42 = vpop.f32.mrf.mxu1 }
 0x18a   :  { %4987 = vst [vmem:[#allocation9_spill] sm:$0xff] %v4634_v29  ;;  %v4637_v7 = vadd.f32 %v1222_v44, %v1023_v49  ;;  %v1024_v58 = vadd.f32 %v985_v42, %v4542_v60 }
 0x18b   :  { %v1226_v57 = vpop.f32.mrf.mxu0  ;;  %v987_v34 = vpop.f32.mrf.mxu1 }
 0x18c   :  { %4988 = vst [vmem:[#allocation10_spill] sm:$0xff] %v4637_v7  ;;  %v4640_v1 = vadd.f32 %v1226_v57, %v1024_v58  ;;  %v1025_v6 = vadd.f32 %v987_v34, %v4547_v54 }
 0x18d   :  { %v1228_v5 = vpop.f32.mrf.mxu0  ;;  %v991_v37 = vpop.f32.mrf.mxu1 }
 0x18e   :  { %4989 = vst [vmem:[#allocation11_spill] sm:$0xff] %v4640_v1  ;;  %v4643_v4 = vadd.f32 %v1228_v5, %v1025_v6  ;;  %v1026_v23 = vadd.f32 %v991_v37, %v4550_v8 }
 0x18f   :  { %v1232_v18 = vpop.f32.mrf.mxu0  ;;  %v993_v55 = vpop.f32.mrf.mxu1 }
 0x190   :  { %4990 = vst [vmem:[#allocation12_spill] sm:$0xff] %v4643_v4  ;;  %v4646_v52 = vadd.f32 %v1232_v18, %v1026_v23  ;;  %v1027_v32 = vadd.f32 %v993_v55, %v4553_v33 }
 0x191   :  { %v1234_v11 = vpop.f32.mrf.mxu0  ;;  %v1495_v60 = vpop.f32.mrf.mxu1 }
 0x192   :  { %4991 = vst [vmem:[#allocation13_spill] sm:$0xff] %v4646_v52  ;;  %v4649_v27 = vadd.f32 %v1234_v11, %v1027_v32 }
 0x193   :  { %v4651_v48 = vpop.f32.mrf.mxu0  ;;  %v1497_v45 = vpop.f32.mrf.mxu1 }
 0x194   :  { %4992 = vst [vmem:[#allocation14_spill] sm:$0xff] %v4649_v27 }
 0x195   :  { %v4653_v54 = vpop.f32.mrf.mxu0  ;;  %v1501_v61 = vpop.f32.mrf.mxu1 }
 0x197   :  { %v4655_v56 = vpop.f32.mrf.mxu0  ;;  %v4657_v53 = vpop.f32.mrf.mxu1 }
 0x199   :  { %v4659_v8 = vpop.f32.mrf.mxu0  ;;  %v4661_v10 = vpop.f32.mrf.mxu1 }
 0x19b   :  { %v4663_v9 = vpop.f32.mrf.mxu0  ;;  %v4665_v33 = vpop.f32.mrf.mxu1 }
 0x19d   :  { %v4667_v2 = vpop.f32.mrf.mxu0  ;;  %v4669_v22 = vpop.f32.mrf.mxu1 }
 0x19f   :  { %v4671_v19 = vpop.f32.mrf.mxu0  ;;  %v4673_v50 = vpop.f32.mrf.mxu1 }
 0x1a1   :  { %v4675_v36 = vpop.f32.mrf.mxu0  ;;  %v4677_v31 = vpop.f32.mrf.mxu1 }
 0x1a3   :  { %v4679_v30 = vpop.f32.mrf.mxu0  ;;  %v4681_v49 = vpop.f32.mrf.mxu1 }
 0x1a5   :  { %v4683_v44 = vpop.f32.mrf.mxu0  ;;  %v4685_v42 = vpop.f32.mrf.mxu1 }
 0x1a7   :  { %v4687_v58 = vpop.f32.mrf.mxu0  ;;  %v4689_v57 = vpop.f32.mrf.mxu1 }
 0x1a9   :  { %v4691_v34 = vpop.f32.mrf.mxu0  ;;  %v4693_v6 = vpop.f32.mrf.mxu1 }
 0x1ab   :  { %v4695_v5 = vpop.f32.mrf.mxu0  ;;  %v4697_v37 = vpop.f32.mrf.mxu1 }
 0x1ad   :  { %v4699_v23 = vpop.f32.mrf.mxu0  ;;  %v4701_v18 = vpop.f32.mrf.mxu1 }
 0x1af   :  { %v4703_v55 = vpop.f32.mrf.mxu0  ;;  %v4705_v32 = vpop.f32.mrf.mxu1 }
 0x1b1   :  { %v4707_v11 = vpop.f32.mrf.mxu0  ;;  %v4709_v27 = vpop.f32.mrf.mxu1 }
 0x1b3   :  { %v4711_v52 = vpop.f32.mrf.mxu0  ;;  %v4713_v4 = vpop.f32.mrf.mxu1 }
 0x1b4   :  { %4993 = vst [vmem:[#allocation15_spill] sm:$0xff] %v4711_v52 }
 0x1b5   :  { %v4715_v1 = vpop.f32.mrf.mxu0  ;;  %v4717_v7 = vpop.f32.mrf.mxu1 }
 0x1b6   :  { %4994 = vst [vmem:[#allocation16_spill] sm:$0xff] %v4715_v1  ;;  %4995 = vst [vmem:[#allocation17_spill] sm:$0xff] %v4717_v7 }
 0x1b7   :  { %v4719_v29 = vpop.f32.mrf.mxu0  ;;  %v4721_v46 = vpop.f32.mrf.mxu1 }
 0x1b8   :  { %4996 = vst [vmem:[#allocation18_spill] sm:$0xff] %v4719_v29  ;;  %4997 = vst [vmem:[#allocation19_spill] sm:$0xff] %v4721_v46 }
 0x1b9   :  { %v4723_v16 = vpop.f32.mrf.mxu0  ;;  %v4725_v28 = vpop.f32.mrf.mxu1 }
 0x1ba   :  { %4998 = vst [vmem:[#allocation20_spill] sm:$0xff] %v4723_v16  ;;  %4999 = vst [vmem:[#allocation21_spill] sm:$0xff] %v4725_v28 }
 0x1bb   :  { %v4727_v59 = vpop.f32.mrf.mxu0  ;;  %v4729_v40 = vpop.f32.mrf.mxu1 }
 0x1bc   :  { %5000 = vst [vmem:[#allocation22_spill] sm:$0xff] %v4727_v59  ;;  %5001 = vst [vmem:[#allocation23_spill] sm:$0xff] %v4729_v40 }
 0x1bd   :  { %v4731_v17 = vpop.f32.mrf.mxu0  ;;  %v4733_v12 = vpop.f32.mrf.mxu1 }
 0x1be   :  { %5002 = vst [vmem:[#allocation24_spill] sm:$0xff] %v4731_v17  ;;  %5003 = vst [vmem:[#allocation25_spill] sm:$0xff] %v4733_v12 }
 0x1bf   :  { %v4735_v52 = vpop.f32.mrf.mxu0  ;;  %v4737_v1 = vpop.f32.mrf.mxu1 }
 0x1c0   :  { %5004 = vst [vmem:[#allocation26_spill] sm:$0xff] %v4735_v52  ;;  %5005 = vst [vmem:[#allocation27_spill] sm:$0xff] %v4737_v1 }
 0x1c1   :  { %v4739_v7 = vpop.f32.mrf.mxu0  ;;  %v4741_v29 = vpop.f32.mrf.mxu1 }
 0x1c2   :  { %5006 = vst [vmem:[#allocation28_spill] sm:$0xff] %v4739_v7  ;;  %5007 = vst [vmem:[#allocation29_spill] sm:$0xff] %v4741_v29 }
 0x1c3   :  { %v4743_v46 = vpop.f32.mrf.mxu0  ;;  %v4745_v16 = vpop.f32.mrf.mxu1 }
 0x1c4   :  { %5008 = vst [vmem:[#allocation30_spill] sm:$0xff] %v4743_v46  ;;  %5009 = vst [vmem:[#allocation31_spill] sm:$0xff] %v4745_v16  ;;  %v1590_v46 = vadd.f32 %v1495_v60, %v4556_v20  ;;  %v1593_v20 = vadd.f32 %v4657_v53, %v4565_v15 }
 0x1c5   :  { %v4747_v28 = vpop.f32.mrf.mxu0  ;;  %v4749_v59 = vpop.f32.mrf.mxu1 }
 0x1c6   :  { %5010 = vst [vmem:[#allocation32_spill] sm:$0xff] %v4747_v28  ;;  %5011 = vst [vmem:[#allocation33_spill] sm:$0xff] %v4749_v59  ;;  %v1591_v28 = vadd.f32 %v1497_v45, %v4559_v63  ;;  %v1594_v45 = vadd.f32 %v4661_v10, %v4568_v47 }
 0x1c7   :  { %v4751_v40 = vpop.f32.mrf.mxu0  ;;  %v4753_v17 = vpop.f32.mrf.mxu1 }
 0x1c8   :  { %5012 = vst [vmem:[#allocation34_spill] sm:$0xff] %v4751_v40  ;;  %5013 = vst [vmem:[#allocation35_spill] sm:$0xff] %v4753_v17 }
 0x1c9   :  { %v4755_v12 = vpop.f32.mrf.mxu0  ;;  %v4757_v52 = vpop.f32.mrf.mxu1 }
 0x1ca   :  { %5014 = vst [vmem:[#allocation36_spill] sm:$0xff] %v4755_v12  ;;  %5015 = vst [vmem:[#allocation37_spill] sm:$0xff] %v4757_v52  ;;  %v1832_v12 = vadd.f32 %v4651_v48, %v1590_v46  ;;  %v1592_v52 = vadd.f32 %v1501_v61, %v4562_v25  ;;  %v1835_v61 = vadd.f32 %v4659_v8, %v1593_v20 }
 0x1cb   :  { %v4759_v1 = vpop.f32.mrf.mxu0  ;;  %v4761_v7 = vpop.f32.mrf.mxu1  ;;  %v1598_v20 = vadd.f32 %v4677_v31, %v4580_v21 }
 0x1cc   :  { %5016 = vst [vmem:[#allocation38_spill] sm:$0xff] %v4759_v1  ;;  %5017 = vst [vmem:[#allocation39_spill] sm:$0xff] %v4761_v7  ;;  %v1833_v7 = vadd.f32 %v4653_v54, %v1591_v28  ;;  %v1834_v63 = vadd.f32 %v4655_v56, %v1592_v52  ;;  %v1597_v54 = vadd.f32 %v4673_v50, %v4577_v41 }
 0x1cd   :  { %v4764_v29 = vpop.f32.mrf.mxu0  ;;  %v4766_v16 = vpop.f32.mrf.mxu1 }
 0x1ce   :  { %5018 = vst [vmem:[#allocation40_spill] sm:$0xff] %v4764_v29  ;;  %5019 = vst [vmem:[#allocation41_spill] sm:$0xff] %v4766_v16 }
 0x1cf   :  { %v4769_v59 = vpop.f32.mrf.mxu0  ;;  %v4771_v40 = vpop.f32.mrf.mxu1 }
 0x1d0   :  { %5020 = vst [vmem:[#allocation42_spill] sm:$0xff] %v4769_v59 }
 0x1d1   :  { %v4775_v17 = vpop.f32.mrf.mxu0  ;;  %v1978_v1 = vpop.f32.mrf.mxu1 }
 0x1d2   :  { %v2073_v60 = vadd.f32 %v1978_v1, %v1832_v12  ;;  %v1595_v12 = vadd.f32 %v4665_v33, %v4571_v24  ;;  %v1596_v1 = vadd.f32 %v4669_v22, %v4574_v43 }
 0x1d3   :  { %v2331_v29 = vpop.f32.mrf.mxu0  ;;  %v1980_v16 = vpop.f32.mrf.mxu1 }
 0x1d4   :  { %v2426_v59 = vadd.f32 %v2331_v29, %v2073_v60  ;;  %v2074_v46 = vadd.f32 %v1980_v16, %v1833_v7  ;;  %v1836_v16 = vadd.f32 %v4663_v9, %v1594_v45  ;;  %v1837_v33 = vadd.f32 %v4667_v2, %v1595_v12 }
 0x1d5   :  { %v2333_v48 = vpop.f32.mrf.mxu0  ;;  %v1984_v25 = vpop.f32.mrf.mxu1  ;;  %v1838_v22 = vadd.f32 %v4671_v19, %v1596_v1  ;;  %v1599_v12 = vadd.f32 %v4681_v49, %v4583_v3 }
 0x1d6   :  { %2458 = vst [vmem:[%s4976_s2] sm:$0xff] %v2426_v59  ;;  %v2427_v28 = vadd.f32 %v2333_v48, %v2074_v46  ;;  %v2075_v15 = vadd.f32 %v1984_v25, %v1834_v63  ;;  %v2496_v56 = vmul.f32 %v2426_v59, %v2426_v59  ;;  %v1839_v48 = vadd.f32 %v4675_v36, %v1597_v54 }
 0x1d7   :  { %v2337_v52 = vpop.f32.mrf.mxu0  ;;  %v1986_v47 = vpop.f32.mrf.mxu1  ;;  %v1601_v54 = vadd.f32 %v4689_v57, %v4589_v14  ;;  %v1602_v57 = vadd.f32 %v4693_v6, %v4592_v38 }
 0x1d8   :  { %2534 = vst [vmem:[%s4977_s4] sm:$0xff] %v2427_v28  ;;  %v2428_v29 = vadd.f32 %v2337_v52, %v2075_v15  ;;  %v2076_v7 = vadd.f32 %v1986_v47, %v1835_v61  ;;  %v2572_v60 = vmul.f32 %v2427_v28, %v2427_v28  ;;  %v1840_v47 = vadd.f32 %v4679_v30, %v1598_v20 }
 0x1d9   :  { %v2339_v53 = vpop.f32.mrf.mxu0  ;;  %v1990_v8 = vpop.f32.mrf.mxu1 }
 0x1da   :  { %2459 = vst [vmem:[%s4976_s2 + $0x8] sm:$0xff] %v2428_v29  ;;  %v2474_v24 = vadd.f32 %v2428_v29, %v2426_v59  ;;  %v2497_v43 = vmul.f32 %v2428_v29, %v2428_v29  ;;  %v2429_v10 = vadd.f32 %v2339_v53, %v2076_v7  ;;  %v2077_v9 = vadd.f32 %v1990_v8, %v1836_v16 }
 0x1db   :  { %v2343_v41 = vpop.f32.mrf.mxu0  ;;  %v1992_v50 = vpop.f32.mrf.mxu1 }
 0x1dc   :  { %v2512_v63 = vadd.f32 %v2497_v43, %v2496_v56  ;;  %2535 = vst [vmem:[%s4977_s4 + $0x8] sm:$0xff] %v2429_v10  ;;  %v2550_v45 = vadd.f32 %v2429_v10, %v2427_v28  ;;  %v2573_v59 = vmul.f32 %v2429_v10, %v2429_v10  ;;  %v2430_v46 = vadd.f32 %v2343_v41, %v2077_v9 }
 0x1dd   :  { %v2078_v25 = vadd.f32 %v1992_v50, %v1837_v33  ;;  %v2345_v2 = vpop.f32.mrf.mxu0  ;;  %v1996_v61 = vpop.f32.mrf.mxu1  ;;  %v1600_v28 = vadd.f32 %v4685_v42, %v4586_v26  ;;  %v1843_v41 = vadd.f32 %v4691_v34, %v1601_v54 }
 0x1de   :  { %v2588_v19 = vadd.f32 %v2573_v59, %v2572_v60  ;;  %2460 = vst [vmem:[%s4976_s2 + $0x10] sm:$0xff] %v2430_v46  ;;  %v2475_v21 = vadd.f32 %v2474_v24, %v2430_v46  ;;  %v2498_v31 = vmul.f32 %v2430_v46, %v2430_v46  ;;  %v2079_v15 = vadd.f32 %v1996_v61, %v1838_v22 }
 0x1df   :  { %v2431_v1 = vadd.f32 %v2345_v2, %v2078_v25  ;;  %v2349_v52 = vpop.f32.mrf.mxu0  ;;  %v1998_v36 = vpop.f32.mrf.mxu1  ;;  %v1841_v24 = vadd.f32 %v4683_v44, %v1599_v12  ;;  %v1842_v14 = vadd.f32 %v4687_v58, %v1600_v28  ;;  %v1603_v59 = vadd.f32 %v4697_v37, %v4595_v35 }
 0x1e0   :  { %v2513_v16 = vadd.f32 %v2512_v63, %v2498_v31  ;;  %v2432_v29 = vadd.f32 %v2349_v52, %v2079_v15  ;;  %v2080_v7 = vadd.f32 %v1998_v36, %v1839_v48  ;;  %v1604_v46 = vadd.f32 %v4701_v18, %v4598_v62 }
 0x1e1   :  { %2536 = vst [vmem:[%s4977_s4 + $0x10] sm:$0xff] %v2431_v1  ;;  %v2551_v56 = vadd.f32 %v2550_v45, %v2431_v1  ;;  %v2574_v3 = vmul.f32 %v2431_v1, %v2431_v1  ;;  %v2351_v49 = vpop.f32.mrf.mxu0  ;;  %v2002_v53 = vpop.f32.mrf.mxu1  ;;  %v1844_v2 = vadd.f32 %v4695_v5, %v1602_v57  ;;  %v1605_v31 = vadd.f32 %v4705_v32, %v4601_v39 }
 0x1e2   :  { %2461 = vst [vmem:[%s4976_s2 + $0x18] sm:$0xff] %v2432_v29  ;;  %v2476_v26 = vadd.f32 %v2475_v21, %v2432_v29  ;;  %v2499_v30 = vmul.f32 %v2432_v29, %v2432_v29  ;;  %v2433_v42 = vadd.f32 %v2351_v49, %v2080_v7  ;;  %v2081_v8 = vadd.f32 %v2002_v53, %v1840_v47 }
 0x1e3   :  { %v2589_v43 = vadd.f32 %v2588_v19, %v2574_v3  ;;  %v2355_v10 = vpop.f32.mrf.mxu0  ;;  %v2004_v9 = vpop.f32.mrf.mxu1  ;;  %v1845_v1 = vadd.f32 %v4699_v23, %v1603_v59  ;;  %v1846_v39 = vadd.f32 %v4703_v55, %v1604_v46  ;;  %v1606_v32 = vadd.f32 %v4709_v27, %v4604_v0  ;;  %v5027_v59 = vld [vmem:[#allocation3_spill] sm:$0xff]  ;;  %v5028_v46 = vld [vmem:[#allocation21_spill] sm:$0xff] }
 0x1e4   :  { %v2514_v33 = vadd.f32 %v2513_v16, %v2499_v30  ;;  %2537 = vst [vmem:[%s4977_s4 + $0x18] sm:$0xff] %v2433_v42  ;;  %v2552_v22 = vadd.f32 %v2551_v56, %v2433_v42  ;;  %v2575_v20 = vmul.f32 %v2433_v42, %v2433_v42  ;;  %v2434_v60 = vadd.f32 %v2355_v10, %v2081_v8  ;;  %v5021_v30 = vld [vmem:[#allocation17_spill] sm:$0xff] }
 0x1e5   :  { %v2082_v50 = vadd.f32 %v2004_v9, %v1841_v24  ;;  %v2357_v44 = vpop.f32.mrf.mxu0  ;;  %v2008_v63 = vpop.f32.mrf.mxu1  ;;  %v1847_v56 = vadd.f32 %v4707_v11, %v1605_v31  ;;  %v1608_v42 = vadd.f32 %v5021_v30, %v4610_v13 }
 0x1e6   :  { %v2590_v58 = vadd.f32 %v2589_v43, %v2575_v20  ;;  %2462 = vst [vmem:[%s4976_s2 + $0x20] sm:$0xff] %v2434_v60  ;;  %v2477_v38 = vadd.f32 %v2476_v26, %v2434_v60  ;;  %v2500_v6 = vmul.f32 %v2434_v60, %v2434_v60  ;;  %v2083_v45 = vadd.f32 %v2008_v63, %v1842_v14  ;;  %v5022_v14 = vld [vmem:[#allocation15_spill] sm:$0xff] }
 0x1e7   :  { %v2435_v48 = vadd.f32 %v2357_v44, %v2082_v50  ;;  %v2361_v25 = vpop.f32.mrf.mxu0  ;;  %v2010_v34 = vpop.f32.mrf.mxu1  ;;  %v1607_v26 = vadd.f32 %v4713_v4, %v4607_v51  ;;  %v1848_v57 = vadd.f32 %v5022_v14, %v1606_v32  ;;  %v5031_v32 = vld [vmem:[#allocation23_spill] sm:$0xff] }
 0x1e8   :  { %v2515_v61 = vadd.f32 %v2514_v33, %v2500_v6  ;;  %v2436_v19 = vadd.f32 %v2361_v25, %v2083_v45  ;;  %v2084_v21 = vadd.f32 %v2010_v34, %v1843_v41  ;;  %v5023_v33 = vld [vmem:[#allocation2_spill] sm:$0xff] }
 0x1e9   :  { %2538 = vst [vmem:[%s4977_s4 + $0x20] sm:$0xff] %v2435_v48  ;;  %v2553_v15 = vadd.f32 %v2552_v22, %v2435_v48  ;;  %v2576_v35 = vmul.f32 %v2435_v48, %v2435_v48  ;;  %v2363_v37 = vpop.f32.mrf.mxu0  ;;  %v2014_v12 = vpop.f32.mrf.mxu1  ;;  %v5024_v22 = vld [vmem:[#allocation19_spill] sm:$0xff]  ;;  %v5026_v6 = vld [vmem:[#allocation18_spill] sm:$0xff]  ;;  %v1610_v48 = vadd.f32 %v5028_v46, %v5027_v59 }
 0x1ea   :  { %2463 = vst [vmem:[%s4976_s2 + $0x28] sm:$0xff] %v2436_v19  ;;  %v2478_v62 = vadd.f32 %v2477_v38, %v2436_v19  ;;  %v2501_v5 = vmul.f32 %v2436_v19, %v2436_v19  ;;  %v2437_v18 = vadd.f32 %v2363_v37, %v2084_v21  ;;  %v2085_v28 = vadd.f32 %v2014_v12, %v1844_v2 }
 0x1eb   :  { %v2591_v52 = vadd.f32 %v2590_v58, %v2576_v35  ;;  %v2367_v36 = vpop.f32.mrf.mxu0  ;;  %v2016_v47 = vpop.f32.mrf.mxu1  ;;  %v1609_v20 = vadd.f32 %v5024_v22, %v5023_v33  ;;  %v5025_v58 = vld [vmem:[#allocation16_spill] sm:$0xff]  ;;  %v1850_v45 = vadd.f32 %v5026_v6, %v1608_v42  ;;  %v5039_v22 = vld [vmem:[#allocation7_spill] sm:$0xff] }
 0x1ec   :  { %v2516_v16 = vadd.f32 %v2515_v61, %v2501_v5  ;;  %2539 = vst [vmem:[%s4977_s4 + $0x28] sm:$0xff] %v2437_v18  ;;  %v2554_v29 = vadd.f32 %v2553_v15, %v2437_v18  ;;  %v2577_v7 = vmul.f32 %v2437_v18, %v2437_v18  ;;  %v2438_v54 = vadd.f32 %v2367_v36, %v2085_v28  ;;  %v5029_v15 = vld [vmem:[#allocation20_spill] sm:$0xff]  ;;  %v5032_v36 = vld [vmem:[#allocation5_spill] sm:$0xff] }
 0x1ed   :  { %v2086_v3 = vadd.f32 %v2016_v47, %v1845_v1  ;;  %v2369_v23 = vpop.f32.mrf.mxu0  ;;  %v2020_v49 = vpop.f32.mrf.mxu1  ;;  %v1849_v38 = vadd.f32 %v5025_v58, %v1607_v26  ;;  %v1851_v35 = vadd.f32 %v5029_v15, %v1609_v20  ;;  %v5033_v47 = vld [vmem:[#allocation25_spill] sm:$0xff]  ;;  %v5041_v58 = vld [vmem:[#allocation28_spill] sm:$0xff] }
 0x1ee   :  { %v2592_v55 = vadd.f32 %v2591_v52, %v2577_v7  ;;  %2464 = vst [vmem:[%s4976_s2 + $0x30] sm:$0xff] %v2438_v54  ;;  %v2479_v0 = vadd.f32 %v2478_v62, %v2438_v54  ;;  %v2502_v27 = vmul.f32 %v2438_v54, %v2438_v54  ;;  %v2087_v53 = vadd.f32 %v2020_v49, %v1846_v39  ;;  %v5030_v39 = vld [vmem:[#allocation4_spill] sm:$0xff]  ;;  %v5040_v20 = vld [vmem:[#allocation29_spill] sm:$0xff] }
 0x1ef   :  { %v2439_v8 = vadd.f32 %v2369_v23, %v2086_v3  ;;  %v2373_v24 = vpop.f32.mrf.mxu0  ;;  %v2022_v11 = vpop.f32.mrf.mxu1  ;;  %v1611_v52 = vadd.f32 %v5031_v32, %v5030_v39  ;;  %v5047_v39 = vld [vmem:[#allocation10_spill] sm:$0xff]  ;;  %v5048_v32 = vld [vmem:[#allocation35_spill] sm:$0xff] }
 0x1f0   :  { %v2517_v43 = vadd.f32 %v2516_v16, %v2502_v27  ;;  %v2440_v10 = vadd.f32 %v2373_v24, %v2087_v53  ;;  %v2088_v9 = vadd.f32 %v2022_v11, %v1847_v56  ;;  %v1612_v16 = vadd.f32 %v5033_v47, %v5032_v36  ;;  %v5034_v56 = vld [vmem:[#allocation22_spill] sm:$0xff]  ;;  %v5036_v27 = vld [vmem:[#allocation27_spill] sm:$0xff] }
 0x1f1   :  { %2540 = vst [vmem:[%s4977_s4 + $0x30] sm:$0xff] %v2439_v8  ;;  %v2555_v60 = vadd.f32 %v2554_v29, %v2439_v8  ;;  %v2578_v51 = vmul.f32 %v2439_v8, %v2439_v8  ;;  %v2375_v4 = vpop.f32.mrf.mxu0  ;;  %v2026_v41 = vpop.f32.mrf.mxu1  ;;  %v1852_v3 = vadd.f32 %v5034_v56, %v1610_v48 }
 0x1f2   :  { %2465 = vst [vmem:[%s4976_s2 + $0x38] sm:$0xff] %v2440_v10  ;;  %v2480_v13 = vadd.f32 %v2479_v0, %v2440_v10  ;;  %v2503_v50 = vmul.f32 %v2440_v10, %v2440_v10  ;;  %v2441_v44 = vadd.f32 %v2375_v4, %v2088_v9  ;;  %v2089_v63 = vadd.f32 %v2026_v41, %v1848_v57  ;;  %v5035_v0 = vld [vmem:[#allocation6_spill] sm:$0xff] }
 0x1f3   :  { %v2593_v25 = vadd.f32 %v2592_v55, %v2578_v51  ;;  %v2379_v34 = vpop.f32.mrf.mxu0  ;;  %v2028_v2 = vpop.f32.mrf.mxu1  ;;  %v1613_v53 = vadd.f32 %v5036_v27, %v5035_v0  ;;  %v5038_v9 = vld [vmem:[#allocation26_spill] sm:$0xff]  ;;  %v5051_v27 = vld [vmem:[#allocation11_spill] sm:$0xff] }
 0x1f4   :  { %v2518_v61 = vadd.f32 %v2517_v43, %v2503_v50  ;;  %2541 = vst [vmem:[%s4977_s4 + $0x38] sm:$0xff] %v2441_v44  ;;  %v2556_v19 = vadd.f32 %v2555_v60, %v2441_v44  ;;  %v2579_v21 = vmul.f32 %v2441_v44, %v2441_v44  ;;  %v2442_v31 = vadd.f32 %v2379_v34, %v2089_v63  ;;  %v5037_v43 = vld [vmem:[#allocation24_spill] sm:$0xff] }
 0x1f5   :  { %v2090_v37 = vadd.f32 %v2028_v2, %v1849_v38  ;;  %v2381_v12 = vpop.f32.mrf.mxu0  ;;  %v2032_v62 = vpop.f32.mrf.mxu1  ;;  %v1853_v10 = vadd.f32 %v5037_v43, %v1611_v52  ;;  %v1854_v33 = vadd.f32 %v5038_v9, %v1612_v16  ;;  %v1614_v60 = vadd.f32 %v5040_v20, %v5039_v22  ;;  %v5042_v2 = vld [vmem:[#allocation8_spill] sm:$0xff] }
 0x1f6   :  { %v2594_v5 = vadd.f32 %v2593_v25, %v2579_v21  ;;  %2466 = vst [vmem:[%s4976_s2 + $0x40] sm:$0xff] %v2442_v31  ;;  %v2481_v18 = vadd.f32 %v2480_v13, %v2442_v31  ;;  %v2504_v28 = vmul.f32 %v2442_v31, %v2442_v31  ;;  %v2091_v1 = vadd.f32 %v2032_v62, %v1850_v45  ;;  %v5044_v21 = vld [vmem:[#allocation9_spill] sm:$0xff]  ;;  %v5046_v62 = vld [vmem:[#allocation30_spill] sm:$0xff]  ;;  %v5053_v43 = vld [vmem:[#allocation36_spill] sm:$0xff] }
 0x1f7   :  { %v2443_v29 = vadd.f32 %v2381_v12, %v2090_v37  ;;  %v2385_v7 = vpop.f32.mrf.mxu0  ;;  %v2034_v54 = vpop.f32.mrf.mxu1  ;;  %v1855_v38 = vadd.f32 %v5041_v58, %v1613_v53  ;;  %v5045_v31 = vld [vmem:[#allocation33_spill] sm:$0xff]  ;;  %v1617_v52 = vadd.f32 %v5048_v32, %v5047_v39 }
 0x1f8   :  { %v2519_v23 = vadd.f32 %v2518_v61, %v2504_v28  ;;  %v2444_v49 = vadd.f32 %v2385_v7, %v2091_v1  ;;  %v2092_v55 = vadd.f32 %v2034_v54, %v1851_v35  ;;  %v5043_v61 = vld [vmem:[#allocation31_spill] sm:$0xff]  ;;  %v1616_v15 = vadd.f32 %v5045_v31, %v5044_v21  ;;  %v5052_v53 = vld [vmem:[#allocation37_spill] sm:$0xff] }
 0x1f9   :  { %2542 = vst [vmem:[%s4977_s4 + $0x40] sm:$0xff] %v2443_v29  ;;  %v2557_v26 = vadd.f32 %v2556_v19, %v2443_v29  ;;  %v2580_v30 = vmul.f32 %v2443_v29, %v2443_v29  ;;  %v2387_v42 = vpop.f32.mrf.mxu0  ;;  %v2038_v8 = vpop.f32.mrf.mxu1  ;;  %v1615_v19 = vadd.f32 %v5043_v61, %v5042_v2  ;;  %v5059_v2 = vld [vmem:[#allocation14_spill] sm:$0xff] }
 0x1fa   :  { %2467 = vst [vmem:[%s4976_s2 + $0x48] sm:$0xff] %v2444_v49  ;;  %v2482_v24 = vadd.f32 %v2481_v18, %v2444_v49  ;;  %v2505_v11 = vmul.f32 %v2444_v49, %v2444_v49  ;;  %v2445_v14 = vadd.f32 %v2387_v42, %v2092_v55  ;;  %v2093_v57 = vadd.f32 %v2038_v8, %v1852_v3  ;;  %v5050_v55 = vld [vmem:[#allocation34_spill] sm:$0xff] }
 0x1fb   :  { %v2595_v51 = vadd.f32 %v2594_v5, %v2580_v30  ;;  %v2391_v4 = vpop.f32.mrf.mxu0  ;;  %v2040_v41 = vpop.f32.mrf.mxu1  ;;  %v1856_v5 = vadd.f32 %v5046_v62, %v1614_v60  ;;  %v1858_v0 = vadd.f32 %v5050_v55, %v1616_v15  ;;  %v1621_v61 = vadd.f32 %v4771_v40, %v5059_v2 }
 0x1fc   :  { %v2520_v13 = vadd.f32 %v2519_v23, %v2505_v11  ;;  %2543 = vst [vmem:[%s4977_s4 + $0x48] sm:$0xff] %v2445_v14  ;;  %v2558_v50 = vadd.f32 %v2557_v26, %v2445_v14  ;;  %v2581_v44 = vmul.f32 %v2445_v14, %v2445_v14  ;;  %v2446_v63 = vadd.f32 %v2391_v4, %v2093_v57  ;;  %v5049_v23 = vld [vmem:[#allocation32_spill] sm:$0xff] }
 0x1fd   :  { %v2094_v6 = vadd.f32 %v2040_v41, %v1853_v10  ;;  %v2393_v45 = vpop.f32.mrf.mxu0  ;;  %v2044_v59 = vpop.f32.mrf.mxu1  ;;  %v1857_v49 = vadd.f32 %v5049_v23, %v1615_v19  ;;  %v1618_v26 = vadd.f32 %v5052_v53, %v5051_v27  ;;  %v1859_v10 = vadd.f32 %v5053_v43, %v1617_v52  ;;  %v5054_v41 = vld [vmem:[#allocation12_spill] sm:$0xff] }
 0x1fe   :  { %v2596_v46 = vadd.f32 %v2595_v51, %v2581_v44  ;;  %2468 = vst [vmem:[%s4976_s2 + $0x50] sm:$0xff] %v2446_v63  ;;  %v2483_v48 = vadd.f32 %v2482_v24, %v2446_v63  ;;  %v2506_v25 = vmul.f32 %v2446_v63, %v2446_v63  ;;  %v2095_v34 = vadd.f32 %v2044_v59, %v1854_v33  ;;  %v5056_v44 = vld [vmem:[#allocation13_spill] sm:$0xff]  ;;  %v5058_v59 = vld [vmem:[#allocation38_spill] sm:$0xff] }
 0x1ff   :  { %v2447_v35 = vadd.f32 %v2393_v45, %v2094_v6  ;;  %v2397_v37 = vpop.f32.mrf.mxu0  ;;  %v2046_v12 = vpop.f32.mrf.mxu1  ;;  %v5057_v63 = vld [vmem:[#allocation41_spill] sm:$0xff] }
 0x200   :  { %v2521_v18 = vadd.f32 %v2520_v13, %v2506_v25  ;;  %v2448_v28 = vadd.f32 %v2397_v37, %v2095_v34  ;;  %v2096_v1 = vadd.f32 %v2046_v12, %v1855_v38  ;;  %v5055_v13 = vld [vmem:[#allocation39_spill] sm:$0xff]  ;;  %v1620_v58 = vadd.f32 %v5057_v63, %v5056_v44 }
 0x201   :  { %2544 = vst [vmem:[%s4977_s4 + $0x50] sm:$0xff] %v2447_v35  ;;  %v2559_v36 = vadd.f32 %v2558_v50, %v2447_v35  ;;  %v2582_v47 = vmul.f32 %v2447_v35, %v2447_v35  ;;  %v2399_v16 = vpop.f32.mrf.mxu0  ;;  %v2050_v29 = vpop.f32.mrf.mxu1  ;;  %v1619_v50 = vadd.f32 %v5055_v13, %v5054_v41 }
 0x202   :  { %2469 = vst [vmem:[%s4976_s2 + $0x58] sm:$0xff] %v2448_v28  ;;  %v2484_v7 = vadd.f32 %v2483_v48, %v2448_v28  ;;  %v2507_v54 = vmul.f32 %v2448_v28, %v2448_v28  ;;  %v2449_v56 = vadd.f32 %v2399_v16, %v2096_v1  ;;  %v2097_v3 = vadd.f32 %v2050_v29, %v1856_v5  ;;  %v5060_v5 = vld [vmem:[#allocation40_spill] sm:$0xff]  ;;  %v5061_v28 = vld [vmem:[#allocation42_spill] sm:$0xff] }
 0x203   :  { %v2597_v30 = vadd.f32 %v2596_v46, %v2582_v47  ;;  %v2403_v42 = vpop.f32.mrf.mxu0  ;;  %v2052_v8 = vpop.f32.mrf.mxu1  ;;  %v1860_v46 = vadd.f32 %v5058_v59, %v1618_v26  ;;  %v1862_v40 = vadd.f32 %v5061_v28, %v1620_v58  ;;  %v1863_v29 = vadd.f32 %v4775_v17, %v1621_v61 }
 0x204   :  { %v2522_v24 = vadd.f32 %v2521_v18, %v2507_v54  ;;  %2545 = vst [vmem:[%s4977_s4 + $0x58] sm:$0xff] %v2449_v56  ;;  %v2560_v11 = vadd.f32 %v2559_v36, %v2449_v56  ;;  %v2583_v14 = vmul.f32 %v2449_v56, %v2449_v56  ;;  %v2450_v57 = vadd.f32 %v2403_v42, %v2097_v3 }
 0x205   :  { %v2098_v9 = vadd.f32 %v2052_v8, %v1857_v49  ;;  %v2405_v33 = vpop.f32.mrf.mxu0  ;;  %v2056_v22 = vpop.f32.mrf.mxu1  ;;  %v1861_v18 = vadd.f32 %v5060_v5, %v1619_v50 }
 0x206   :  { %v2598_v20 = vadd.f32 %v2597_v30, %v2583_v14  ;;  %2470 = vst [vmem:[%s4976_s2 + $0x60] sm:$0xff] %v2450_v57  ;;  %v2485_v60 = vadd.f32 %v2484_v7, %v2450_v57  ;;  %v2508_v51 = vmul.f32 %v2450_v57, %v2450_v57  ;;  %v2099_v4 = vadd.f32 %v2056_v22, %v1858_v0 }
 0x207   :  { %v2451_v38 = vadd.f32 %v2405_v33, %v2098_v9  ;;  %v2409_v6 = vpop.f32.mrf.mxu0  ;;  %v2058_v45 = vpop.f32.mrf.mxu1 }
 0x208   :  { %v2523_v48 = vadd.f32 %v2522_v24, %v2508_v51  ;;  %v2452_v25 = vadd.f32 %v2409_v6, %v2099_v4  ;;  %v2100_v34 = vadd.f32 %v2058_v45, %v1859_v10 }
 0x209   :  { %2546 = vst [vmem:[%s4977_s4 + $0x60] sm:$0xff] %v2451_v38  ;;  %v2561_v19 = vadd.f32 %v2560_v11, %v2451_v38  ;;  %v2584_v21 = vmul.f32 %v2451_v38, %v2451_v38  ;;  %v2411_v31 = vpop.f32.mrf.mxu0  ;;  %v2062_v15 = vpop.f32.mrf.mxu1 }
 0x20a   :  { %2471 = vst [vmem:[%s4976_s2 + $0x68] sm:$0xff] %v2452_v25  ;;  %v2486_v35 = vadd.f32 %v2485_v60, %v2452_v25  ;;  %v2509_v37 = vmul.f32 %v2452_v25, %v2452_v25  ;;  %v2453_v12 = vadd.f32 %v2411_v31, %v2100_v34  ;;  %v2101_v62 = vadd.f32 %v2062_v15, %v1860_v46 }
 0x20b   :  { %v2599_v1 = vadd.f32 %v2598_v20, %v2584_v21  ;;  %v2415_v39 = vpop.f32.mrf.mxu0  ;;  %v2064_v32 = vpop.f32.mrf.mxu1 }
 0x20c   :  { %v2524_v52 = vadd.f32 %v2523_v48, %v2509_v37  ;;  %2547 = vst [vmem:[%s4977_s4 + $0x68] sm:$0xff] %v2453_v12  ;;  %v2562_v36 = vadd.f32 %v2561_v19, %v2453_v12  ;;  %v2585_v47 = vmul.f32 %v2453_v12, %v2453_v12  ;;  %v2454_v16 = vadd.f32 %v2415_v39, %v2101_v62 }
 0x20d   :  { %v2102_v7 = vadd.f32 %v2064_v32, %v1861_v18  ;;  %v2417_v54 = vpop.f32.mrf.mxu0  ;;  %v2068_v56 = vpop.f32.mrf.mxu1 }
 0x20e   :  { %v2600_v3 = vadd.f32 %v2599_v1, %v2585_v47  ;;  %2472 = vst [vmem:[%s4976_s2 + $0x70] sm:$0xff] %v2454_v16  ;;  %v2487_v23 = vadd.f32 %v2486_v35, %v2454_v16  ;;  %v2510_v49 = vmul.f32 %v2454_v16, %v2454_v16  ;;  %v2103_v55 = vadd.f32 %v2068_v56, %v1862_v40 }
 0x20f   :  { %v2455_v0 = vadd.f32 %v2417_v54, %v2102_v7  ;;  %v2421_v27 = vpop.f32.mrf.mxu0  ;;  %v2070_v53 = vpop.f32.mrf.mxu1 }
 0x210   :  { %v2525_v26 = vadd.f32 %v2524_v52, %v2510_v49  ;;  %v2456_v30 = vadd.f32 %v2421_v27, %v2103_v55  ;;  %v2104_v42 = vadd.f32 %v2070_v53, %v1863_v29 }
 0x211   :  { %2548 = vst [vmem:[%s4977_s4 + $0x70] sm:$0xff] %v2455_v0  ;;  %v2563_v17 = vadd.f32 %v2562_v36, %v2455_v0  ;;  %v2586_v8 = vmul.f32 %v2455_v0, %v2455_v0  ;;  %v2423_v24 = vpop.f32.mrf.mxu0 }
 0x212   :  { %2473 = vst [vmem:[%s4976_s2 + $0x78] sm:$0xff] %v2456_v30  ;;  %v2488_v11 = vadd.f32 %v2487_v23, %v2456_v30  ;;  %v2511_v14 = vmul.f32 %v2456_v30, %v2456_v30  ;;  %v2457_v57 = vadd.f32 %v2423_v24, %v2104_v42 }
 0x213   :  { %v2601_v43 = vadd.f32 %v2600_v3, %v2586_v8 }
 0x214   :  { %v2489_v10 = vrot.slane %v2488_v11, 4  ;;  %v2526_v9 = vadd.f32 %v2525_v26, %v2511_v14  ;;  %2549 = vst [vmem:[%s4977_s4 + $0x78] sm:$0xff] %v2457_v57  ;;  %v2564_v33 = vadd.f32 %v2563_v17, %v2457_v57  ;;  %v2587_v22 = vmul.f32 %v2457_v57, %v2457_v57 }
 0x216   :  { %v2490_v20 = vadd.f32 %v2489_v10, %v2488_v11  ;;  %v2527_v60 = vrot.slane %v2526_v9, 4  ;;  %v2565_v51 = vrot.slane %v2564_v33, 4  ;;  %v2602_v4 = vadd.f32 %v2601_v43, %v2587_v22 }
 0x218   :  { %v2491_v41 = vrot.slane %v2490_v20, 2  ;;  %v2528_v13 = vadd.f32 %v2527_v60, %v2526_v9  ;;  %v2566_v50 = vadd.f32 %v2565_v51, %v2564_v33  ;;  %v2603_v44 = vrot.slane %v2602_v4, 4 }
 0x21a   :  { %v2492_v63 = vadd.f32 %v2491_v41, %v2490_v20  ;;  %v2529_v58 = vrot.slane %v2528_v13, 2  ;;  %v2567_v38 = vrot.slane %v2566_v50, 2  ;;  %v2604_v6 = vadd.f32 %v2603_v44, %v2602_v4 }
 0x21c   :  { %v2493_v45 = vrot.slane %v2492_v63, 1  ;;  %v2530_v59 = vadd.f32 %v2529_v58, %v2528_v13  ;;  %v2568_v46 = vadd.f32 %v2567_v38, %v2566_v50  ;;  %v2605_v48 = vrot.slane %v2604_v6, 2 }
 0x21e   :  { %v2494_v25 = vadd.f32 %v2493_v45, %v2492_v63  ;;  %v2531_v34 = vrot.slane %v2530_v59, 1  ;;  %v2569_v2 = vrot.slane %v2568_v46, 1  ;;  %v2606_v61 = vadd.f32 %v2605_v48, %v2604_v6 }
 0x220   :  { %2495 = vst [vmem:[%s4978_s3] sm:$0x1] %v2494_v25  ;;  %v2532_v19 = vadd.f32 %v2531_v34, %v2530_v59  ;;  %v2570_v21 = vadd.f32 %v2569_v2, %v2568_v46  ;;  %v2607_v31 = vrot.slane %v2606_v61, 1 }
 0x222   :  { %2533 = vst [vmem:[%s4978_s3 + $0x1] sm:$0x1] %v2532_v19  ;;  %2571 = vst [vmem:[%s4979_s5] sm:$0x1] %v2570_v21  ;;  %v2608_v15 = vadd.f32 %v2607_v31, %v2606_v61 }
 0x224   :  { %2609 = vst [vmem:[%s4979_s5 + $0x1] sm:$0x1] %v2608_v15 }

</bundles_post_ra>
